<compile_context>
chip_gen: v7x
topology: tpu7x:2x2x1
jax: 0.10.0
libtpu: 0.0.40
codegen_flags: <defaults>
</compile_context>

<pallas_src>
import functools
import jax
import jax.numpy as jnp
from jax.experimental import pallas as pl
from jax.experimental.pallas import tpu as pltpu

_VMEM_LIMIT = 48 * 1024 * 1024  # explicit scoped-VMEM request (fits v7x's 64 MiB)
VMEM_SPEC = pl.BlockSpec(memory_space=pltpu.MemorySpace.VMEM)


# -----------------------------------------------------------------------------
# In-kernel helpers (pure jnp on f32 values)
# -----------------------------------------------------------------------------

def _gelu(x):
    # tanh-approx GELU in f32 (tanh goes to the EUP, so it's close to free).
    # TODO(synk): exact erf GELU (HF default) if bit-parity with a checkpoint is needed.
    return 0.5 * x * (1.0 + jnp.tanh(0.7978845608028654 * (x + 0.044715 * x * x * x)))


def _ln(x, g, b, eps):
    mu = jnp.mean(x, axis=-1, keepdims=True)
    xc = x - mu
    var = jnp.mean(xc * xc, axis=-1, keepdims=True)
    return xc * jax.lax.rsqrt(var + eps) * g + b


# -----------------------------------------------------------------------------
# Tiled matmul (+bias, optional GELU) — used for the patch embedding
# -----------------------------------------------------------------------------

def _matmul_kernel(x_ref, w_ref, b_ref, o_ref, acc_ref, *, activation):
    @pl.when(pl.program_id(2) == 0)
    def _():
        acc_ref[...] = jnp.zeros_like(acc_ref)

    acc_ref[...] += jnp.dot(
        x_ref[...].astype(jnp.bfloat16), w_ref[...].astype(jnp.bfloat16),
        preferred_element_type=jnp.float32)

    @pl.when(pl.program_id(2) == pl.num_programs(2) - 1)
    def _():
        y = acc_ref[...] + b_ref[...]
        if activation == "gelu":
            y = _gelu(y)
        o_ref[...] = y


def matmul_bias(x, w, b, activation=None, *, tm=256, tn=256, tk=512):
    """x: (M, K) f32, w: (K, N) bf16, b: (N,) f32 -> (M, N) f32.

    Standard tiled MXU matmul with f32 VMEM accumulator; tiles shrink to the
    full dims at small shapes and are capped at 256/512 so the double-buffered
    bf16 tiles + f32 accumulator fit v7x's 64 MiB VMEM.
    """
    M, K = x.shape
    N = w.shape[1]
    tm, tn, tk = min(tm, M), min(tn, N), min(tk, K)
    grid = (pl.cdiv(M, tm), pl.cdiv(N, tn), pl.cdiv(K, tk))
    return pl.pallas_call(
        functools.partial(_matmul_kernel, activation=activation),
        grid=grid,
        in_specs=[
            pl.BlockSpec((tm, tk), lambda i, j, k: (i, k)),
            pl.BlockSpec((tk, tn), lambda i, j, k: (k, j)),
            pl.BlockSpec((1, tn), lambda i, j, k: (0, j)),
        ],
        out_specs=pl.BlockSpec((tm, tn), lambda i, j, k: (i, j)),
        out_shape=jax.ShapeDtypeStruct((M, N), jnp.float32),
        scratch_shapes=[pltpu.VMEM((tm, tn), jnp.float32)],
        compiler_params=pltpu.CompilerParams(
            dimension_semantics=("parallel", "parallel", "arbitrary"),
            vmem_limit_bytes=_VMEM_LIMIT),
    )(x, w, b.reshape(1, N))


# -----------------------------------------------------------------------------
# Standalone LayerNorm (used once, for the BERT embedding LN)
# -----------------------------------------------------------------------------

def _layernorm_kernel(x_ref, g_ref, b_ref, o_ref, *, eps):
    o_ref[...] = _ln(x_ref[...].astype(jnp.float32), g_ref[...], b_ref[...], eps)


def layernorm(x, g, b, eps):
    M, D = x.shape
    return pl.pallas_call(
        functools.partial(_layernorm_kernel, eps=eps),
        out_shape=jax.ShapeDtypeStruct((M, D), jnp.float32),
        in_specs=[VMEM_SPEC, VMEM_SPEC, VMEM_SPEC],
        out_specs=VMEM_SPEC,
    )(x, g.reshape(1, D), b.reshape(1, D))


# -----------------------------------------------------------------------------
# Fused transformer layer: LN + MHA (packed QKV, in-kernel mask) + residual
#                          + LN + GELU MLP + residual — one pallas_call per layer
# -----------------------------------------------------------------------------

def _layer_kernel(*refs, nheads, pre_ln, has_mask, eps):
    if has_mask:
        (x_ref, mask_ref, wqkv_ref, bqkv_ref, wo_ref, bo_ref,
         ln1g_ref, ln1b_ref, w1_ref, b1_ref, w2_ref, b2_ref,
         ln2g_ref, ln2b_ref, o_ref) = refs
    else:
        (x_ref, wqkv_ref, bqkv_ref, wo_ref, bo_ref,
         ln1g_ref, ln1b_ref, w1_ref, b1_ref, w2_ref, b2_ref,
         ln2g_ref, ln2b_ref, o_ref) = refs
        mask_ref = None

    x = x_ref[0].astype(jnp.float32)                      # (S, D)
    S, D = x.shape
    Dh = D // nheads
    scale = 1.0 / float(Dh) ** 0.5

    ln1_g, ln1_b = ln1g_ref[...], ln1b_ref[...]
    ln2_g, ln2_b = ln2g_ref[...], ln2b_ref[...]

    # ---- attention sub-block: QKV proj + softmax + PV + out-proj + residual
    h = _ln(x, ln1_g, ln1_b, eps) if pre_ln else x
    qkv = jnp.dot(h.astype(jnp.bfloat16), wqkv_ref[...],
                  preferred_element_type=jnp.float32) + bqkv_ref[...]   # (S, 3D)
    wo = wo_ref[...]                                                    # (D, D) bf16
    mask_bias = mask_ref[0] if mask_ref is not None else None           # (1, S) or None

    # Per-head Python loop (unrolled at trace time — still one kernel).
    # concat(ctx_h) @ Wo  ==  sum_h ctx_h @ Wo[h*Dh:(h+1)*Dh, :]
    attn = jnp.zeros((S, D), jnp.float32)
    for hd in range(nheads):
        # fold softmax scale into q (scales (S,Dh) instead of (S,S))
        q = (qkv[:, hd * Dh:(hd + 1) * Dh] * scale).astype(jnp.bfloat16)
        k = qkv[:, D + hd * Dh:D + (hd + 1) * Dh].astype(jnp.bfloat16)
        v = qkv[:, 2 * D + hd * Dh:2 * D + (hd + 1) * Dh].astype(jnp.bfloat16)
        s = jax.lax.dot_general(q, k, (((1,), (1,)), ((), ())),
                                preferred_element_type=jnp.float32)     # (S, S)
        if mask_bias is not None:
            s = s + mask_bias                                           # key-wise bias
        s = s - jnp.max(s, axis=-1, keepdims=True)
        p = jnp.exp(s)
        p = p * pl.reciprocal(jnp.sum(p, axis=-1, keepdims=True), approx=True)
        ctx = jnp.dot(p.astype(jnp.bfloat16), v,
                      preferred_element_type=jnp.float32)               # (S, Dh)
        attn = attn + jnp.dot(ctx.astype(jnp.bfloat16),
                              wo[hd * Dh:(hd + 1) * Dh, :],
                              preferred_element_type=jnp.float32)
    y = x + attn + bo_ref[...]
    if not pre_ln:
        y = _ln(y, ln1_g, ln1_b, eps)

    # ---- MLP sub-block: LN + GELU MLP + residual
    h2 = _ln(y, ln2_g, ln2_b, eps) if pre_ln else y
    m = _gelu(jnp.dot(h2.astype(jnp.bfloat16), w1_ref[...],
                      preferred_element_type=jnp.float32) + b1_ref[...])
    z = y + jnp.dot(m.astype(jnp.bfloat16), w2_ref[...],
                    preferred_element_type=jnp.float32) + b2_ref[...]
    if not pre_ln:
        z = _ln(z, ln2_g, ln2_b, eps)
    o_ref[0] = z


def transformer_layer(x, mask_bias, lp, *, nheads, pre_ln, eps=1e-12):
    """x: (B, S, D) f32, mask_bias: None or (B, 1, S) f32 additive bias."""
    B, S, D = x.shape
    M = lp["w1"].shape[1]
    has_mask = mask_bias is not None

    def rep(shape):
        # constant index_map -> Pallas fetches the weight block once and
        # skips the DMA on subsequent (batch) grid iterations.
        return pl.BlockSpec(shape, lambda b: (0,) * len(shape))

    in_specs = [pl.BlockSpec((1, S, D), lambda b: (b, 0, 0))]
    inputs = [x]
    if has_mask:
        in_specs.append(pl.BlockSpec((1, 1, S), lambda b: (b, 0, 0)))
        inputs.append(mask_bias)
    in_specs += [
        rep((D, 3 * D)), rep((1, 3 * D)),      # wqkv, bqkv
        rep((D, D)), rep((1, D)),              # wo, bo
        rep((1, D)), rep((1, D)),              # ln1 g/b
        rep((D, M)), rep((1, M)),              # w1, b1
        rep((M, D)), rep((1, D)),              # w2, b2
        rep((1, D)), rep((1, D)),              # ln2 g/b
    ]
    inputs += [
        lp["wqkv"], lp["bqkv"].reshape(1, 3 * D),
        lp["wo"], lp["bo"].reshape(1, D),
        lp["ln1_g"].reshape(1, D), lp["ln1_b"].reshape(1, D),
        lp["w1"], lp["b1"].reshape(1, M),
        lp["w2"], lp["b2"].reshape(1, D),
        lp["ln2_g"].reshape(1, D), lp["ln2_b"].reshape(1, D),
    ]
    return pl.pallas_call(
        functools.partial(_layer_kernel, nheads=nheads, pre_ln=pre_ln,
                          has_mask=has_mask, eps=eps),
        grid=(B,),
        in_specs=in_specs,
        out_specs=pl.BlockSpec((1, S, D), lambda b: (b, 0, 0)),
        out_shape=jax.ShapeDtypeStruct((B, S, D), jnp.float32),
        compiler_params=pltpu.CompilerParams(
            dimension_semantics=("parallel",),
            vmem_limit_bytes=_VMEM_LIMIT),
    )(*inputs)


# -----------------------------------------------------------------------------
# Fused [final LN] + mean-pool(seq) + projection + LayerNorm(512), grid over B
# -----------------------------------------------------------------------------

def _pool_proj_norm_kernel(*refs, final_ln, ln_eps, out_eps):
    if final_ln:
        (h_ref, fg_ref, fb_ref, w_ref, b_ref, g_ref, beta_ref, o_ref) = refs
    else:
        (h_ref, w_ref, b_ref, g_ref, beta_ref, o_ref) = refs
    h = h_ref[0].astype(jnp.float32)                   # (S, D)
    if final_ln:
        h = _ln(h, fg_ref[...], fb_ref[...], ln_eps)   # per-token encoder final LN
    pooled = jnp.mean(h, axis=0, keepdims=True)        # (1, D) — unmasked mean (matches ref)
    y = jnp.dot(pooled.astype(jnp.bfloat16), w_ref[...],
                preferred_element_type=jnp.float32) + b_ref[...]        # (1, P)
    o_ref[0] = _ln(y, g_ref[...], beta_ref[...], out_eps)


def pool_proj_norm(h, w, b, g, beta, final_g=None, final_b=None,
                   *, ln_eps=1e-12, out_eps=1e-5):
    """h: (B, S, D) -> [final LN] -> mean over S -> Linear(D, P) -> LayerNorm(P)."""
    B, S, D = h.shape
    P = w.shape[1]
    final_ln = final_g is not None

    def rep(shape):
        return pl.BlockSpec(shape, lambda i: (0,) * len(shape))

    in_specs = [pl.BlockSpec((1, S, D), lambda i: (i, 0, 0))]
    inputs = [h]
    if final_ln:
        in_specs += [rep((1, D)), rep((1, D))]
        inputs += [final_g.reshape(1, D), final_b.reshape(1, D)]
    in_specs += [rep((D, P)), rep((1, P)), rep((1, P)), rep((1, P))]
    inputs += [w, b.reshape(1, P), g.reshape(1, P), beta.reshape(1, P)]

    out = pl.pallas_call(
        functools.partial(_pool_proj_norm_kernel, final_ln=final_ln,
                          ln_eps=ln_eps, out_eps=out_eps),
        grid=(B,),
        in_specs=in_specs,
        out_specs=pl.BlockSpec((1, 1, P), lambda i: (i, 0, 0)),
        out_shape=jax.ShapeDtypeStruct((B, 1, P), jnp.float32),
        compiler_params=pltpu.CompilerParams(
            dimension_semantics=("parallel",),
            vmem_limit_bytes=_VMEM_LIMIT),
    )(*inputs)
    return out.reshape(B, P)


# -----------------------------------------------------------------------------
# Cosine similarity (B, P) x (B, P) -> (B, B)
# -----------------------------------------------------------------------------

def _cosine_sim_kernel(a_ref, b_ref, o_ref):
    a = a_ref[...].astype(jnp.float32)
    b = b_ref[...].astype(jnp.float32)
    a = a * jax.lax.rsqrt(jnp.sum(a * a, axis=-1, keepdims=True))
    b = b * jax.lax.rsqrt(jnp.sum(b * b, axis=-1, keepdims=True))
    o_ref[...] = jax.lax.dot_general(a, b, (((1,), (1,)), ((), ())),
                                     preferred_element_type=jnp.float32)


def cosine_similarity(img_emb, txt_emb):
    B = img_emb.shape[0]
    return pl.pallas_call(
        _cosine_sim_kernel,
        out_shape=jax.ShapeDtypeStruct((B, B), jnp.float32),
        in_specs=[VMEM_SPEC, VMEM_SPEC],
        out_specs=VMEM_SPEC,
    )(img_emb, txt_emb)


# -----------------------------------------------------------------------------
# Model glue
# -----------------------------------------------------------------------------

def patchify(images, patch):
    """(B, C, H, W) NCHW -> (B, num_patches, C*patch*patch)"""
    B, C, H, W = images.shape
    nh, nw = H // patch, W // patch
    x = images.reshape(B, C, nh, patch, nw, patch)
    x = x.transpose(0, 2, 4, 1, 3, 5)
    return x.reshape(B, nh * nw, C * patch * patch)


def vlm_forward(params, cfg, images, input_ids, attention_mask):
    B = images.shape[0]

    # ----------------- vision tower (ViT-like, pre-LN) -----------------
    patches = patchify(images, cfg["patch"])                           # (B, np, C*p*p)
    npatches = patches.shape[1]
    Dv = cfg["d_vision"]
    pe = matmul_bias(patches.reshape(B * npatches, -1),
                     params["v_patch_w"], params["v_patch_b"]).reshape(B, npatches, Dv)
    cls = jnp.broadcast_to(params["v_cls"], (B, 1, Dv))
    h = jnp.concatenate([cls, pe], axis=1) + params["v_pos"]           # (B, Sv, Dv)
    for lp in params["v_layers"]:
        h = transformer_layer(h, None, lp, nheads=cfg["heads_vision"], pre_ln=True)
    # final encoder LN + mean over seq + vision_projection + shared LayerNorm(512)
    image_embeddings = pool_proj_norm(
        h, params["vproj_w"], params["vproj_b"],
        params["norm_g"], params["norm_b"],
        final_g=params["v_final_g"], final_b=params["v_final_b"])

    # ----------------- text tower (BERT-like, post-LN) -----------------
    L = input_ids.shape[1]
    Dt = cfg["d_text"]
    we = jnp.take(params["t_word_emb"], input_ids, axis=0)             # (B, L, Dt)
    pos = params["t_pos_emb"][:L][None, :, :]
    tok_type = params["t_type_emb"][0][None, None, :]
    emb = we + pos + tok_type
    emb = layernorm(emb.reshape(B * L, Dt),
                    params["t_emb_ln_g"], params["t_emb_ln_b"], eps=1e-12).reshape(B, L, Dt)
    # tiny (B, 1, L) additive bias, broadcast inside the attention kernel
    mask_bias = ((1.0 - attention_mask.astype(jnp.float32)) * -1e9).reshape(B, 1, L)
    h = emb
    for lp in params["t_layers"]:
        h = transformer_layer(h, mask_bias, lp, nheads=cfg["heads_text"], pre_ln=False)
    # mean over seq + text_projection + shared LayerNorm(512)
    text_embeddings = pool_proj_norm(
        h, params["tproj_w"], params["tproj_b"],
        params["norm_g"], params["norm_b"])

    # ----------------- cosine similarity -----------------
    similarity = cosine_similarity(image_embeddings, text_embeddings)
    return image_embeddings, text_embeddings, similarity


# -----------------------------------------------------------------------------
# Deterministic parameter init (matmul weights stored bf16; norms/biases f32)
# -----------------------------------------------------------------------------

def init_params(cfg, key):
    keys = iter(jax.random.split(key, 256))

    def nrm(shape, scale=0.02, dtype=jnp.bfloat16):
        return (scale * jax.random.normal(next(keys), shape)).astype(dtype)

    def layer(D, mlp):
        return dict(
            ln1_g=jnp.ones((D,), jnp.float32), ln1_b=jnp.zeros((D,), jnp.float32),
            wqkv=nrm((D, 3 * D)), bqkv=jnp.zeros((3 * D,), jnp.float32),
            wo=nrm((D, D)), bo=jnp.zeros((D,), jnp.float32),
            ln2_g=jnp.ones((D,), jnp.float32), ln2_b=jnp.zeros((D,), jnp.float32),
            w1=nrm((D, mlp)), b1=jnp.zeros((mlp,), jnp.float32),
            w2=nrm((mlp, D)), b2=jnp.zeros((D,), jnp.float32),
        )

    Dv, Dt, P = cfg["d_vision"], cfg["d_text"], cfg["proj"]
    C, p = cfg["channels"], cfg["patch"]
    npatches = (cfg["image"] // p) ** 2
    params = dict(
        # vision
        v_patch_w=nrm((C * p * p, Dv)), v_patch_b=jnp.zeros((Dv,), jnp.float32),
        v_cls=nrm((1, 1, Dv), dtype=jnp.float32),
        v_pos=nrm((1, npatches + 1, Dv), dtype=jnp.float32),
        v_layers=[layer(Dv, cfg["mlp_vision"]) for _ in range(cfg["layers_vision"])],
        v_final_g=jnp.ones((Dv,), jnp.float32), v_final_b=jnp.zeros((Dv,), jnp.float32),
        # text
        t_word_emb=nrm((cfg["vocab"], Dt), dtype=jnp.float32),
        t_pos_emb=nrm((cfg["max_pos"], Dt), dtype=jnp.float32),
        t_type_emb=nrm((2, Dt), dtype=jnp.float32),
        t_emb_ln_g=jnp.ones((Dt,), jnp.float32), t_emb_ln_b=jnp.zeros((Dt,), jnp.float32),
        t_layers=[layer(Dt, cfg["mlp_text"]) for _ in range(cfg["layers_text"])],
        # projections + shared norm (nn.Linear + nn.LayerNorm(512))
        vproj_w=nrm((Dv, P)), vproj_b=jnp.zeros((P,), jnp.float32),
        tproj_w=nrm((Dt, P)), tproj_b=jnp.zeros((P,), jnp.float32),
        norm_g=jnp.ones((P,), jnp.float32), norm_b=jnp.zeros((P,), jnp.float32),
    )
    return params


# TODO(synk): pretrained HF checkpoint loading and BertTokenizer preprocessing
# (get_text_preprocessor) have no Pallas equivalent; weights here are synthetic.

if __name__ == "__main__":
    cfg = dict(
        channels=3, image=16, patch=8,
        d_vision=64, heads_vision=2, mlp_vision=128, layers_vision=2,
        vocab=64, max_pos=16, d_text=32, heads_text=2, mlp_text=64, layers_text=2,
        proj=512,
    )
    B, L = 2, 8

    key = jax.random.PRNGKey(0)
    k_img, k_ids, k_params = jax.random.split(key, 3)

    images = jax.random.normal(k_img, (B, cfg["channels"], cfg["image"], cfg["image"]),
                               dtype=jnp.float32)
    input_ids = jax.random.randint(k_ids, (B, L), 0, cfg["vocab"], dtype=jnp.int32)
    attention_mask = jnp.ones((B, L), jnp.int32).at[1, 6:].set(0)

    params = init_params(cfg, k_params)

    @jax.jit
    def fwd(prm, imgs, ids, mask):
        return vlm_forward(prm, cfg, imgs, ids, mask)

    img_emb, txt_emb, sim = fwd(params, images, input_ids, attention_mask)
    jax.block_until_ready((img_emb, txt_emb, sim))

    assert img_emb.shape == (B, cfg["proj"])
    assert txt_emb.shape == (B, cfg["proj"])
    assert sim.shape == (B, B)
    assert bool(jnp.all(jnp.isfinite(sim)))
    print("KERNEL_OK")
</pallas_src>

<mosaic_0001>
module attributes {stable_mosaic.version = 11 : i64} {
  func.func @_layernorm_kernel(%arg0: memref<16x32xf32, #tpu.memory_space<vmem>>, %arg1: memref<1x32xf32, #tpu.memory_space<vmem>>, %arg2: memref<1x32xf32, #tpu.memory_space<vmem>>, %arg3: memref<16x32xf32, #tpu.memory_space<vmem>>) attributes {dimension_semantics = [], scalar_prefetch = 0 : i64, scratch_operands = 0 : i64, tpu.core_type = #tpu.core_type<tc>} {
    %c0 = arith.constant 0 : index
    %c0_0 = arith.constant 0 : index
    %0 = vector.load %arg0[%c0, %c0_0] : memref<16x32xf32, #tpu.memory_space<vmem>>, vector<16x32xf32>
    %c0_1 = arith.constant 0 : index
    %c0_2 = arith.constant 0 : index
    %1 = vector.load %arg1[%c0_1, %c0_2] : memref<1x32xf32, #tpu.memory_space<vmem>>, vector<1x32xf32>
    %c0_3 = arith.constant 0 : index
    %c0_4 = arith.constant 0 : index
    %2 = vector.load %arg2[%c0_3, %c0_4] : memref<1x32xf32, #tpu.memory_space<vmem>>, vector<1x32xf32>
    %cst = arith.constant dense<0.000000e+00> : vector<16xf32>
    %3 = vector.multi_reduction <add>, %0, %cst [1] : vector<16x32xf32> to vector<16xf32>
    %4 = vector.shape_cast %3 : vector<16xf32> to vector<16x1xf32>
    %cst_5 = arith.constant 3.200000e+01 : f32
    %5 = vector.broadcast %cst_5 : f32 to vector<16x1xf32>
    %6 = arith.divf %4, %5 : vector<16x1xf32>
    %7 = vector.broadcast %6 : vector<16x1xf32> to vector<16x32xf32>
    %8 = arith.subf %0, %7 : vector<16x32xf32>
    %9 = arith.mulf %8, %8 : vector<16x32xf32>
    %cst_6 = arith.constant dense<0.000000e+00> : vector<16xf32>
    %10 = vector.multi_reduction <add>, %9, %cst_6 [1] : vector<16x32xf32> to vector<16xf32>
    %11 = vector.shape_cast %10 : vector<16xf32> to vector<16x1xf32>
    %cst_7 = arith.constant 3.200000e+01 : f32
    %12 = vector.broadcast %cst_7 : f32 to vector<16x1xf32>
    %13 = arith.divf %11, %12 : vector<16x1xf32>
    %cst_8 = arith.constant 9.99999996E-13 : f32
    %14 = vector.broadcast %cst_8 : f32 to vector<16x1xf32>
    %15 = arith.addf %13, %14 : vector<16x1xf32>
    %16 = math.rsqrt %15 : vector<16x1xf32>
    %17 = vector.broadcast %16 : vector<16x1xf32> to vector<16x32xf32>
    %18 = arith.mulf %8, %17 : vector<16x32xf32>
    %19 = vector.broadcast %1 : vector<1x32xf32> to vector<16x32xf32>
    %20 = arith.mulf %18, %19 : vector<16x32xf32>
    %21 = vector.broadcast %2 : vector<1x32xf32> to vector<16x32xf32>
    %22 = arith.addf %20, %21 : vector<16x32xf32>
    %c0_9 = arith.constant 0 : index
    %c0_10 = arith.constant 0 : index
    %23 = vector.load %arg3[%c0_9, %c0_10] : memref<16x32xf32, #tpu.memory_space<vmem>>, vector<16x32xf32>
    tpu.vector_store %arg3[%c0_9, %c0_10], %22 {strides = array<i32>} : memref<16x32xf32, #tpu.memory_space<vmem>>, vector<16x32xf32>,
    return
  }
}

module attributes {stable_mosaic.version = 11 : i64} {
  func.func @_layer_kernel(%arg0: i32, %arg1: memref<1x8x32xf32, #tpu.memory_space<vmem>>, %arg2: memref<1x1x8xf32, #tpu.memory_space<vmem>>, %arg3: memref<32x96xbf16, #tpu.memory_space<vmem>>, %arg4: memref<1x96xf32, #tpu.memory_space<vmem>>, %arg5: memref<32x32xbf16, #tpu.memory_space<vmem>>, %arg6: memref<1x32xf32, #tpu.memory_space<vmem>>, %arg7: memref<1x32xf32, #tpu.memory_space<vmem>>, %arg8: memref<1x32xf32, #tpu.memory_space<vmem>>, %arg9: memref<32x64xbf16, #tpu.memory_space<vmem>>, %arg10: memref<1x64xf32, #tpu.memory_space<vmem>>, %arg11: memref<64x32xbf16, #tpu.memory_space<vmem>>, %arg12: memref<1x32xf32, #tpu.memory_space<vmem>>, %arg13: memref<1x32xf32, #tpu.memory_space<vmem>>, %arg14: memref<1x32xf32, #tpu.memory_space<vmem>>, %arg15: memref<1x8x32xf32, #tpu.memory_space<vmem>>) attributes {dimension_semantics = [#tpu.dimension_semantics<parallel>], iteration_bounds = array<i64: 2>, scalar_prefetch = 0 : i64, scratch_operands = 0 : i64, tpu.core_type = #tpu.core_type<tc>, window_params = [{transform_indices = @transform_0, window_bounds = array<i64: 1, 8, 32>}, {transform_indices = @transform_1, window_bounds = array<i64: 1, 1, 8>}, {pipeline_mode = #tpu.pipeline_mode<synchronous>, transform_indices = @transform_2, window_bounds = array<i64: 32, 96>}, {pipeline_mode = #tpu.pipeline_mode<synchronous>, transform_indices = @transform_3, window_bounds = array<i64: 1, 96>}, {pipeline_mode = #tpu.pipeline_mode<synchronous>, transform_indices = @transform_4, window_bounds = array<i64: 32, 32>}, {pipeline_mode = #tpu.pipeline_mode<synchronous>, transform_indices = @transform_5, window_bounds = array<i64: 1, 32>}, {pipeline_mode = #tpu.pipeline_mode<synchronous>, transform_indices = @transform_6, window_bounds = array<i64: 1, 32>}, {pipeline_mode = #tpu.pipeline_mode<synchronous>, transform_indices = @transform_7, window_bounds = array<i64: 1, 32>}, {pipeline_mode = #tpu.pipeline_mode<synchronous>, transform_indices = @transform_8, window_bounds = array<i64: 32, 64>}, {pipeline_mode = #tpu.pipeline_mode<synchronous>, transform_indices = @transform_9, window_bounds = array<i64: 1, 64>}, {pipeline_mode = #tpu.pipeline_mode<synchronous>, transform_indices = @transform_10, window_bounds = array<i64: 64, 32>}, {pipeline_mode = #tpu.pipeline_mode<synchronous>, transform_indices = @transform_11, window_bounds = array<i64: 1, 32>}, {pipeline_mode = #tpu.pipeline_mode<synchronous>, transform_indices = @transform_12, window_bounds = array<i64: 1, 32>}, {pipeline_mode = #tpu.pipeline_mode<synchronous>, transform_indices = @transform_13, window_bounds = array<i64: 1, 32>}, {transform_indices = @transform_14, window_bounds = array<i64: 1, 8, 32>}]} {
    %c0 = arith.constant 0 : index
    %c0_0 = arith.constant 0 : index
    %c0_1 = arith.constant 0 : index
    %0 = vector.load %arg1[%c0, %c0_0, %c0_1] : memref<1x8x32xf32, #tpu.memory_space<vmem>>, vector<1x8x32xf32>
    %1 = vector.shape_cast %0 : vector<1x8x32xf32> to vector<8x32xf32>
    %c0_2 = arith.constant 0 : index
    %c0_3 = arith.constant 0 : index
    %2 = vector.load %arg7[%c0_2, %c0_3] : memref<1x32xf32, #tpu.memory_space<vmem>>, vector<1x32xf32>
    %c0_4 = arith.constant 0 : index
    %c0_5 = arith.constant 0 : index
    %3 = vector.load %arg8[%c0_4, %c0_5] : memref<1x32xf32, #tpu.memory_space<vmem>>, vector<1x32xf32>
    %c0_6 = arith.constant 0 : index
    %c0_7 = arith.constant 0 : index
    %4 = vector.load %arg13[%c0_6, %c0_7] : memref<1x32xf32, #tpu.memory_space<vmem>>, vector<1x32xf32>
    %c0_8 = arith.constant 0 : index
    %c0_9 = arith.constant 0 : index
    %5 = vector.load %arg14[%c0_8, %c0_9] : memref<1x32xf32, #tpu.memory_space<vmem>>, vector<1x32xf32>
    %6 = arith.truncf %1 : vector<8x32xf32> to vector<8x32xbf16>
    %c0_10 = arith.constant 0 : index
    %c0_11 = arith.constant 0 : index
    %7 = vector.load %arg3[%c0_10, %c0_11] : memref<32x96xbf16, #tpu.memory_space<vmem>>, vector<32x96xbf16>
    %cst = arith.constant dense<0.000000e+00> : vector<8x96xf32>
    %8 = tpu.matmul %6, %7, %cst {dimension_numbers = #tpu.dot_dimension_numbers<[1], [0], [0], [1], [0, 0, 1, 1], [], []>} : vector<8x32xbf16>, vector<32x96xbf16>, vector<8x96xf32> -> vector<8x96xf32>
    %c0_12 = arith.constant 0 : index
    %c0_13 = arith.constant 0 : index
    %9 = vector.load %arg4[%c0_12, %c0_13] : memref<1x96xf32, #tpu.memory_space<vmem>>, vector<1x96xf32>
    %10 = vector.broadcast %9 : vector<1x96xf32> to vector<8x96xf32>
    %11 = arith.addf %8, %10 : vector<8x96xf32>
    %c0_14 = arith.constant 0 : index
    %c0_15 = arith.constant 0 : index
    %12 = vector.load %arg5[%c0_14, %c0_15] : memref<32x32xbf16, #tpu.memory_space<vmem>>, vector<32x32xbf16>
    %c0_16 = arith.constant 0 : index
    %c0_17 = arith.constant 0 : index
    %c0_18 = arith.constant 0 : index
    %13 = vector.load %arg2[%c0_16, %c0_17, %c0_18] : memref<1x1x8xf32, #tpu.memory_space<vmem>>, vector<1x1x8xf32>
    %14 = vector.shape_cast %13 : vector<1x1x8xf32> to vector<1x8xf32>
    %cst_19 = arith.constant 0.000000e+00 : f32
    %15 = vector.broadcast %cst_19 : f32 to vector<8x32xf32>
    %16 = vector.extract_strided_slice %11 {offsets = [0, 0], sizes = [8, 16], strides = [1, 1]} : vector<8x96xf32> to vector<8x16xf32>
    %cst_20 = arith.constant 2.500000e-01 : f32
    %17 = vector.broadcast %cst_20 : f32 to vector<8x16xf32>
    %18 = arith.mulf %16, %17 : vector<8x16xf32>
    %19 = arith.truncf %18 : vector<8x16xf32> to vector<8x16xbf16>
    %20 = vector.extract_strided_slice %11 {offsets = [0, 32], sizes = [8, 16], strides = [1, 1]} : vector<8x96xf32> to vector<8x16xf32>
    %21 = arith.truncf %20 : vector<8x16xf32> to vector<8x16xbf16>
    %22 = vector.extract_strided_slice %11 {offsets = [0, 64], sizes = [8, 16], strides = [1, 1]} : vector<8x96xf32> to vector<8x16xf32>
    %23 = arith.truncf %22 : vector<8x16xf32> to vector<8x16xbf16>
    %cst_21 = arith.constant dense<0.000000e+00> : vector<8x8xf32>
    %24 = tpu.matmul %19, %21, %cst_21 {dimension_numbers = #tpu.dot_dimension_numbers<[1], [1], [0], [0], [0, 0, 1, 0], [], []>} : vector<8x16xbf16>, vector<8x16xbf16>, vector<8x8xf32> -> vector<8x8xf32>
    %25 = vector.broadcast %14 : vector<1x8xf32> to vector<8x8xf32>
    %26 = arith.addf %24, %25 : vector<8x8xf32>
    %cst_22 = arith.constant dense<0xFF800000> : vector<8xf32>
    %27 = vector.multi_reduction <maximumf>, %26, %cst_22 [1] : vector<8x8xf32> to vector<8xf32>
    %28 = vector.shape_cast %27 : vector<8xf32> to vector<8x1xf32>
    %29 = vector.broadcast %28 : vector<8x1xf32> to vector<8x8xf32>
    %30 = arith.subf %26, %29 : vector<8x8xf32>
    %31 = math.exp %30 : vector<8x8xf32>
    %cst_23 = arith.constant dense<0.000000e+00> : vector<8xf32>
    %32 = vector.multi_reduction <add>, %31, %cst_23 [1] : vector<8x8xf32> to vector<8xf32>
    %33 = vector.shape_cast %32 : vector<8xf32> to vector<8x1xf32>
    %34 = tpu.reciprocal %33 {approx = true} : vector<8x1xf32> -> vector<8x1xf32>
    %35 = vector.broadcast %34 : vector<8x1xf32> to vector<8x8xf32>
    %36 = arith.mulf %31, %35 : vector<8x8xf32>
    %37 = arith.truncf %36 : vector<8x8xf32> to vector<8x8xbf16>
    %cst_24 = arith.constant dense<0.000000e+00> : vector<8x16xf32>
    %38 = tpu.matmul %37, %23, %cst_24 {dimension_numbers = #tpu.dot_dimension_numbers<[1], [0], [0], [1], [0, 0, 1, 1], [], []>} : vector<8x8xbf16>, vector<8x16xbf16>, vector<8x16xf32> -> vector<8x16xf32>
    %39 = arith.truncf %38 : vector<8x16xf32> to vector<8x16xbf16>
    %40 = vector.extract_strided_slice %12 {offsets = [0, 0], sizes = [16, 32], strides = [1, 1]} : vector<32x32xbf16> to vector<16x32xbf16>
    %cst_25 = arith.constant dense<0.000000e+00> : vector<8x32xf32>
    %41 = tpu.matmul %39, %40, %cst_25 {dimension_numbers = #tpu.dot_dimension_numbers<[1], [0], [0], [1], [0, 0, 1, 1], [], []>} : vector<8x16xbf16>, vector<16x32xbf16>, vector<8x32xf32> -> vector<8x32xf32>
    %42 = arith.addf %15, %41 : vector<8x32xf32>
    %43 = vector.extract_strided_slice %11 {offsets = [0, 16], sizes = [8, 16], strides = [1, 1]} : vector<8x96xf32> to vector<8x16xf32>
    %cst_26 = arith.constant 2.500000e-01 : f32
    %44 = vector.broadcast %cst_26 : f32 to vector<8x16xf32>
    %45 = arith.mulf %43, %44 : vector<8x16xf32>
    %46 = arith.truncf %45 : vector<8x16xf32> to vector<8x16xbf16>
    %47 = vector.extract_strided_slice %11 {offsets = [0, 48], sizes = [8, 16], strides = [1, 1]} : vector<8x96xf32> to vector<8x16xf32>
    %48 = arith.truncf %47 : vector<8x16xf32> to vector<8x16xbf16>
    %49 = vector.extract_strided_slice %11 {offsets = [0, 80], sizes = [8, 16], strides = [1, 1]} : vector<8x96xf32> to vector<8x16xf32>
    %50 = arith.truncf %49 : vector<8x16xf32> to vector<8x16xbf16>
    %cst_27 = arith.constant dense<0.000000e+00> : vector<8x8xf32>
    %51 = tpu.matmul %46, %48, %cst_27 {dimension_numbers = #tpu.dot_dimension_numbers<[1], [1], [0], [0], [0, 0, 1, 0], [], []>} : vector<8x16xbf16>, vector<8x16xbf16>, vector<8x8xf32> -> vector<8x8xf32>
    %52 = vector.broadcast %14 : vector<1x8xf32> to vector<8x8xf32>
    %53 = arith.addf %51, %52 : vector<8x8xf32>
    %cst_28 = arith.constant dense<0xFF800000> : vector<8xf32>
    %54 = vector.multi_reduction <maximumf>, %53, %cst_28 [1] : vector<8x8xf32> to vector<8xf32>
    %55 = vector.shape_cast %54 : vector<8xf32> to vector<8x1xf32>
    %56 = vector.broadcast %55 : vector<8x1xf32> to vector<8x8xf32>
    %57 = arith.subf %53, %56 : vector<8x8xf32>
    %58 = math.exp %57 : vector<8x8xf32>
    %cst_29 = arith.constant dense<0.000000e+00> : vector<8xf32>
    %59 = vector.multi_reduction <add>, %58, %cst_29 [1] : vector<8x8xf32> to vector<8xf32>
    %60 = vector.shape_cast %59 : vector<8xf32> to vector<8x1xf32>
    %61 = tpu.reciprocal %60 {approx = true} : vector<8x1xf32> -> vector<8x1xf32>
    %62 = vector.broadcast %61 : vector<8x1xf32> to vector<8x8xf32>
    %63 = arith.mulf %58, %62 : vector<8x8xf32>
    %64 = arith.truncf %63 : vector<8x8xf32> to vector<8x8xbf16>
    %cst_30 = arith.constant dense<0.000000e+00> : vector<8x16xf32>
    %65 = tpu.matmul %64, %50, %cst_30 {dimension_numbers = #tpu.dot_dimension_numbers<[1], [0], [0], [1], [0, 0, 1, 1], [], []>} : vector<8x8xbf16>, vector<8x16xbf16>, vector<8x16xf32> -> vector<8x16xf32>
    %66 = arith.truncf %65 : vector<8x16xf32> to vector<8x16xbf16>
    %67 = vector.extract_strided_slice %12 {offsets = [16, 0], sizes = [16, 32], strides = [1, 1]} : vector<32x32xbf16> to vector<16x32xbf16>
    %cst_31 = arith.constant dense<0.000000e+00> : vector<8x32xf32>
    %68 = tpu.matmul %66, %67, %cst_31 {dimension_numbers = #tpu.dot_dimension_numbers<[1], [0], [0], [1], [0, 0, 1, 1], [], []>} : vector<8x16xbf16>, vector<16x32xbf16>, vector<8x32xf32> -> vector<8x32xf32>
    %69 = arith.addf %42, %68 : vector<8x32xf32>
    %70 = arith.addf %1, %69 : vector<8x32xf32>
    %c0_32 = arith.constant 0 : index
    %c0_33 = arith.constant 0 : index
    %71 = vector.load %arg6[%c0_32, %c0_33] : memref<1x32xf32, #tpu.memory_space<vmem>>, vector<1x32xf32>
    %72 = vector.broadcast %71 : vector<1x32xf32> to vector<8x32xf32>
    %73 = arith.addf %70, %72 : vector<8x32xf32>
    %cst_34 = arith.constant dense<0.000000e+00> : vector<8xf32>
    %74 = vector.multi_reduction <add>, %73, %cst_34 [1] : vector<8x32xf32> to vector<8xf32>
    %75 = vector.shape_cast %74 : vector<8xf32> to vector<8x1xf32>
    %cst_35 = arith.constant 3.200000e+01 : f32
    %76 = vector.broadcast %cst_35 : f32 to vector<8x1xf32>
    %77 = arith.divf %75, %76 : vector<8x1xf32>
    %78 = vector.broadcast %77 : vector<8x1xf32> to vector<8x32xf32>
    %79 = arith.subf %73, %78 : vector<8x32xf32>
    %80 = arith.mulf %79, %79 : vector<8x32xf32>
    %cst_36 = arith.constant dense<0.000000e+00> : vector<8xf32>
    %81 = vector.multi_reduction <add>, %80, %cst_36 [1] : vector<8x32xf32> to vector<8xf32>
    %82 = vector.shape_cast %81 : vector<8xf32> to vector<8x1xf32>
    %cst_37 = arith.constant 3.200000e+01 : f32
    %83 = vector.broadcast %cst_37 : f32 to vector<8x1xf32>
    %84 = arith.divf %82, %83 : vector<8x1xf32>
    %cst_38 = arith.constant 9.99999996E-13 : f32
    %85 = vector.broadcast %cst_38 : f32 to vector<8x1xf32>
    %86 = arith.addf %84, %85 : vector<8x1xf32>
    %87 = math.rsqrt %86 : vector<8x1xf32>
    %88 = vector.broadcast %87 : vector<8x1xf32> to vector<8x32xf32>
    %89 = arith.mulf %79, %88 : vector<8x32xf32>
    %90 = vector.broadcast %2 : vector<1x32xf32> to vector<8x32xf32>
    %91 = arith.mulf %89, %90 : vector<8x32xf32>
    %92 = vector.broadcast %3 : vector<1x32xf32> to vector<8x32xf32>
    %93 = arith.addf %91, %92 : vector<8x32xf32>
    %94 = arith.truncf %93 : vector<8x32xf32> to vector<8x32xbf16>
    %c0_39 = arith.constant 0 : index
    %c0_40 = arith.constant 0 : index
    %95 = vector.load %arg9[%c0_39, %c0_40] : memref<32x64xbf16, #tpu.memory_space<vmem>>, vector<32x64xbf16>
    %cst_41 = arith.constant dense<0.000000e+00> : vector<8x64xf32>
    %96 = tpu.matmul %94, %95, %cst_41 {dimension_numbers = #tpu.dot_dimension_numbers<[1], [0], [0], [1], [0, 0, 1, 1], [], []>} : vector<8x32xbf16>, vector<32x64xbf16>, vector<8x64xf32> -> vector<8x64xf32>
    %c0_42 = arith.constant 0 : index
    %c0_43 = arith.constant 0 : index
    %97 = vector.load %arg10[%c0_42, %c0_43] : memref<1x64xf32, #tpu.memory_space<vmem>>, vector<1x64xf32>
    %98 = vector.broadcast %97 : vector<1x64xf32> to vector<8x64xf32>
    %99 = arith.addf %96, %98 : vector<8x64xf32>
    %cst_44 = arith.constant 5.000000e-01 : f32
    %100 = vector.broadcast %cst_44 : f32 to vector<8x64xf32>
    %101 = arith.mulf %100, %99 : vector<8x64xf32>
    %cst_45 = arith.constant 4.471500e-02 : f32
    %102 = vector.broadcast %cst_45 : f32 to vector<8x64xf32>
    %103 = arith.mulf %102, %99 : vector<8x64xf32>
    %104 = arith.mulf %103, %99 : vector<8x64xf32>
    %105 = arith.mulf %104, %99 : vector<8x64xf32>
    %106 = arith.addf %99, %105 : vector<8x64xf32>
    %cst_46 = arith.constant 0.797884583 : f32
    %107 = vector.broadcast %cst_46 : f32 to vector<8x64xf32>
    %108 = arith.mulf %107, %106 : vector<8x64xf32>
    %109 = math.tanh %108 : vector<8x64xf32>
    %cst_47 = arith.constant 1.000000e+00 : f32
    %110 = vector.broadcast %cst_47 : f32 to vector<8x64xf32>
    %111 = arith.addf %110, %109 : vector<8x64xf32>
    %112 = arith.mulf %101, %111 : vector<8x64xf32>
    %113 = arith.truncf %112 : vector<8x64xf32> to vector<8x64xbf16>
    %c0_48 = arith.constant 0 : index
    %c0_49 = arith.constant 0 : index
    %114 = vector.load %arg11[%c0_48, %c0_49] : memref<64x32xbf16, #tpu.memory_space<vmem>>, vector<64x32xbf16>
    %cst_50 = arith.constant dense<0.000000e+00> : vector<8x32xf32>
    %115 = tpu.matmul %113, %114, %cst_50 {dimension_numbers = #tpu.dot_dimension_numbers<[1], [0], [0], [1], [0, 0, 1, 1], [], []>} : vector<8x64xbf16>, vector<64x32xbf16>, vector<8x32xf32> -> vector<8x32xf32>
    %116 = arith.addf %93, %115 : vector<8x32xf32>
    %c0_51 = arith.constant 0 : index
    %c0_52 = arith.constant 0 : index
    %117 = vector.load %arg12[%c0_51, %c0_52] : memref<1x32xf32, #tpu.memory_space<vmem>>, vector<1x32xf32>
    %118 = vector.broadcast %117 : vector<1x32xf32> to vector<8x32xf32>
    %119 = arith.addf %116, %118 : vector<8x32xf32>
    %cst_53 = arith.constant dense<0.000000e+00> : vector<8xf32>
    %120 = vector.multi_reduction <add>, %119, %cst_53 [1] : vector<8x32xf32> to vector<8xf32>
    %121 = vector.shape_cast %120 : vector<8xf32> to vector<8x1xf32>
    %cst_54 = arith.constant 3.200000e+01 : f32
    %122 = vector.broadcast %cst_54 : f32 to vector<8x1xf32>
    %123 = arith.divf %121, %122 : vector<8x1xf32>
    %124 = vector.broadcast %123 : vector<8x1xf32> to vector<8x32xf32>
    %125 = arith.subf %119, %124 : vector<8x32xf32>
    %126 = arith.mulf %125, %125 : vector<8x32xf32>
    %cst_55 = arith.constant dense<0.000000e+00> : vector<8xf32>
    %127 = vector.multi_reduction <add>, %126, %cst_55 [1] : vector<8x32xf32> to vector<8xf32>
    %128 = vector.shape_cast %127 : vector<8xf32> to vector<8x1xf32>
    %cst_56 = arith.constant 3.200000e+01 : f32
    %129 = vector.broadcast %cst_56 : f32 to vector<8x1xf32>
    %130 = arith.divf %128, %129 : vector<8x1xf32>
    %cst_57 = arith.constant 9.99999996E-13 : f32
    %131 = vector.broadcast %cst_57 : f32 to vector<8x1xf32>
    %132 = arith.addf %130, %131 : vector<8x1xf32>
    %133 = math.rsqrt %132 : vector<8x1xf32>
    %134 = vector.broadcast %133 : vector<8x1xf32> to vector<8x32xf32>
    %135 = arith.mulf %125, %134 : vector<8x32xf32>
    %136 = vector.broadcast %4 : vector<1x32xf32> to vector<8x32xf32>
    %137 = arith.mulf %135, %136 : vector<8x32xf32>
    %138 = vector.broadcast %5 : vector<1x32xf32> to vector<8x32xf32>
    %139 = arith.addf %137, %138 : vector<8x32xf32>
    %c0_58 = arith.constant 0 : index
    %c0_59 = arith.constant 0 : index
    %c0_60 = arith.constant 0 : index
    %140 = vector.load %arg15[%c0_58, %c0_59, %c0_60] : memref<1x8x32xf32, #tpu.memory_space<vmem>>, vector<1x8x32xf32>
    %141 = vector.shape_cast %140 : vector<1x8x32xf32> to vector<8x32xf32>
    %142 = vector.shape_cast %139 : vector<8x32xf32> to vector<1x8x32xf32>
    tpu.vector_store %arg15[%c0_58, %c0_59, %c0_60], %142 {strides = array<i32>} : memref<1x8x32xf32, #tpu.memory_space<vmem>>, vector<1x8x32xf32>,
    return
  }
  func.func @transform_0(%arg0: i32) -> (i32, i32, i32) {
    %c0_i32 = arith.constant 0 : i32
    %c0_i32_0 = arith.constant 0 : i32
    %c0_i32_1 = arith.constant 0 : i32
    return %arg0, %c0_i32, %c0_i32_0 : i32, i32, i32
  }
  func.func @transform_1(%arg0: i32) -> (i32, i32, i32) {
    %c0_i32 = arith.constant 0 : i32
    %c0_i32_0 = arith.constant 0 : i32
    %c0_i32_1 = arith.constant 0 : i32
    return %arg0, %c0_i32, %c0_i32_0 : i32, i32, i32
  }
  func.func @transform_2(%arg0: i32) -> (i32, i32) {
    %c0_i32 = arith.constant 0 : i32
    %c0_i32_0 = arith.constant 0 : i32
    %c0_i32_1 = arith.constant 0 : i32
    return %c0_i32, %c0_i32_0 : i32, i32
  }
  func.func @transform_3(%arg0: i32) -> (i32, i32) {
    %c0_i32 = arith.constant 0 : i32
    %c0_i32_0 = arith.constant 0 : i32
    %c0_i32_1 = arith.constant 0 : i32
    return %c0_i32, %c0_i32_0 : i32, i32
  }
  func.func @transform_4(%arg0: i32) -> (i32, i32) {
    %c0_i32 = arith.constant 0 : i32
    %c0_i32_0 = arith.constant 0 : i32
    %c0_i32_1 = arith.constant 0 : i32
    return %c0_i32, %c0_i32_0 : i32, i32
  }
  func.func @transform_5(%arg0: i32) -> (i32, i32) {
    %c0_i32 = arith.constant 0 : i32
    %c0_i32_0 = arith.constant 0 : i32
    %c0_i32_1 = arith.constant 0 : i32
    return %c0_i32, %c0_i32_0 : i32, i32
  }
  func.func @transform_6(%arg0: i32) -> (i32, i32) {
    %c0_i32 = arith.constant 0 : i32
    %c0_i32_0 = arith.constant 0 : i32
    %c0_i32_1 = arith.constant 0 : i32
    return %c0_i32, %c0_i32_0 : i32, i32
  }
  func.func @transform_7(%arg0: i32) -> (i32, i32) {
    %c0_i32 = arith.constant 0 : i32
    %c0_i32_0 = arith.constant 0 : i32
    %c0_i32_1 = arith.constant 0 : i32
    return %c0_i32, %c0_i32_0 : i32, i32
  }
  func.func @transform_8(%arg0: i32) -> (i32, i32) {
    %c0_i32 = arith.constant 0 : i32
    %c0_i32_0 = arith.constant 0 : i32
    %c0_i32_1 = arith.constant 0 : i32
    return %c0_i32, %c0_i32_0 : i32, i32
  }
  func.func @transform_9(%arg0: i32) -> (i32, i32) {
    %c0_i32 = arith.constant 0 : i32
    %c0_i32_0 = arith.constant 0 : i32
    %c0_i32_1 = arith.constant 0 : i32
    return %c0_i32, %c0_i32_0 : i32, i32
  }
  func.func @transform_10(%arg0: i32) -> (i32, i32) {
    %c0_i32 = arith.constant 0 : i32
    %c0_i32_0 = arith.constant 0 : i32
    %c0_i32_1 = arith.constant 0 : i32
    return %c0_i32, %c0_i32_0 : i32, i32
  }
  func.func @transform_11(%arg0: i32) -> (i32, i32) {
    %c0_i32 = arith.constant 0 : i32
    %c0_i32_0 = arith.constant 0 : i32
    %c0_i32_1 = arith.constant 0 : i32
    return %c0_i32, %c0_i32_0 : i32, i32
  }
  func.func @transform_12(%arg0: i32) -> (i32, i32) {
    %c0_i32 = arith.constant 0 : i32
    %c0_i32_0 = arith.constant 0 : i32
    %c0_i32_1 = arith.constant 0 : i32
    return %c0_i32, %c0_i32_0 : i32, i32
  }
  func.func @transform_13(%arg0: i32) -> (i32, i32) {
    %c0_i32 = arith.constant 0 : i32
    %c0_i32_0 = arith.constant 0 : i32
    %c0_i32_1 = arith.constant 0 : i32
    return %c0_i32, %c0_i32_0 : i32, i32
  }
  func.func @transform_14(%arg0: i32) -> (i32, i32, i32) {
    %c0_i32 = arith.constant 0 : i32
    %c0_i32_0 = arith.constant 0 : i32
    %c0_i32_1 = arith.constant 0 : i32
    return %arg0, %c0_i32, %c0_i32_0 : i32, i32, i32
  }
}

module attributes {stable_mosaic.version = 11 : i64} {
  func.func @_pool_proj_norm_kernel(%arg0: i32, %arg1: memref<1x8x32xf32, #tpu.memory_space<vmem>>, %arg2: memref<32x512xbf16, #tpu.memory_space<vmem>>, %arg3: memref<1x512xf32, #tpu.memory_space<vmem>>, %arg4: memref<1x512xf32, #tpu.memory_space<vmem>>, %arg5: memref<1x512xf32, #tpu.memory_space<vmem>>, %arg6: memref<1x1x512xf32, #tpu.memory_space<vmem>>) attributes {dimension_semantics = [#tpu.dimension_semantics<parallel>], iteration_bounds = array<i64: 2>, scalar_prefetch = 0 : i64, scratch_operands = 0 : i64, tpu.core_type = #tpu.core_type<tc>, window_params = [{transform_indices = @transform_0, window_bounds = array<i64: 1, 8, 32>}, {pipeline_mode = #tpu.pipeline_mode<synchronous>, transform_indices = @transform_1, window_bounds = array<i64: 32, 512>}, {pipeline_mode = #tpu.pipeline_mode<synchronous>, transform_indices = @transform_2, window_bounds = array<i64: 1, 512>}, {pipeline_mode = #tpu.pipeline_mode<synchronous>, transform_indices = @transform_3, window_bounds = array<i64: 1, 512>}, {pipeline_mode = #tpu.pipeline_mode<synchronous>, transform_indices = @transform_4, window_bounds = array<i64: 1, 512>}, {transform_indices = @transform_5, window_bounds = array<i64: 1, 1, 512>}]} {
    %c0 = arith.constant 0 : index
    %c0_0 = arith.constant 0 : index
    %c0_1 = arith.constant 0 : index
    %0 = vector.load %arg1[%c0, %c0_0, %c0_1] : memref<1x8x32xf32, #tpu.memory_space<vmem>>, vector<1x8x32xf32>
    %1 = vector.shape_cast %0 : vector<1x8x32xf32> to vector<8x32xf32>
    %cst = arith.constant dense<0.000000e+00> : vector<32xf32>
    %2 = vector.multi_reduction <add>, %1, %cst [0] : vector<8x32xf32> to vector<32xf32>
    %3 = vector.shape_cast %2 : vector<32xf32> to vector<1x32xf32>
    %cst_2 = arith.constant 8.000000e+00 : f32
    %4 = vector.broadcast %cst_2 : f32 to vector<1x32xf32>
    %5 = arith.divf %3, %4 : vector<1x32xf32>
    %6 = arith.truncf %5 : vector<1x32xf32> to vector<1x32xbf16>
    %c0_3 = arith.constant 0 : index
    %c0_4 = arith.constant 0 : index
    %7 = vector.load %arg2[%c0_3, %c0_4] : memref<32x512xbf16, #tpu.memory_space<vmem>>, vector<32x512xbf16>
    %cst_5 = arith.constant dense<0.000000e+00> : vector<1x512xf32>
    %8 = tpu.matmul %6, %7, %cst_5 {dimension_numbers = #tpu.dot_dimension_numbers<[1], [0], [0], [1], [0, 0, 1, 1], [], []>} : vector<1x32xbf16>, vector<32x512xbf16>, vector<1x512xf32> -> vector<1x512xf32>
    %c0_6 = arith.constant 0 : index
    %c0_7 = arith.constant 0 : index
    %9 = vector.load %arg3[%c0_6, %c0_7] : memref<1x512xf32, #tpu.memory_space<vmem>>, vector<1x512xf32>
    %10 = arith.addf %8, %9 : vector<1x512xf32>
    %c0_8 = arith.constant 0 : index
    %c0_9 = arith.constant 0 : index
    %11 = vector.load %arg4[%c0_8, %c0_9] : memref<1x512xf32, #tpu.memory_space<vmem>>, vector<1x512xf32>
    %c0_10 = arith.constant 0 : index
    %c0_11 = arith.constant 0 : index
    %12 = vector.load %arg5[%c0_10, %c0_11] : memref<1x512xf32, #tpu.memory_space<vmem>>, vector<1x512xf32>
    %cst_12 = arith.constant dense<0.000000e+00> : vector<1xf32>
    %13 = vector.multi_reduction <add>, %10, %cst_12 [1] : vector<1x512xf32> to vector<1xf32>
    %14 = vector.shape_cast %13 : vector<1xf32> to vector<1x1xf32>
    %cst_13 = arith.constant 5.120000e+02 : f32
    %15 = vector.broadcast %cst_13 : f32 to vector<1x1xf32>
    %16 = arith.divf %14, %15 : vector<1x1xf32>
    %17 = vector.broadcast %16 : vector<1x1xf32> to vector<1x512xf32>
    %18 = arith.subf %10, %17 : vector<1x512xf32>
    %19 = arith.mulf %18, %18 : vector<1x512xf32>
    %cst_14 = arith.constant dense<0.000000e+00> : vector<1xf32>
    %20 = vector.multi_reduction <add>, %19, %cst_14 [1] : vector<1x512xf32> to vector<1xf32>
    %21 = vector.shape_cast %20 : vector<1xf32> to vector<1x1xf32>
    %cst_15 = arith.constant 5.120000e+02 : f32
    %22 = vector.broadcast %cst_15 : f32 to vector<1x1xf32>
    %23 = arith.divf %21, %22 : vector<1x1xf32>
    %cst_16 = arith.constant 9.99999974E-6 : f32
    %24 = vector.broadcast %cst_16 : f32 to vector<1x1xf32>
    %25 = arith.addf %23, %24 : vector<1x1xf32>
    %26 = math.rsqrt %25 : vector<1x1xf32>
    %27 = vector.broadcast %26 : vector<1x1xf32> to vector<1x512xf32>
    %28 = arith.mulf %18, %27 : vector<1x512xf32>
    %29 = arith.mulf %28, %11 : vector<1x512xf32>
    %30 = arith.addf %29, %12 : vector<1x512xf32>
    %c0_17 = arith.constant 0 : index
    %c0_18 = arith.constant 0 : index
    %c0_19 = arith.constant 0 : index
    %31 = vector.load %arg6[%c0_17, %c0_18, %c0_19] : memref<1x1x512xf32, #tpu.memory_space<vmem>>, vector<1x1x512xf32>
    %32 = vector.shape_cast %31 : vector<1x1x512xf32> to vector<1x512xf32>
    %33 = vector.shape_cast %30 : vector<1x512xf32> to vector<1x1x512xf32>
    tpu.vector_store %arg6[%c0_17, %c0_18, %c0_19], %33 {strides = array<i32>} : memref<1x1x512xf32, #tpu.memory_space<vmem>>, vector<1x1x512xf32>,
    return
  }
  func.func @transform_0(%arg0: i32) -> (i32, i32, i32) {
    %c0_i32 = arith.constant 0 : i32
    %c0_i32_0 = arith.constant 0 : i32
    %c0_i32_1 = arith.constant 0 : i32
    return %arg0, %c0_i32, %c0_i32_0 : i32, i32, i32
  }
  func.func @transform_1(%arg0: i32) -> (i32, i32) {
    %c0_i32 = arith.constant 0 : i32
    %c0_i32_0 = arith.constant 0 : i32
    %c0_i32_1 = arith.constant 0 : i32
    return %c0_i32, %c0_i32_0 : i32, i32
  }
  func.func @transform_2(%arg0: i32) -> (i32, i32) {
    %c0_i32 = arith.constant 0 : i32
    %c0_i32_0 = arith.constant 0 : i32
    %c0_i32_1 = arith.constant 0 : i32
    return %c0_i32, %c0_i32_0 : i32, i32
  }
  func.func @transform_3(%arg0: i32) -> (i32, i32) {
    %c0_i32 = arith.constant 0 : i32
    %c0_i32_0 = arith.constant 0 : i32
    %c0_i32_1 = arith.constant 0 : i32
    return %c0_i32, %c0_i32_0 : i32, i32
  }
  func.func @transform_4(%arg0: i32) -> (i32, i32) {
    %c0_i32 = arith.constant 0 : i32
    %c0_i32_0 = arith.constant 0 : i32
    %c0_i32_1 = arith.constant 0 : i32
    return %c0_i32, %c0_i32_0 : i32, i32
  }
  func.func @transform_5(%arg0: i32) -> (i32, i32, i32) {
    %c0_i32 = arith.constant 0 : i32
    %c0_i32_0 = arith.constant 0 : i32
    %c0_i32_1 = arith.constant 0 : i32
    return %arg0, %c0_i32, %c0_i32_0 : i32, i32, i32
  }
}

module attributes {stable_mosaic.version = 11 : i64} {
  func.func @_matmul_kernel(%arg0: i32, %arg1: i32, %arg2: i32, %arg3: memref<8x192xf32, #tpu.memory_space<vmem>>, %arg4: memref<192x64xbf16, #tpu.memory_space<vmem>>, %arg5: memref<1x64xf32, #tpu.memory_space<vmem>>, %arg6: memref<8x64xf32, #tpu.memory_space<vmem>>, %arg7: memref<8x64xf32, #tpu.memory_space<vmem>>) attributes {dimension_semantics = [#tpu.dimension_semantics<parallel>, #tpu.dimension_semantics<parallel>, #tpu.dimension_semantics<arbitrary>], iteration_bounds = array<i64: 1, 1, 1>, scalar_prefetch = 0 : i64, scratch_operands = 1 : i64, tpu.core_type = #tpu.core_type<tc>, window_params = [{transform_indices = @transform_0, window_bounds = array<i64: 8, 192>}, {transform_indices = @transform_1, window_bounds = array<i64: 192, 64>}, {transform_indices = @transform_2, window_bounds = array<i64: 1, 64>}, {transform_indices = @transform_3, window_bounds = array<i64: 8, 64>}]} {
    %c0_i32 = arith.constant 0 : i32
    %0 = arith.cmpi eq, %arg2, %c0_i32 : i32
    %1 = arith.extui %0 : i1 to i32
    %c0_i32_0 = arith.constant 0 : i32
    %2 = arith.cmpi ne, %1, %c0_i32_0 : i32
    scf.if %2 {
      %cst_10 = arith.constant 0.000000e+00 : f32
      %13 = vector.broadcast %cst_10 : f32 to vector<8x64xf32>
      %c0_11 = arith.constant 0 : index
      %c0_12 = arith.constant 0 : index
      %14 = vector.load %arg7[%c0_11, %c0_12] : memref<8x64xf32, #tpu.memory_space<vmem>>, vector<8x64xf32>
      tpu.vector_store %arg7[%c0_11, %c0_12], %13 {strides = array<i32>} : memref<8x64xf32, #tpu.memory_space<vmem>>, vector<8x64xf32>,
    } else {
    }
    %c0 = arith.constant 0 : index
    %c0_1 = arith.constant 0 : index
    %3 = vector.load %arg7[%c0, %c0_1] : memref<8x64xf32, #tpu.memory_space<vmem>>, vector<8x64xf32>
    %c0_2 = arith.constant 0 : index
    %c0_3 = arith.constant 0 : index
    %4 = vector.load %arg3[%c0_2, %c0_3] : memref<8x192xf32, #tpu.memory_space<vmem>>, vector<8x192xf32>
    %5 = arith.truncf %4 : vector<8x192xf32> to vector<8x192xbf16>
    %c0_4 = arith.constant 0 : index
    %c0_5 = arith.constant 0 : index
    %6 = vector.load %arg4[%c0_4, %c0_5] : memref<192x64xbf16, #tpu.memory_space<vmem>>, vector<192x64xbf16>
    %cst = arith.constant dense<0.000000e+00> : vector<8x64xf32>
    %7 = tpu.matmul %5, %6, %cst {dimension_numbers = #tpu.dot_dimension_numbers<[1], [0], [0], [1], [0, 0, 1, 1], [], []>} : vector<8x192xbf16>, vector<192x64xbf16>, vector<8x64xf32> -> vector<8x64xf32>
    %8 = arith.addf %3, %7 : vector<8x64xf32>
    %c0_6 = arith.constant 0 : index
    %c0_7 = arith.constant 0 : index
    %9 = vector.load %arg7[%c0_6, %c0_7] : memref<8x64xf32, #tpu.memory_space<vmem>>, vector<8x64xf32>
    tpu.vector_store %arg7[%c0_6, %c0_7], %8 {strides = array<i32>} : memref<8x64xf32, #tpu.memory_space<vmem>>, vector<8x64xf32>,
    %c0_i32_8 = arith.constant 0 : i32
    %10 = arith.cmpi eq, %arg2, %c0_i32_8 : i32
    %11 = arith.extui %10 : i1 to i32
    %c0_i32_9 = arith.constant 0 : i32
    %12 = arith.cmpi ne, %11, %c0_i32_9 : i32
    scf.if %12 {
      %c0_10 = arith.constant 0 : index
      %c0_11 = arith.constant 0 : index
      %13 = vector.load %arg7[%c0_10, %c0_11] : memref<8x64xf32, #tpu.memory_space<vmem>>, vector<8x64xf32>
      %c0_12 = arith.constant 0 : index
      %c0_13 = arith.constant 0 : index
      %14 = vector.load %arg5[%c0_12, %c0_13] : memref<1x64xf32, #tpu.memory_space<vmem>>, vector<1x64xf32>
      %15 = vector.broadcast %14 : vector<1x64xf32> to vector<8x64xf32>
      %16 = arith.addf %13, %15 : vector<8x64xf32>
      %c0_14 = arith.constant 0 : index
      %c0_15 = arith.constant 0 : index
      %17 = vector.load %arg6[%c0_14, %c0_15] : memref<8x64xf32, #tpu.memory_space<vmem>>, vector<8x64xf32>
      tpu.vector_store %arg6[%c0_14, %c0_15], %16 {strides = array<i32>} : memref<8x64xf32, #tpu.memory_space<vmem>>, vector<8x64xf32>,
    } else {
    }
    return
  }
  func.func @transform_0(%arg0: i32, %arg1: i32, %arg2: i32) -> (i32, i32) {
    %c0_i32 = arith.constant 0 : i32
    return %arg0, %arg2 : i32, i32
  }
  func.func @transform_1(%arg0: i32, %arg1: i32, %arg2: i32) -> (i32, i32) {
    %c0_i32 = arith.constant 0 : i32
    return %arg2, %arg1 : i32, i32
  }
  func.func @transform_2(%arg0: i32, %arg1: i32, %arg2: i32) -> (i32, i32) {
    %c0_i32 = arith.constant 0 : i32
    %c0_i32_0 = arith.constant 0 : i32
    return %c0_i32, %arg1 : i32, i32
  }
  func.func @transform_3(%arg0: i32, %arg1: i32, %arg2: i32) -> (i32, i32) {
    %c0_i32 = arith.constant 0 : i32
    return %arg0, %arg1 : i32, i32
  }
}

module attributes {stable_mosaic.version = 11 : i64} {
  func.func @_pool_proj_norm_kernel(%arg0: i32, %arg1: memref<1x5x64xf32, #tpu.memory_space<vmem>>, %arg2: memref<1x64xf32, #tpu.memory_space<vmem>>, %arg3: memref<1x64xf32, #tpu.memory_space<vmem>>, %arg4: memref<64x512xbf16, #tpu.memory_space<vmem>>, %arg5: memref<1x512xf32, #tpu.memory_space<vmem>>, %arg6: memref<1x512xf32, #tpu.memory_space<vmem>>, %arg7: memref<1x512xf32, #tpu.memory_space<vmem>>, %arg8: memref<1x1x512xf32, #tpu.memory_space<vmem>>) attributes {dimension_semantics = [#tpu.dimension_semantics<parallel>], iteration_bounds = array<i64: 2>, scalar_prefetch = 0 : i64, scratch_operands = 0 : i64, tpu.core_type = #tpu.core_type<tc>, window_params = [{transform_indices = @transform_0, window_bounds = array<i64: 1, 5, 64>}, {pipeline_mode = #tpu.pipeline_mode<synchronous>, transform_indices = @transform_1, window_bounds = array<i64: 1, 64>}, {pipeline_mode = #tpu.pipeline_mode<synchronous>, transform_indices = @transform_2, window_bounds = array<i64: 1, 64>}, {pipeline_mode = #tpu.pipeline_mode<synchronous>, transform_indices = @transform_3, window_bounds = array<i64: 64, 512>}, {pipeline_mode = #tpu.pipeline_mode<synchronous>, transform_indices = @transform_4, window_bounds = array<i64: 1, 512>}, {pipeline_mode = #tpu.pipeline_mode<synchronous>, transform_indices = @transform_5, window_bounds = array<i64: 1, 512>}, {pipeline_mode = #tpu.pipeline_mode<synchronous>, transform_indices = @transform_6, window_bounds = array<i64: 1, 512>}, {transform_indices = @transform_7, window_bounds = array<i64: 1, 1, 512>}]} {
    %c0 = arith.constant 0 : index
    %c0_0 = arith.constant 0 : index
    %c0_1 = arith.constant 0 : index
    %0 = vector.load %arg1[%c0, %c0_0, %c0_1] : memref<1x5x64xf32, #tpu.memory_space<vmem>>, vector<1x5x64xf32>
    %1 = vector.shape_cast %0 : vector<1x5x64xf32> to vector<5x64xf32>
    %c0_2 = arith.constant 0 : index
    %c0_3 = arith.constant 0 : index
    %2 = vector.load %arg2[%c0_2, %c0_3] : memref<1x64xf32, #tpu.memory_space<vmem>>, vector<1x64xf32>
    %c0_4 = arith.constant 0 : index
    %c0_5 = arith.constant 0 : index
    %3 = vector.load %arg3[%c0_4, %c0_5] : memref<1x64xf32, #tpu.memory_space<vmem>>, vector<1x64xf32>
    %cst = arith.constant dense<0.000000e+00> : vector<5xf32>
    %4 = vector.multi_reduction <add>, %1, %cst [1] : vector<5x64xf32> to vector<5xf32>
    %5 = vector.shape_cast %4 : vector<5xf32> to vector<5x1xf32>
    %cst_6 = arith.constant 6.400000e+01 : f32
    %6 = vector.broadcast %cst_6 : f32 to vector<5x1xf32>
    %7 = arith.divf %5, %6 : vector<5x1xf32>
    %8 = vector.broadcast %7 : vector<5x1xf32> to vector<5x64xf32>
    %9 = arith.subf %1, %8 : vector<5x64xf32>
    %10 = arith.mulf %9, %9 : vector<5x64xf32>
    %cst_7 = arith.constant dense<0.000000e+00> : vector<5xf32>
    %11 = vector.multi_reduction <add>, %10, %cst_7 [1] : vector<5x64xf32> to vector<5xf32>
    %12 = vector.shape_cast %11 : vector<5xf32> to vector<5x1xf32>
    %cst_8 = arith.constant 6.400000e+01 : f32
    %13 = vector.broadcast %cst_8 : f32 to vector<5x1xf32>
    %14 = arith.divf %12, %13 : vector<5x1xf32>
    %cst_9 = arith.constant 9.99999996E-13 : f32
    %15 = vector.broadcast %cst_9 : f32 to vector<5x1xf32>
    %16 = arith.addf %14, %15 : vector<5x1xf32>
    %17 = math.rsqrt %16 : vector<5x1xf32>
    %18 = vector.broadcast %17 : vector<5x1xf32> to vector<5x64xf32>
    %19 = arith.mulf %9, %18 : vector<5x64xf32>
    %20 = vector.broadcast %2 : vector<1x64xf32> to vector<5x64xf32>
    %21 = arith.mulf %19, %20 : vector<5x64xf32>
    %22 = vector.broadcast %3 : vector<1x64xf32> to vector<5x64xf32>
    %23 = arith.addf %21, %22 : vector<5x64xf32>
    %cst_10 = arith.constant dense<0.000000e+00> : vector<64xf32>
    %24 = vector.multi_reduction <add>, %23, %cst_10 [0] : vector<5x64xf32> to vector<64xf32>
    %25 = vector.shape_cast %24 : vector<64xf32> to vector<1x64xf32>
    %cst_11 = arith.constant 5.000000e+00 : f32
    %26 = vector.broadcast %cst_11 : f32 to vector<1x64xf32>
    %27 = arith.divf %25, %26 : vector<1x64xf32>
    %28 = arith.truncf %27 : vector<1x64xf32> to vector<1x64xbf16>
    %c0_12 = arith.constant 0 : index
    %c0_13 = arith.constant 0 : index
    %29 = vector.load %arg4[%c0_12, %c0_13] : memref<64x512xbf16, #tpu.memory_space<vmem>>, vector<64x512xbf16>
    %cst_14 = arith.constant dense<0.000000e+00> : vector<1x512xf32>
    %30 = tpu.matmul %28, %29, %cst_14 {dimension_numbers = #tpu.dot_dimension_numbers<[1], [0], [0], [1], [0, 0, 1, 1], [], []>} : vector<1x64xbf16>, vector<64x512xbf16>, vector<1x512xf32> -> vector<1x512xf32>
    %c0_15 = arith.constant 0 : index
    %c0_16 = arith.constant 0 : index
    %31 = vector.load %arg5[%c0_15, %c0_16] : memref<1x512xf32, #tpu.memory_space<vmem>>, vector<1x512xf32>
    %32 = arith.addf %30, %31 : vector<1x512xf32>
    %c0_17 = arith.constant 0 : index
    %c0_18 = arith.constant 0 : index
    %33 = vector.load %arg6[%c0_17, %c0_18] : memref<1x512xf32, #tpu.memory_space<vmem>>, vector<1x512xf32>
    %c0_19 = arith.constant 0 : index
    %c0_20 = arith.constant 0 : index
    %34 = vector.load %arg7[%c0_19, %c0_20] : memref<1x512xf32, #tpu.memory_space<vmem>>, vector<1x512xf32>
    %cst_21 = arith.constant dense<0.000000e+00> : vector<1xf32>
    %35 = vector.multi_reduction <add>, %32, %cst_21 [1] : vector<1x512xf32> to vector<1xf32>
    %36 = vector.shape_cast %35 : vector<1xf32> to vector<1x1xf32>
    %cst_22 = arith.constant 5.120000e+02 : f32
    %37 = vector.broadcast %cst_22 : f32 to vector<1x1xf32>
    %38 = arith.divf %36, %37 : vector<1x1xf32>
    %39 = vector.broadcast %38 : vector<1x1xf32> to vector<1x512xf32>
    %40 = arith.subf %32, %39 : vector<1x512xf32>
    %41 = arith.mulf %40, %40 : vector<1x512xf32>
    %cst_23 = arith.constant dense<0.000000e+00> : vector<1xf32>
    %42 = vector.multi_reduction <add>, %41, %cst_23 [1] : vector<1x512xf32> to vector<1xf32>
    %43 = vector.shape_cast %42 : vector<1xf32> to vector<1x1xf32>
    %cst_24 = arith.constant 5.120000e+02 : f32
    %44 = vector.broadcast %cst_24 : f32 to vector<1x1xf32>
    %45 = arith.divf %43, %44 : vector<1x1xf32>
    %cst_25 = arith.constant 9.99999974E-6 : f32
    %46 = vector.broadcast %cst_25 : f32 to vector<1x1xf32>
    %47 = arith.addf %45, %46 : vector<1x1xf32>
    %48 = math.rsqrt %47 : vector<1x1xf32>
    %49 = vector.broadcast %48 : vector<1x1xf32> to vector<1x512xf32>
    %50 = arith.mulf %40, %49 : vector<1x512xf32>
    %51 = arith.mulf %50, %33 : vector<1x512xf32>
    %52 = arith.addf %51, %34 : vector<1x512xf32>
    %c0_26 = arith.constant 0 : index
    %c0_27 = arith.constant 0 : index
    %c0_28 = arith.constant 0 : index
    %53 = vector.load %arg8[%c0_26, %c0_27, %c0_28] : memref<1x1x512xf32, #tpu.memory_space<vmem>>, vector<1x1x512xf32>
    %54 = vector.shape_cast %53 : vector<1x1x512xf32> to vector<1x512xf32>
    %55 = vector.shape_cast %52 : vector<1x512xf32> to vector<1x1x512xf32>
    tpu.vector_store %arg8[%c0_26, %c0_27, %c0_28], %55 {strides = array<i32>} : memref<1x1x512xf32, #tpu.memory_space<vmem>>, vector<1x1x512xf32>,
    return
  }
  func.func @transform_0(%arg0: i32) -> (i32, i32, i32) {
    %c0_i32 = arith.constant 0 : i32
    %c0_i32_0 = arith.constant 0 : i32
    %c0_i32_1 = arith.constant 0 : i32
    return %arg0, %c0_i32, %c0_i32_0 : i32, i32, i32
  }
  func.func @transform_1(%arg0: i32) -> (i32, i32) {
    %c0_i32 = arith.constant 0 : i32
    %c0_i32_0 = arith.constant 0 : i32
    %c0_i32_1 = arith.constant 0 : i32
    return %c0_i32, %c0_i32_0 : i32, i32
  }
  func.func @transform_2(%arg0: i32) -> (i32, i32) {
    %c0_i32 = arith.constant 0 : i32
    %c0_i32_0 = arith.constant 0 : i32
    %c0_i32_1 = arith.constant 0 : i32
    return %c0_i32, %c0_i32_0 : i32, i32
  }
  func.func @transform_3(%arg0: i32) -> (i32, i32) {
    %c0_i32 = arith.constant 0 : i32
    %c0_i32_0 = arith.constant 0 : i32
    %c0_i32_1 = arith.constant 0 : i32
    return %c0_i32, %c0_i32_0 : i32, i32
  }
  func.func @transform_4(%arg0: i32) -> (i32, i32) {
    %c0_i32 = arith.constant 0 : i32
    %c0_i32_0 = arith.constant 0 : i32
    %c0_i32_1 = arith.constant 0 : i32
    return %c0_i32, %c0_i32_0 : i32, i32
  }
  func.func @transform_5(%arg0: i32) -> (i32, i32) {
    %c0_i32 = arith.constant 0 : i32
    %c0_i32_0 = arith.constant 0 : i32
    %c0_i32_1 = arith.constant 0 : i32
    return %c0_i32, %c0_i32_0 : i32, i32
  }
  func.func @transform_6(%arg0: i32) -> (i32, i32) {
    %c0_i32 = arith.constant 0 : i32
    %c0_i32_0 = arith.constant 0 : i32
    %c0_i32_1 = arith.constant 0 : i32
    return %c0_i32, %c0_i32_0 : i32, i32
  }
  func.func @transform_7(%arg0: i32) -> (i32, i32, i32) {
    %c0_i32 = arith.constant 0 : i32
    %c0_i32_0 = arith.constant 0 : i32
    %c0_i32_1 = arith.constant 0 : i32
    return %arg0, %c0_i32, %c0_i32_0 : i32, i32, i32
  }
}

module attributes {stable_mosaic.version = 11 : i64} {
  func.func @_layer_kernel(%arg0: i32, %arg1: memref<1x5x64xf32, #tpu.memory_space<vmem>>, %arg2: memref<64x192xbf16, #tpu.memory_space<vmem>>, %arg3: memref<1x192xf32, #tpu.memory_space<vmem>>, %arg4: memref<64x64xbf16, #tpu.memory_space<vmem>>, %arg5: memref<1x64xf32, #tpu.memory_space<vmem>>, %arg6: memref<1x64xf32, #tpu.memory_space<vmem>>, %arg7: memref<1x64xf32, #tpu.memory_space<vmem>>, %arg8: memref<64x128xbf16, #tpu.memory_space<vmem>>, %arg9: memref<1x128xf32, #tpu.memory_space<vmem>>, %arg10: memref<128x64xbf16, #tpu.memory_space<vmem>>, %arg11: memref<1x64xf32, #tpu.memory_space<vmem>>, %arg12: memref<1x64xf32, #tpu.memory_space<vmem>>, %arg13: memref<1x64xf32, #tpu.memory_space<vmem>>, %arg14: memref<1x5x64xf32, #tpu.memory_space<vmem>>) attributes {dimension_semantics = [#tpu.dimension_semantics<parallel>], iteration_bounds = array<i64: 2>, scalar_prefetch = 0 : i64, scratch_operands = 0 : i64, tpu.core_type = #tpu.core_type<tc>, window_params = [{transform_indices = @transform_0, window_bounds = array<i64: 1, 5, 64>}, {pipeline_mode = #tpu.pipeline_mode<synchronous>, transform_indices = @transform_1, window_bounds = array<i64: 64, 192>}, {pipeline_mode = #tpu.pipeline_mode<synchronous>, transform_indices = @transform_2, window_bounds = array<i64: 1, 192>}, {pipeline_mode = #tpu.pipeline_mode<synchronous>, transform_indices = @transform_3, window_bounds = array<i64: 64, 64>}, {pipeline_mode = #tpu.pipeline_mode<synchronous>, transform_indices = @transform_4, window_bounds = array<i64: 1, 64>}, {pipeline_mode = #tpu.pipeline_mode<synchronous>, transform_indices = @transform_5, window_bounds = array<i64: 1, 64>}, {pipeline_mode = #tpu.pipeline_mode<synchronous>, transform_indices = @transform_6, window_bounds = array<i64: 1, 64>}, {pipeline_mode = #tpu.pipeline_mode<synchronous>, transform_indices = @transform_7, window_bounds = array<i64: 64, 128>}, {pipeline_mode = #tpu.pipeline_mode<synchronous>, transform_indices = @transform_8, window_bounds = array<i64: 1, 128>}, {pipeline_mode = #tpu.pipeline_mode<synchronous>, transform_indices = @transform_9, window_bounds = array<i64: 128, 64>}, {pipeline_mode = #tpu.pipeline_mode<synchronous>, transform_indices = @transform_10, window_bounds = array<i64: 1, 64>}, {pipeline_mode = #tpu.pipeline_mode<synchronous>, transform_indices = @transform_11, window_bounds = array<i64: 1, 64>}, {pipeline_mode = #tpu.pipeline_mode<synchronous>, transform_indices = @transform_12, window_bounds = array<i64: 1, 64>}, {transform_indices = @transform_13, window_bounds = array<i64: 1, 5, 64>}]} {
    %c0 = arith.constant 0 : index
    %c0_0 = arith.constant 0 : index
    %c0_1 = arith.constant 0 : index
    %0 = vector.load %arg1[%c0, %c0_0, %c0_1] : memref<1x5x64xf32, #tpu.memory_space<vmem>>, vector<1x5x64xf32>
    %1 = vector.shape_cast %0 : vector<1x5x64xf32> to vector<5x64xf32>
    %c0_2 = arith.constant 0 : index
    %c0_3 = arith.constant 0 : index
    %2 = vector.load %arg6[%c0_2, %c0_3] : memref<1x64xf32, #tpu.memory_space<vmem>>, vector<1x64xf32>
    %c0_4 = arith.constant 0 : index
    %c0_5 = arith.constant 0 : index
    %3 = vector.load %arg7[%c0_4, %c0_5] : memref<1x64xf32, #tpu.memory_space<vmem>>, vector<1x64xf32>
    %c0_6 = arith.constant 0 : index
    %c0_7 = arith.constant 0 : index
    %4 = vector.load %arg12[%c0_6, %c0_7] : memref<1x64xf32, #tpu.memory_space<vmem>>, vector<1x64xf32>
    %c0_8 = arith.constant 0 : index
    %c0_9 = arith.constant 0 : index
    %5 = vector.load %arg13[%c0_8, %c0_9] : memref<1x64xf32, #tpu.memory_space<vmem>>, vector<1x64xf32>
    %cst = arith.constant dense<0.000000e+00> : vector<5xf32>
    %6 = vector.multi_reduction <add>, %1, %cst [1] : vector<5x64xf32> to vector<5xf32>
    %7 = vector.shape_cast %6 : vector<5xf32> to vector<5x1xf32>
    %cst_10 = arith.constant 6.400000e+01 : f32
    %8 = vector.broadcast %cst_10 : f32 to vector<5x1xf32>
    %9 = arith.divf %7, %8 : vector<5x1xf32>
    %10 = vector.broadcast %9 : vector<5x1xf32> to vector<5x64xf32>
    %11 = arith.subf %1, %10 : vector<5x64xf32>
    %12 = arith.mulf %11, %11 : vector<5x64xf32>
    %cst_11 = arith.constant dense<0.000000e+00> : vector<5xf32>
    %13 = vector.multi_reduction <add>, %12, %cst_11 [1] : vector<5x64xf32> to vector<5xf32>
    %14 = vector.shape_cast %13 : vector<5xf32> to vector<5x1xf32>
    %cst_12 = arith.constant 6.400000e+01 : f32
    %15 = vector.broadcast %cst_12 : f32 to vector<5x1xf32>
    %16 = arith.divf %14, %15 : vector<5x1xf32>
    %cst_13 = arith.constant 9.99999996E-13 : f32
    %17 = vector.broadcast %cst_13 : f32 to vector<5x1xf32>
    %18 = arith.addf %16, %17 : vector<5x1xf32>
    %19 = math.rsqrt %18 : vector<5x1xf32>
    %20 = vector.broadcast %19 : vector<5x1xf32> to vector<5x64xf32>
    %21 = arith.mulf %11, %20 : vector<5x64xf32>
    %22 = vector.broadcast %2 : vector<1x64xf32> to vector<5x64xf32>
    %23 = arith.mulf %21, %22 : vector<5x64xf32>
    %24 = vector.broadcast %3 : vector<1x64xf32> to vector<5x64xf32>
    %25 = arith.addf %23, %24 : vector<5x64xf32>
    %26 = arith.truncf %25 : vector<5x64xf32> to vector<5x64xbf16>
    %c0_14 = arith.constant 0 : index
    %c0_15 = arith.constant 0 : index
    %27 = vector.load %arg2[%c0_14, %c0_15] : memref<64x192xbf16, #tpu.memory_space<vmem>>, vector<64x192xbf16>
    %cst_16 = arith.constant dense<0.000000e+00> : vector<5x192xf32>
    %28 = tpu.matmul %26, %27, %cst_16 {dimension_numbers = #tpu.dot_dimension_numbers<[1], [0], [0], [1], [0, 0, 1, 1], [], []>} : vector<5x64xbf16>, vector<64x192xbf16>, vector<5x192xf32> -> vector<5x192xf32>
    %c0_17 = arith.constant 0 : index
    %c0_18 = arith.constant 0 : index
    %29 = vector.load %arg3[%c0_17, %c0_18] : memref<1x192xf32, #tpu.memory_space<vmem>>, vector<1x192xf32>
    %30 = vector.broadcast %29 : vector<1x192xf32> to vector<5x192xf32>
    %31 = arith.addf %28, %30 : vector<5x192xf32>
    %c0_19 = arith.constant 0 : index
    %c0_20 = arith.constant 0 : index
    %32 = vector.load %arg4[%c0_19, %c0_20] : memref<64x64xbf16, #tpu.memory_space<vmem>>, vector<64x64xbf16>
    %cst_21 = arith.constant 0.000000e+00 : f32
    %33 = vector.broadcast %cst_21 : f32 to vector<5x64xf32>
    %34 = vector.extract_strided_slice %31 {offsets = [0, 0], sizes = [5, 32], strides = [1, 1]} : vector<5x192xf32> to vector<5x32xf32>
    %cst_22 = arith.constant 0.176776692 : f32
    %35 = vector.broadcast %cst_22 : f32 to vector<5x32xf32>
    %36 = arith.mulf %34, %35 : vector<5x32xf32>
    %37 = arith.truncf %36 : vector<5x32xf32> to vector<5x32xbf16>
    %38 = vector.extract_strided_slice %31 {offsets = [0, 64], sizes = [5, 32], strides = [1, 1]} : vector<5x192xf32> to vector<5x32xf32>
    %39 = arith.truncf %38 : vector<5x32xf32> to vector<5x32xbf16>
    %40 = vector.extract_strided_slice %31 {offsets = [0, 128], sizes = [5, 32], strides = [1, 1]} : vector<5x192xf32> to vector<5x32xf32>
    %41 = arith.truncf %40 : vector<5x32xf32> to vector<5x32xbf16>
    %cst_23 = arith.constant dense<0.000000e+00> : vector<5x5xf32>
    %42 = tpu.matmul %37, %39, %cst_23 {dimension_numbers = #tpu.dot_dimension_numbers<[1], [1], [0], [0], [0, 0, 1, 0], [], []>} : vector<5x32xbf16>, vector<5x32xbf16>, vector<5x5xf32> -> vector<5x5xf32>
    %cst_24 = arith.constant dense<0xFF800000> : vector<5xf32>
    %43 = vector.multi_reduction <maximumf>, %42, %cst_24 [1] : vector<5x5xf32> to vector<5xf32>
    %44 = vector.shape_cast %43 : vector<5xf32> to vector<5x1xf32>
    %45 = vector.broadcast %44 : vector<5x1xf32> to vector<5x5xf32>
    %46 = arith.subf %42, %45 : vector<5x5xf32>
    %47 = math.exp %46 : vector<5x5xf32>
    %cst_25 = arith.constant dense<0.000000e+00> : vector<5xf32>
    %48 = vector.multi_reduction <add>, %47, %cst_25 [1] : vector<5x5xf32> to vector<5xf32>
    %49 = vector.shape_cast %48 : vector<5xf32> to vector<5x1xf32>
    %50 = tpu.reciprocal %49 {approx = true} : vector<5x1xf32> -> vector<5x1xf32>
    %51 = vector.broadcast %50 : vector<5x1xf32> to vector<5x5xf32>
    %52 = arith.mulf %47, %51 : vector<5x5xf32>
    %53 = arith.truncf %52 : vector<5x5xf32> to vector<5x5xbf16>
    %cst_26 = arith.constant dense<0.000000e+00> : vector<5x32xf32>
    %54 = tpu.matmul %53, %41, %cst_26 {dimension_numbers = #tpu.dot_dimension_numbers<[1], [0], [0], [1], [0, 0, 1, 1], [], []>} : vector<5x5xbf16>, vector<5x32xbf16>, vector<5x32xf32> -> vector<5x32xf32>
    %55 = arith.truncf %54 : vector<5x32xf32> to vector<5x32xbf16>
    %56 = vector.extract_strided_slice %32 {offsets = [0, 0], sizes = [32, 64], strides = [1, 1]} : vector<64x64xbf16> to vector<32x64xbf16>
    %cst_27 = arith.constant dense<0.000000e+00> : vector<5x64xf32>
    %57 = tpu.matmul %55, %56, %cst_27 {dimension_numbers = #tpu.dot_dimension_numbers<[1], [0], [0], [1], [0, 0, 1, 1], [], []>} : vector<5x32xbf16>, vector<32x64xbf16>, vector<5x64xf32> -> vector<5x64xf32>
    %58 = arith.addf %33, %57 : vector<5x64xf32>
    %59 = vector.extract_strided_slice %31 {offsets = [0, 32], sizes = [5, 32], strides = [1, 1]} : vector<5x192xf32> to vector<5x32xf32>
    %cst_28 = arith.constant 0.176776692 : f32
    %60 = vector.broadcast %cst_28 : f32 to vector<5x32xf32>
    %61 = arith.mulf %59, %60 : vector<5x32xf32>
    %62 = arith.truncf %61 : vector<5x32xf32> to vector<5x32xbf16>
    %63 = vector.extract_strided_slice %31 {offsets = [0, 96], sizes = [5, 32], strides = [1, 1]} : vector<5x192xf32> to vector<5x32xf32>
    %64 = arith.truncf %63 : vector<5x32xf32> to vector<5x32xbf16>
    %65 = vector.extract_strided_slice %31 {offsets = [0, 160], sizes = [5, 32], strides = [1, 1]} : vector<5x192xf32> to vector<5x32xf32>
    %66 = arith.truncf %65 : vector<5x32xf32> to vector<5x32xbf16>
    %cst_29 = arith.constant dense<0.000000e+00> : vector<5x5xf32>
    %67 = tpu.matmul %62, %64, %cst_29 {dimension_numbers = #tpu.dot_dimension_numbers<[1], [1], [0], [0], [0, 0, 1, 0], [], []>} : vector<5x32xbf16>, vector<5x32xbf16>, vector<5x5xf32> -> vector<5x5xf32>
    %cst_30 = arith.constant dense<0xFF800000> : vector<5xf32>
    %68 = vector.multi_reduction <maximumf>, %67, %cst_30 [1] : vector<5x5xf32> to vector<5xf32>
    %69 = vector.shape_cast %68 : vector<5xf32> to vector<5x1xf32>
    %70 = vector.broadcast %69 : vector<5x1xf32> to vector<5x5xf32>
    %71 = arith.subf %67, %70 : vector<5x5xf32>
    %72 = math.exp %71 : vector<5x5xf32>
    %cst_31 = arith.constant dense<0.000000e+00> : vector<5xf32>
    %73 = vector.multi_reduction <add>, %72, %cst_31 [1] : vector<5x5xf32> to vector<5xf32>
    %74 = vector.shape_cast %73 : vector<5xf32> to vector<5x1xf32>
    %75 = tpu.reciprocal %74 {approx = true} : vector<5x1xf32> -> vector<5x1xf32>
    %76 = vector.broadcast %75 : vector<5x1xf32> to vector<5x5xf32>
    %77 = arith.mulf %72, %76 : vector<5x5xf32>
    %78 = arith.truncf %77 : vector<5x5xf32> to vector<5x5xbf16>
    %cst_32 = arith.constant dense<0.000000e+00> : vector<5x32xf32>
    %79 = tpu.matmul %78, %66, %cst_32 {dimension_numbers = #tpu.dot_dimension_numbers<[1], [0], [0], [1], [0, 0, 1, 1], [], []>} : vector<5x5xbf16>, vector<5x32xbf16>, vector<5x32xf32> -> vector<5x32xf32>
    %80 = arith.truncf %79 : vector<5x32xf32> to vector<5x32xbf16>
    %81 = vector.extract_strided_slice %32 {offsets = [32, 0], sizes = [32, 64], strides = [1, 1]} : vector<64x64xbf16> to vector<32x64xbf16>
    %cst_33 = arith.constant dense<0.000000e+00> : vector<5x64xf32>
    %82 = tpu.matmul %80, %81, %cst_33 {dimension_numbers = #tpu.dot_dimension_numbers<[1], [0], [0], [1], [0, 0, 1, 1], [], []>} : vector<5x32xbf16>, vector<32x64xbf16>, vector<5x64xf32> -> vector<5x64xf32>
    %83 = arith.addf %58, %82 : vector<5x64xf32>
    %84 = arith.addf %1, %83 : vector<5x64xf32>
    %c0_34 = arith.constant 0 : index
    %c0_35 = arith.constant 0 : index
    %85 = vector.load %arg5[%c0_34, %c0_35] : memref<1x64xf32, #tpu.memory_space<vmem>>, vector<1x64xf32>
    %86 = vector.broadcast %85 : vector<1x64xf32> to vector<5x64xf32>
    %87 = arith.addf %84, %86 : vector<5x64xf32>
    %cst_36 = arith.constant dense<0.000000e+00> : vector<5xf32>
    %88 = vector.multi_reduction <add>, %87, %cst_36 [1] : vector<5x64xf32> to vector<5xf32>
    %89 = vector.shape_cast %88 : vector<5xf32> to vector<5x1xf32>
    %cst_37 = arith.constant 6.400000e+01 : f32
    %90 = vector.broadcast %cst_37 : f32 to vector<5x1xf32>
    %91 = arith.divf %89, %90 : vector<5x1xf32>
    %92 = vector.broadcast %91 : vector<5x1xf32> to vector<5x64xf32>
    %93 = arith.subf %87, %92 : vector<5x64xf32>
    %94 = arith.mulf %93, %93 : vector<5x64xf32>
    %cst_38 = arith.constant dense<0.000000e+00> : vector<5xf32>
    %95 = vector.multi_reduction <add>, %94, %cst_38 [1] : vector<5x64xf32> to vector<5xf32>
    %96 = vector.shape_cast %95 : vector<5xf32> to vector<5x1xf32>
    %cst_39 = arith.constant 6.400000e+01 : f32
    %97 = vector.broadcast %cst_39 : f32 to vector<5x1xf32>
    %98 = arith.divf %96, %97 : vector<5x1xf32>
    %cst_40 = arith.constant 9.99999996E-13 : f32
    %99 = vector.broadcast %cst_40 : f32 to vector<5x1xf32>
    %100 = arith.addf %98, %99 : vector<5x1xf32>
    %101 = math.rsqrt %100 : vector<5x1xf32>
    %102 = vector.broadcast %101 : vector<5x1xf32> to vector<5x64xf32>
    %103 = arith.mulf %93, %102 : vector<5x64xf32>
    %104 = vector.broadcast %4 : vector<1x64xf32> to vector<5x64xf32>
    %105 = arith.mulf %103, %104 : vector<5x64xf32>
    %106 = vector.broadcast %5 : vector<1x64xf32> to vector<5x64xf32>
    %107 = arith.addf %105, %106 : vector<5x64xf32>
    %108 = arith.truncf %107 : vector<5x64xf32> to vector<5x64xbf16>
    %c0_41 = arith.constant 0 : index
    %c0_42 = arith.constant 0 : index
    %109 = vector.load %arg8[%c0_41, %c0_42] : memref<64x128xbf16, #tpu.memory_space<vmem>>, vector<64x128xbf16>
    %cst_43 = arith.constant dense<0.000000e+00> : vector<5x128xf32>
    %110 = tpu.matmul %108, %109, %cst_43 {dimension_numbers = #tpu.dot_dimension_numbers<[1], [0], [0], [1], [0, 0, 1, 1], [], []>} : vector<5x64xbf16>, vector<64x128xbf16>, vector<5x128xf32> -> vector<5x128xf32>
    %c0_44 = arith.constant 0 : index
    %c0_45 = arith.constant 0 : index
    %111 = vector.load %arg9[%c0_44, %c0_45] : memref<1x128xf32, #tpu.memory_space<vmem>>, vector<1x128xf32>
    %112 = vector.broadcast %111 : vector<1x128xf32> to vector<5x128xf32>
    %113 = arith.addf %110, %112 : vector<5x128xf32>
    %cst_46 = arith.constant 5.000000e-01 : f32
    %114 = vector.broadcast %cst_46 : f32 to vector<5x128xf32>
    %115 = arith.mulf %114, %113 : vector<5x128xf32>
    %cst_47 = arith.constant 4.471500e-02 : f32
    %116 = vector.broadcast %cst_47 : f32 to vector<5x128xf32>
    %117 = arith.mulf %116, %113 : vector<5x128xf32>
    %118 = arith.mulf %117, %113 : vector<5x128xf32>
    %119 = arith.mulf %118, %113 : vector<5x128xf32>
    %120 = arith.addf %113, %119 : vector<5x128xf32>
    %cst_48 = arith.constant 0.797884583 : f32
    %121 = vector.broadcast %cst_48 : f32 to vector<5x128xf32>
    %122 = arith.mulf %121, %120 : vector<5x128xf32>
    %123 = math.tanh %122 : vector<5x128xf32>
    %cst_49 = arith.constant 1.000000e+00 : f32
    %124 = vector.broadcast %cst_49 : f32 to vector<5x128xf32>
    %125 = arith.addf %124, %123 : vector<5x128xf32>
    %126 = arith.mulf %115, %125 : vector<5x128xf32>
    %127 = arith.truncf %126 : vector<5x128xf32> to vector<5x128xbf16>
    %c0_50 = arith.constant 0 : index
    %c0_51 = arith.constant 0 : index
    %128 = vector.load %arg10[%c0_50, %c0_51] : memref<128x64xbf16, #tpu.memory_space<vmem>>, vector<128x64xbf16>
    %cst_52 = arith.constant dense<0.000000e+00> : vector<5x64xf32>
    %129 = tpu.matmul %127, %128, %cst_52 {dimension_numbers = #tpu.dot_dimension_numbers<[1], [0], [0], [1], [0, 0, 1, 1], [], []>} : vector<5x128xbf16>, vector<128x64xbf16>, vector<5x64xf32> -> vector<5x64xf32>
    %130 = arith.addf %87, %129 : vector<5x64xf32>
    %c0_53 = arith.constant 0 : index
    %c0_54 = arith.constant 0 : index
    %131 = vector.load %arg11[%c0_53, %c0_54] : memref<1x64xf32, #tpu.memory_space<vmem>>, vector<1x64xf32>
    %132 = vector.broadcast %131 : vector<1x64xf32> to vector<5x64xf32>
    %133 = arith.addf %130, %132 : vector<5x64xf32>
    %c0_55 = arith.constant 0 : index
    %c0_56 = arith.constant 0 : index
    %c0_57 = arith.constant 0 : index
    %134 = vector.load %arg14[%c0_55, %c0_56, %c0_57] : memref<1x5x64xf32, #tpu.memory_space<vmem>>, vector<1x5x64xf32>
    %135 = vector.shape_cast %134 : vector<1x5x64xf32> to vector<5x64xf32>
    %136 = vector.shape_cast %133 : vector<5x64xf32> to vector<1x5x64xf32>
    tpu.vector_store %arg14[%c0_55, %c0_56, %c0_57], %136 {strides = array<i32>} : memref<1x5x64xf32, #tpu.memory_space<vmem>>, vector<1x5x64xf32>,
    return
  }
  func.func @transform_0(%arg0: i32) -> (i32, i32, i32) {
    %c0_i32 = arith.constant 0 : i32
    %c0_i32_0 = arith.constant 0 : i32
    %c0_i32_1 = arith.constant 0 : i32
    return %arg0, %c0_i32, %c0_i32_0 : i32, i32, i32
  }
  func.func @transform_1(%arg0: i32) -> (i32, i32) {
    %c0_i32 = arith.constant 0 : i32
    %c0_i32_0 = arith.constant 0 : i32
    %c0_i32_1 = arith.constant 0 : i32
    return %c0_i32, %c0_i32_0 : i32, i32
  }
  func.func @transform_2(%arg0: i32) -> (i32, i32) {
    %c0_i32 = arith.constant 0 : i32
    %c0_i32_0 = arith.constant 0 : i32
    %c0_i32_1 = arith.constant 0 : i32
    return %c0_i32, %c0_i32_0 : i32, i32
  }
  func.func @transform_3(%arg0: i32) -> (i32, i32) {
    %c0_i32 = arith.constant 0 : i32
    %c0_i32_0 = arith.constant 0 : i32
    %c0_i32_1 = arith.constant 0 : i32
    return %c0_i32, %c0_i32_0 : i32, i32
  }
  func.func @transform_4(%arg0: i32) -> (i32, i32) {
    %c0_i32 = arith.constant 0 : i32
    %c0_i32_0 = arith.constant 0 : i32
    %c0_i32_1 = arith.constant 0 : i32
    return %c0_i32, %c0_i32_0 : i32, i32
  }
  func.func @transform_5(%arg0: i32) -> (i32, i32) {
    %c0_i32 = arith.constant 0 : i32
    %c0_i32_0 = arith.constant 0 : i32
    %c0_i32_1 = arith.constant 0 : i32
    return %c0_i32, %c0_i32_0 : i32, i32
  }
  func.func @transform_6(%arg0: i32) -> (i32, i32) {
    %c0_i32 = arith.constant 0 : i32
    %c0_i32_0 = arith.constant 0 : i32
    %c0_i32_1 = arith.constant 0 : i32
    return %c0_i32, %c0_i32_0 : i32, i32
  }
  func.func @transform_7(%arg0: i32) -> (i32, i32) {
    %c0_i32 = arith.constant 0 : i32
    %c0_i32_0 = arith.constant 0 : i32
    %c0_i32_1 = arith.constant 0 : i32
    return %c0_i32, %c0_i32_0 : i32, i32
  }
  func.func @transform_8(%arg0: i32) -> (i32, i32) {
    %c0_i32 = arith.constant 0 : i32
    %c0_i32_0 = arith.constant 0 : i32
    %c0_i32_1 = arith.constant 0 : i32
    return %c0_i32, %c0_i32_0 : i32, i32
  }
  func.func @transform_9(%arg0: i32) -> (i32, i32) {
    %c0_i32 = arith.constant 0 : i32
    %c0_i32_0 = arith.constant 0 : i32
    %c0_i32_1 = arith.constant 0 : i32
    return %c0_i32, %c0_i32_0 : i32, i32
  }
  func.func @transform_10(%arg0: i32) -> (i32, i32) {
    %c0_i32 = arith.constant 0 : i32
    %c0_i32_0 = arith.constant 0 : i32
    %c0_i32_1 = arith.constant 0 : i32
    return %c0_i32, %c0_i32_0 : i32, i32
  }
  func.func @transform_11(%arg0: i32) -> (i32, i32) {
    %c0_i32 = arith.constant 0 : i32
    %c0_i32_0 = arith.constant 0 : i32
    %c0_i32_1 = arith.constant 0 : i32
    return %c0_i32, %c0_i32_0 : i32, i32
  }
  func.func @transform_12(%arg0: i32) -> (i32, i32) {
    %c0_i32 = arith.constant 0 : i32
    %c0_i32_0 = arith.constant 0 : i32
    %c0_i32_1 = arith.constant 0 : i32
    return %c0_i32, %c0_i32_0 : i32, i32
  }
  func.func @transform_13(%arg0: i32) -> (i32, i32, i32) {
    %c0_i32 = arith.constant 0 : i32
    %c0_i32_0 = arith.constant 0 : i32
    %c0_i32_1 = arith.constant 0 : i32
    return %arg0, %c0_i32, %c0_i32_0 : i32, i32, i32
  }
}

module attributes {stable_mosaic.version = 11 : i64} {
  func.func @_cosine_sim_kernel(%arg0: memref<2x512xf32, #tpu.memory_space<vmem>>, %arg1: memref<2x512xf32, #tpu.memory_space<vmem>>, %arg2: memref<2x2xf32, #tpu.memory_space<vmem>>) attributes {dimension_semantics = [], scalar_prefetch = 0 : i64, scratch_operands = 0 : i64, tpu.core_type = #tpu.core_type<tc>} {
    %c0 = arith.constant 0 : index
    %c0_0 = arith.constant 0 : index
    %0 = vector.load %arg0[%c0, %c0_0] : memref<2x512xf32, #tpu.memory_space<vmem>>, vector<2x512xf32>
    %c0_1 = arith.constant 0 : index
    %c0_2 = arith.constant 0 : index
    %1 = vector.load %arg1[%c0_1, %c0_2] : memref<2x512xf32, #tpu.memory_space<vmem>>, vector<2x512xf32>
    %2 = arith.mulf %0, %0 : vector<2x512xf32>
    %cst = arith.constant dense<0.000000e+00> : vector<2xf32>
    %3 = vector.multi_reduction <add>, %2, %cst [1] : vector<2x512xf32> to vector<2xf32>
    %4 = vector.shape_cast %3 : vector<2xf32> to vector<2x1xf32>
    %5 = math.rsqrt %4 : vector<2x1xf32>
    %6 = vector.broadcast %5 : vector<2x1xf32> to vector<2x512xf32>
    %7 = arith.mulf %0, %6 : vector<2x512xf32>
    %8 = arith.mulf %1, %1 : vector<2x512xf32>
    %cst_3 = arith.constant dense<0.000000e+00> : vector<2xf32>
    %9 = vector.multi_reduction <add>, %8, %cst_3 [1] : vector<2x512xf32> to vector<2xf32>
    %10 = vector.shape_cast %9 : vector<2xf32> to vector<2x1xf32>
    %11 = math.rsqrt %10 : vector<2x1xf32>
    %12 = vector.broadcast %11 : vector<2x1xf32> to vector<2x512xf32>
    %13 = arith.mulf %1, %12 : vector<2x512xf32>
    %cst_4 = arith.constant dense<0.000000e+00> : vector<2x2xf32>
    %14 = tpu.matmul %7, %13, %cst_4 {dimension_numbers = #tpu.dot_dimension_numbers<[1], [1], [0], [0], [0, 0, 1, 0], [], []>} : vector<2x512xf32>, vector<2x512xf32>, vector<2x2xf32> -> vector<2x2xf32>
    %c0_5 = arith.constant 0 : index
    %c0_6 = arith.constant 0 : index
    %15 = vector.load %arg2[%c0_5, %c0_6] : memref<2x2xf32, #tpu.memory_space<vmem>>, vector<2x2xf32>
    tpu.vector_store %arg2[%c0_5, %c0_6], %14 {strides = array<i32>} : memref<2x2xf32, #tpu.memory_space<vmem>>, vector<2x2xf32>,
    return
  }
}

</mosaic_0001>

<bundles_post_ra>
// kernel: fwd.13
= control target key start
LH: loop header
LB: loop body
LE: loop exit
PB: predicated region body
PF: predicated region fallthrough
CT: control target
= control target key end

     0   :  { %vm18_vm0 = vcmask 261120   ;;  %s118_s0 = inlined_call_operand.vmem [shape: f32[16,32], index: 0, kind: input, shape index: {}]   ;;  %s119_s1 = inlined_call_operand.vmem [shape: f32[1,32], index: 1, kind: input, shape index: {}]   ;;  %s120_s2 = inlined_call_operand.vmem [shape: f32[1,32], index: 2, kind: input, shape index: {}]   ;;  %s121_s3 = inlined_call_operand.vmem [shape: f32[16,32], index: 3, kind: output, shape index: {}]  }
   0x1   :  { %v14_v0 = vld [vmem:[%s118_s0] sm:$0xff]  ;;  %v15_v1 = vld [vmem:[%s118_s0 + $0x8] sm:$0xff] }
   0x2   :  { %v19_v2 = vsel %vm18_vm0, %v14_v0, 0.0  ;;  %v22_v3 = vsel %vm18_vm0, %v15_v1, 0.0  ;;  %v68_v21 = vld [vmem:[%s119_s1] ss:$0 sm:$0xff] }
   0x3   :  { %20 = vadd.xlane.f32.xlu0 %v19_v2  ;;  %v69_v23 = vld [vmem:[%s120_s2] ss:$0 sm:$0xff] }
   0x7   :  { %23 = vadd.xlane.f32.xlu0 %v22_v3 }
  0x90   :  { %v21_v4 = vpop.xlane.xlu0 %20 }
  0x91   :  { %v26_v5 = vmul.f32 0.03125, %v21_v4 }
  0x93   :  { %v28_v6 = vsub.f32 %v14_v0, %v26_v5 }
  0x94   :  { %v24_v7 = vpop.xlane.xlu0 %23 }
  0x95   :  { %v27_v8 = vmul.f32 0.03125, %v24_v7  ;;  %v30_v9 = vmul.f32 %v28_v6, %v28_v6 }
  0x97   :  { %v29_v10 = vsub.f32 %v15_v1, %v27_v8  ;;  %v32_v11 = vsel %vm18_vm0, %v30_v9, 0.0 }
  0x98   :  { %33 = vadd.xlane.f32.xlu1 %v32_v11 }
  0x99   :  { %v31_v12 = vmul.f32 %v29_v10, %v29_v10 }
  0x9b   :  { %v35_v13 = vsel %vm18_vm0, %v31_v12, 0.0 }
  0x9c   :  { %36 = vadd.xlane.f32.xlu1 %v35_v13 }
 0x125   :  { %v34_v14 = vpop.xlane.xlu1 %33 }
 0x126   :  { %v38_v15 = vmul.f32 0.03125, %v34_v14 }
 0x128   :  { %v40_v16 = vadd.f32 1e-12, %v38_v15 }
 0x129   :  { %v37_v17 = vpop.xlane.xlu1 %36 }
 0x12a   :  { %70 = vrsqrt.f32 %v40_v16  ;;  %v39_v18 = vmul.f32 0.03125, %v37_v17 }
 0x12c   :  { %v41_v19 = vadd.f32 1e-12, %v39_v18 }
 0x12e   :  { %72 = vrsqrt.f32 %v41_v19 }
 0x134   :  { %v71_v20 = vpop.eup %70 }
 0x135   :  { %v44_v22 = vmul.f32 %v71_v20, %v28_v6 }
 0x137   :  { %v52_v24 = vmul.f32 %v68_v21, %v44_v22 }
 0x138   :  { %v73_v25 = vpop.eup %72 }
 0x139   :  { %v60_v26 = vadd.f32 %v69_v23, %v52_v24  ;;  %v45_v27 = vmul.f32 %v73_v25, %v29_v10 }
 0x13b   :  { %62 = vst.msk [vmem:[%s121_s3] sm:$0xff] %vm18_vm0, %v60_v26  ;;  %v53_v28 = vmul.f32 %v68_v21, %v45_v27 }
 0x13d   :  { %v61_v29 = vadd.f32 %v69_v23, %v53_v28 }
 0x13f   :  { %63 = vst.msk [vmem:[%s121_s3 + $0x8] sm:$0xff] %vm18_vm0, %v61_v29 }

// kernel: fwd.16
= control target key start
LH: loop header
LB: loop body
LE: loop exit
PB: predicated region body
PF: predicated region fallthrough
CT: control target
= control target key end

     0   :  { %s646_s18 = smov 0   ;;  %s740_s0 = inlined_call_operand.vmem [shape: f32[2,8,32], index: 0, kind: input, shape index: {}]   ;;  %s741_s1 = inlined_call_operand.vmem [shape: bf16[32,512], index: 1, kind: input, shape index: {}]   ;;  %s742_s2 = inlined_call_operand.vmem [shape: f32[1,512], index: 2, kind: input, shape index: {}]   ;;  %s743_s3 = inlined_call_operand.vmem [shape: f32[1,512], index: 3, kind: input, shape index: {}]   ;;  %s744_s4 = inlined_call_operand.vmem [shape: f32[1,512], index: 4, kind: input, shape index: {}]   ;;  %s745_s5 = inlined_call_operand.vmem [shape: f32[2,1,512], index: 5, kind: output, shape index: {}]  }
   0x1 LB: > { %s563_s19 = sadd.s32 4294967295, %s612_s18   ;;  %p567_p0 = scmp.ge.s32.totalorder %s612_s18, 1  ;;  %s612_s18 = sphi %s646_s18, %s15_s18  }
   0x2   : > { %p186_p1 = scmp.lt.s32.totalorder %s612_s18, 3 }
   0x4   : > { %p187_p2 = pnand %p567_p0, %p186_p1 }
   0x5   : > { %v592_v0 = vld [vmem:[%s741_s1 + $0x4] ss:$16 sps:$4 sm:$0xff] (!%p187_p2)   ;;  %p212_p3 = scmp.lt.s32.totalorder (!%p187_p2), %s563_s19, 1  ;;  %v594_v1 = vld [vmem:[%s741_s1 + $0xc] ss:$16 sps:$4 sm:$0xff] (!%p187_p2)   ;;  %v614_v2 = vmov (!%p187_p2), 0   ;;  %v283_v19 = vlaneseq (!%p187_p2) }
   0x6   : > { %190 = sbr.rel (%p187_p2) target bundleno = 583 (0x247), region = 40  ;;  %338 = vmatprep.mubr.bf16.mxu0 (!%p187_p2), %v614_v2  ;;  %379 = vmatprep.mubr.bf16.mxu1 (!%p187_p2), %v614_v2  ;;  %v596_v3 = vld [vmem:[%s741_s1] ss:$16 sps:$4 sm:$0xff] (!%p187_p2)   ;;  %v597_v4 = vld [vmem:[%s741_s1 + $0x8] ss:$16 sps:$4 sm:$0xff] (!%p187_p2)   ;;  %vm222_vm0 = vcmask (!%p187_p2), 261120  }
   0x7   : > { %306 = vmatprep.subr.bf16.mxu0 (!%p187_p2), %v592_v0  ;;  %347 = vmatprep.subr.bf16.mxu1 (!%p187_p2), %v594_v1  ;;  %v598_v5 = vld [vmem:[%s741_s1 + $0x24] ss:$16 sps:$4 sm:$0xff] (!%p187_p2)   ;;  %v600_v6 = vld [vmem:[%s741_s1 + $0x2c] ss:$16 sps:$4 sm:$0xff] (!%p187_p2)   ;;  %v602_v7 = vld [vmem:[%s741_s1 + $0x20] ss:$16 sps:$4 sm:$0xff] (!%p187_p2)  }
   0x8   : > { %307 = vmatpush1.bf16.msra.mxu0 (!%p187_p2), %v596_v3  ;;  %348 = vmatpush1.bf16.msra.mxu1 (!%p187_p2), %v597_v4  ;;  %v603_v8 = vld [vmem:[%s741_s1 + $0x28] ss:$16 sps:$4 sm:$0xff] (!%p187_p2)   ;;  %v688_v20 = vshrl.u32 (!%p187_p2), %v283_v19, 7  ;;  %v241_v23 = vld [vmem:[%s742_s2] sm:$0xf] (!%p187_p2)  ;;  %vm390_vm1 = vcmask (!%p187_p2), 1040384  }
   0x9   : > { %308 = vmatprep.subr.bf16.mxu0 (!%p187_p2), %v598_v5  ;;  %349 = vmatprep.subr.bf16.mxu1 (!%p187_p2), %v600_v6  ;;  %v388_v5 = vld [vmem:[%s743_s3] sm:$0xf] (!%p187_p2)  ;;  %vm507_vm2 = vcmp.lt.s32.totalorder (!%p187_p2), %v283_v19, 512 }
   0xa   : > { %v691_v21 = vsub.s32 (!%p187_p2), 0, %v688_v20  ;;  %v694_v22 = vsub.s32 (!%p187_p2), 2, %v688_v20  ;;  %v700_v24 = vsub.s32 (!%p187_p2), 1, %v688_v20  ;;  %v703_v25 = vsub.s32 (!%p187_p2), 3, %v688_v20  ;;  %v389_v6 = vld [vmem:[%s744_s4] sm:$0xf] (!%p187_p2) }
   0xc   : > { %309 = vmatpush1.bf16.msra.mxu0 (!%p187_p2), %v602_v7  ;;  %350 = vmatpush1.bf16.msra.mxu1 (!%p187_p2), %v603_v8  ;;  %v286_v26 = vrot.slane (!%p187_p2), %v241_v23, %v691_v21  ;;  %v294_v27 = vrot.slane (!%p187_p2), %v241_v23, %v694_v22  ;;  %v290_v28 = vrot.slane (!%p187_p2), %v241_v23, %v700_v24  ;;  %v615_v7 = vmov (!%p187_p2), 1966171168  }
   0xd   : > { %s747_s19 = smov (!%p212_p3, %s563_s19), 1  ;;  %v298_v31 = vrot.slane %v241_v23, %v703_v25  ;;  %v483_v8 = vunpack.c.l.s4 %v615_v7 }
   0xe   : > { %s568_s9 = sshll.u32 %s747_s19, 3  ;;  %s569_s23 = sshll.u32 %s747_s19, 2 }
   0xf   : > { %s215_s14 = scalar_lea.vmem %s740_s0, %s568_s9  ;;  %s219_s26 = scalar_lea.vmem %s745_s5, %s569_s23 }
  0x10   : > { %v221_v9 = vld [vmem:[%s215_s14] sm:$0xff] }
  0x11   : > { %v223_v10 = vsel %vm222_vm0, %v221_v9, 0.0  ;;  %v430_v9 = vrot.slane %v388_v5, %v691_v21 }
  0x12   : > { %v224_v11 = vrot.slane %v223_v10, 4 }
  0x14   : > { %v225_v12 = vadd.f32 %v224_v11, %v223_v10  ;;  %v455_v10 = vrot.slane %v389_v6, %v691_v21  ;;  %v438_v11 = vrot.slane %v388_v5, %v694_v22 }
  0x16   : > { %v226_v13 = vrot.slane %v225_v12, 2 }
  0x18   : > { %v227_v14 = vadd.f32 %v226_v13, %v225_v12  ;;  %v434_v12 = vrot.slane %v388_v5, %v700_v24  ;;  %v442_v13 = vrot.slane %v388_v5, %v703_v25 }
  0x1a   : > { %v228_v15 = vrot.slane %v227_v14, 1 }
  0x1c   : > { %v229_v16 = vadd.f32 %v228_v15, %v227_v14  ;;  %v484_v15 = vunpack.c.0.s8 %v483_v8 }
  0x1e   : > { %v231_v17 = vmul.f32 0.125, %v229_v16  ;;  %v463_v16 = vrot.slane %v389_v6, %v694_v22 }
  0x20   : > { %v232_v18 = vpack.c.bf16 %v231_v17, %v231_v17  ;;  %v459_v17 = vrot.slane %v389_v6, %v700_v24 }
  0x22   : > { %578 = vmatmul.mubr.msk.bf16.vlgmr.msra.gmra.mrb[0].mxu0 %vm222_vm0, %v232_v18  ;;  %579 = vmatmul.mubr.msk.bf16.vlgmr.msra.gmra.mrb[0].mxu1 %vm222_vm0, %v232_v18  ;;  %v467_v18 = vrot.slane %v389_v6, %v703_v25 }
  0xf5   : > { %v340_v29 = vpop.f32.mrb[0].mxu0  ;;  %v381_v30 = vpop.f32.mrb[0].mxu1 }
  0xf6   : > { %v341_v32 = vadd.f32 %v340_v29, %v286_v26  ;;  %v382_v33 = vadd.f32 %v381_v30, %v294_v27  ;;  %v342_v34 = vpop.f32.mrb[1].mxu0  ;;  %v383_v35 = vpop.f32.mrb[1].mxu1 }
  0xf7   : > { %v343_v36 = vadd.f32 %v342_v34, %v290_v28  ;;  %v344_v37 = vpop.f32.mrb[2].mxu0  ;;  %v385_v38 = vpop.f32.mrb[2].mxu1  ;;  %v384_v44 = vadd.f32 %v383_v35, %v298_v31 }
  0xf8   : > { %v391_v39 = vsel %vm390_vm1, %v341_v32, 0.0  ;;  %v345_v40 = vpop.f32.mrb[3].mxu0  ;;  %v386_v41 = vpop.f32.mrb[3].mxu1  ;;  %v394_v42 = vsel %vm390_vm1, %v382_v33, 0.0 }
  0xf9   : > { %v392_v43 = vsel %vm390_vm1, %v343_v36, 0.0  ;;  %v396_v47 = vsel %vm390_vm1, %v384_v44, 0.0 }
  0xfa   : > { %v393_v45 = vadd.f32 %v392_v43, %v391_v39 }
  0xfc   : > { %v395_v46 = vadd.f32 %v394_v42, %v393_v45 }
  0xfe   : > { %v397_v48 = vadd.f32 %v396_v47, %v395_v46 }
 0x100   : > { %398 = vadd.xlane.f32.xlu0 %v397_v48 }
 0x18d   : > { %v399_v49 = vpop.xlane.xlu0 %398 }
 0x18e   : > { %v401_v50 = vmul.f32 0.001953125, %v399_v49 }
 0x190   : > { %v402_v51 = vsub.f32 %v341_v32, %v401_v50  ;;  %v403_v52 = vsub.f32 %v343_v36, %v401_v50  ;;  %v404_v53 = vsub.f32 %v382_v33, %v401_v50  ;;  %v405_v54 = vsub.f32 %v384_v44, %v401_v50 }
 0x191   : > { %v487_v32 = vsub.s32 %v484_v15, %v688_v20 }
 0x192   : > { %v406_v55 = vmul.f32 %v402_v51, %v402_v51  ;;  %v407_v56 = vmul.f32 %v403_v52, %v403_v52  ;;  %v408_v57 = vmul.f32 %v404_v53, %v404_v53  ;;  %v409_v58 = vmul.f32 %v405_v54, %v405_v54 }
 0x194   : > { %v410_v59 = vsel %vm390_vm1, %v406_v55, 0.0  ;;  %v411_v60 = vsel %vm390_vm1, %v407_v56, 0.0  ;;  %v413_v62 = vsel %vm390_vm1, %v408_v57, 0.0  ;;  %v415_v0 = vsel %vm390_vm1, %v409_v58, 0.0 }
 0x195   : > { %v412_v61 = vadd.f32 %v411_v60, %v410_v59 }
 0x197   : > { %v414_v63 = vadd.f32 %v413_v62, %v412_v61 }
 0x199   : > { %v416_v1 = vadd.f32 %v415_v0, %v414_v63 }
 0x19b   : > { %417 = vadd.xlane.f32.xlu0 %v416_v1 }
 0x228   : > { %v418_v2 = vpop.xlane.xlu0 %417 }
 0x229   : > { %v419_v3 = vmul.f32 0.001953125, %v418_v2 }
 0x22b   : > { %v420_v4 = vadd.f32 1e-05, %v419_v3 }
 0x22d   : > { %604 = vrsqrt.f32 %v420_v4 }
 0x237   : > { %v605_v14 = vpop.eup %604 }
 0x238   : > { %v422_v23 = vmul.f32 %v605_v14, %v402_v51  ;;  %v423_v26 = vmul.f32 %v605_v14, %v403_v52  ;;  %v424_v27 = vmul.f32 %v605_v14, %v404_v53  ;;  %v425_v28 = vmul.f32 %v605_v14, %v405_v54 }
 0x23a   : > { %v447_v21 = vmul.f32 %v430_v9, %v422_v23  ;;  %v448_v29 = vmul.f32 %v434_v12, %v423_v26  ;;  %v449_v30 = vmul.f32 %v438_v11, %v424_v27  ;;  %v450_v31 = vmul.f32 %v442_v13, %v425_v28 }
 0x23c   : > { %v472_v33 = vadd.f32 %v455_v10, %v447_v21  ;;  %v473_v34 = vadd.f32 %v459_v17, %v448_v29  ;;  %v474_v35 = vadd.f32 %v463_v16, %v449_v30  ;;  %v475_v36 = vadd.f32 %v467_v18, %v450_v31 }
 0x23e   : > { %v480_v22 = vcombine.low %v472_v33, %v473_v34  ;;  %v481_v37 = vcombine.low %v474_v35, %v475_v36 }
 0x240   : > { %v488_v24 = vrot.slane %v480_v22, %v487_v32  ;;  %v495_v25 = vrot.slane %v481_v37, %v487_v32 }
 0x242   : > { %v496_v38 = vcombine.low %v488_v24, %v495_v25 }
 0x244   : > { %v503_v39 = vrot.slane %v496_v38, %v487_v32 }
 0x246   : > { %509 = vst.msk [vmem:[%s219_s26] sm:$0xf] %vm507_vm2, %v503_v39 }
 0x247 PF: > { %s15_s18 = sadd.s32 1, %s612_s18  }
 0x248   : > { %p12_p4 = scmp.ge.s32.totalorder %s15_s18, 4  }
 0x24a   :  { %14 = sbr.rel (!%p12_p4) target bundleno = 1 (0x1), region = 70 }

// kernel: fwd.14
= control target key start
LH: loop header
LB: loop body
LE: loop exit
PB: predicated region body
PF: predicated region fallthrough
CT: control target
= control target key end

     0   :  { %s1430_s29 = smov 0   ;;  %s1568_s0 = inlined_call_operand.vmem [shape: f32[2,8,32], index: 0, kind: input, shape index: {}]   ;;  %s1569_s1 = inlined_call_operand.vmem [shape: f32[2,1,8], index: 1, kind: input, shape index: {}]   ;;  %s1570_s2 = inlined_call_operand.vmem [shape: bf16[32,96], index: 2, kind: input, shape index: {}]   ;;  %s1571_s3 = inlined_call_operand.vmem [shape: f32[1,96], index: 3, kind: input, shape index: {}]   ;;  %s1572_s4 = inlined_call_operand.vmem [shape: bf16[32,32], index: 4, kind: input, shape index: {}]   ;;  %s1573_s5 = inlined_call_operand.vmem [shape: f32[1,32], index: 5, kind: input, shape index: {}]   ;;  %s1574_s6 = inlined_call_operand.vmem [shape: f32[1,32], index: 6, kind: input, shape index: {}]   ;;  %s1575_s7 = inlined_call_operand.vmem [shape: f32[1,32], index: 7, kind: input, shape index: {}]   ;;  %s1576_s8 = inlined_call_operand.vmem [shape: bf16[32,64], index: 8, kind: input, shape index: {}]   ;;  %s1577_s9 = inlined_call_operand.vmem [shape: f32[1,64], index: 9, kind: input, shape index: {}]   ;;  %s1578_s10 = inlined_call_operand.vmem [shape: bf16[64,32], index: 10, kind: input, shape index: {}]   ;;  %s1579_s11 = inlined_call_operand.vmem [shape: f32[1,32], index: 11, kind: input, shape index: {}]   ;;  %s1580_s12 = inlined_call_operand.vmem [shape: f32[1,32], index: 12, kind: input, shape index: {}]   ;;  %s1581_s13 = inlined_call_operand.vmem [shape: f32[1,32], index: 13, kind: input, shape index: {}]   ;;  %s1582_s14 = inlined_call_operand.vmem [shape: f32[2,8,32], index: 14, kind: output, shape index: {}]  }
   0x1 LB: > { %s1177_s30 = sadd.s32 4294967295, %s1346_s29   ;;  %p1181_p0 = scmp.ge.s32.totalorder %s1346_s29, 1  ;;  %s1346_s29 = sphi %s1430_s29, %s24_s29  }
   0x2   : > { %p419_p1 = scmp.lt.s32.totalorder %s1346_s29, 3 }
   0x4   : > { %p420_p2 = pnand %p1181_p0, %p419_p1 }
   0x5   : > { %v1316_v0 = vld [vmem:[%s1570_s2] sm:$0xff] (!%p420_p2)   ;;  %v1348_v1 = vmov (!%p420_p2), 0.0   ;;  %v1317_v2 = vld [vmem:[%s1570_s2 + $0x8] sm:$0xff] (!%p420_p2)   ;;  %vm1349_vm0 = vmmov (!%p420_p2), 0   ;;  %p466_p3 = scmp.lt.s32.totalorder (!%p420_p2), %s1177_s30, 1  ;;  %vm507_vm1 = vcmask (!%p420_p2), 261120  }
   0x6   : > { %423 = sbr.rel (%p420_p2) target bundleno = 2414 (0x96e), region = 76  ;;  %1237 = vmatprep.subr.bf16.mxu1 (!%p420_p2), %v1348_v1  ;;  %1251 = vmatprep.subr.bf16.mxu0 (!%p420_p2), %v1348_v1  ;;  %v1184_v5 = vld [vmem:[%s1571_s3] ss:$0 sm:$0xff] (!%p420_p2)  ;;  %s1350_s25 = smov (!%p420_p2), 96   ;;  %vm568_vm2 = vcmask (!%p420_p2), 130048   ;;  %vm615_vm3 = vcmask (!%p420_p2), 64512  }
   0x7   : > { %1238 = vmatpush3.bf16.msra.mxu1 (!%p420_p2), %v1316_v0  ;;  %1241 = vmatprep.mubr.msk.bf16.mxu1 (!%p420_p2), %vm1349_vm0, %v1348_v1  ;;  %s1351_s26 = smov (!%p420_p2), 112   ;;  %s1352_s27 = smov (!%p420_p2), 80   ;;  %vm633_vm4 = vcmask (!%p420_p2), 1043456   ;;  %v1318_v54 = vld [vmem:[%s1572_s4] sm:$0xff] (!%p420_p2)   ;;  %v1319_v55 = vld [vmem:[%s1572_s4 + $0x8] sm:$0xff] (!%p420_p2)   ;;  %vm1034_vm5 = vcmask (!%p420_p2), 523264  }
   0x8   : > { %1239 = vmatprep.subr.bf16.mxu1 (!%p420_p2), %v1348_v1  ;;  %1253 = vmatprep.mubr.msk.bf16.mxu0 (!%p420_p2), %vm1349_vm0, %v1348_v1  ;;  %s1353_s17 = smov (!%p420_p2), 64   ;;  %s1354_s18 = smov (!%p420_p2), 48  }
   0xb   : > { %1240 = vmatpush3.bf16.msra.mxu1 (!%p420_p2), %v1317_v2 }
   0xc   : > { %1245 = vmatprep.subr.bf16.mxu1 (!%p420_p2), %v1348_v1 }
   0xd   : > { %s1584_s30 = smov (!%p466_p3, %s1177_s30), 1 }
   0xe   : > { %s1182_s19 = sshll.u32 %s1584_s30, 3  ;;  %s472_s16 = scalar_lea.vmem %s1569_s1, %s1584_s30 }
   0xf   : > { %s469_s22 = scalar_lea.vmem %s1568_s0, %s1182_s19  ;;  %v1188_v19 = vld [vmem:[%s472_s16] ss:$0 sm:$0xff] }
  0x10   : > { %v1460_v3 = vld [vmem:[%s469_s22] sm:$0xff] }
  0x11   : > { %v483_v4 = vpack.c.bf16 %v1460_v3, %v1460_v3 }
  0x13   : > { %1242 = vmatmul.mubr.msk.bf16.vlgmr.msra.gmra.mrb[0].mxu1 %vm507_vm1, %v483_v4 }
  0x14   : > { %1247 = vmatprep.mubr.msk.bf16.mxu1 %vm1349_vm0, %v1348_v1 }
  0xe6   : > { %v545_v6 = vpop.f32.mrb[0].mxu1 }
  0xe7   : > { %v546_v7 = vadd.f32 %v1184_v5, %v545_v6  ;;  %v1243_v8 = vpop.f32.mrb[1].mxu1 }
  0xe8   : > { %v548_v9 = vpop.f32.mrb[2].mxu1 }
  0xe9   : > { %v558_v10 = vpack.c.bf16 %v546_v7, %v546_v7  ;;  %v1244_v11 = vpop.f32.mrb[3].mxu1  ;;  %v556_v12 = vmul.f32 0.25, %v546_v7 }
  0xeb   : > { %566 = vrot.lane.b32.xlu0 %v558_v10, %s1350_s25  ;;  %v557_v13 = vpack.c.bf16 %v556_v12, %v556_v12  ;;  %v1197_v12 = vld [vmem:[%s1573_s5] ss:$0 sm:$0xff] }
  0xed   : > { %679 = vrot.lane.b32.xlu1 %v557_v13, %s1351_s26  ;;  %s476_s26 = scalar_lea.vmem %s1582_s14, %s1182_s19 }
  0xef   : > { %681 = vrot.lane.b32.xlu0 %v558_v10, %s1352_s27 }
 0x15d   : > { %v567_v14 = vpop.permute.xlu0 %566 }
 0x15e   : > { %v573_v15 = vsel %vm568_vm2, %v567_v14, 0 }
 0x15f   : > { %1246 = vmatpush3.bf16.xpose.msra.mxu1 %v573_v15  ;;  %v680_v18 = vpop.permute.xlu1 %679 }
 0x160   : > { %1257 = vmatprep.subr.bf16.mxu1 %v1348_v1 }
 0x161   : > { %v682_v16 = vpop.permute.xlu0 %681 }
 0x162   : > { %v687_v17 = vsel %vm568_vm2, %v682_v16, 0 }
 0x166   : > { %1248 = vmatmul.mubr.msk.bf16.vlgmr.msra.gmra.mrb[4].mxu1 %vm568_vm2, %v557_v13 }
 0x167   : > { %1258 = vmatpush3.bf16.xpose.msra.mxu1 %v687_v17  ;;  %1259 = vmatprep.mubr.msk.bf16.mxu1 %vm1349_vm0, %v1348_v1 }
 0x168   : > { %1269 = vmatprep.subr.bf16.mxu1 %v1348_v1 }
 0x16e   : > { %1260 = vmatmul.mubr.msk.bf16.vlgmr.msra.gmra.mrb[8].mxu1 %vm568_vm2, %v680_v18 }
 0x16f   : > { %1271 = vmatprep.mubr.msk.bf16.mxu1 %vm1349_vm0, %v1348_v1  ;;  %1270 = vmatpush3.bf16.msra.mxu1 %v1319_v55 }
 0x170   : > { %1281 = vmatprep.subr.bf16.mxu1 %v1348_v1 }
 0x239   : > { %v609_v20 = vpop.f32.mrb[4].mxu1 }
 0x23a   : > { %v610_v21 = vadd.f32 %v1188_v19, %v609_v20  ;;  %v1249_v22 = vpop.f32.mrb[5].mxu1 }
 0x23b   : > { %v612_v23 = vpop.f32.mrb[6].mxu1  ;;  %v1320_v22 = vld [vmem:[%s1576_s8] sm:$0xff]  }
 0x23c   : > { %v1250_v24 = vpop.f32.mrb[7].mxu1  ;;  %v616_v25 = vsel %vm615_vm3, %v610_v21, -inf }
 0x23d   : > { %617 = vmax.xlane.f32.xlu1 %v616_v25 }
 0x241   : > { %v723_v26 = vpop.f32.mrb[8].mxu1 }
 0x242   : > { %v724_v27 = vadd.f32 %v1188_v19, %v723_v26  ;;  %v1261_v28 = vpop.f32.mrb[9].mxu1 }
 0x243   : > { %v726_v29 = vpop.f32.mrb[10].mxu1 }
 0x244   : > { %v1262_v30 = vpop.f32.mrb[11].mxu1  ;;  %v729_v31 = vsel %vm615_vm3, %v724_v27, -inf  ;;  %v1199_v29 = vld [vmem:[%s1575_s7] ss:$0 sm:$0xff] }
 0x245   : > { %730 = vmax.xlane.f32.xlu0 %v729_v31 }
 0x2ca   : > { %v618_v32 = vpop.xlane.xlu1 %617 }
 0x2cb   : > { %v619_v33 = vsub.f32 %v610_v21, %v618_v32 }
 0x2cd   : > { %v620_v34 = vmul.f32 1.442695, %v619_v33  ;;  %v1322_v33 = vld [vmem:[%s1578_s10] sm:$0xff]  }
 0x2cf   : > { %1326 = vpow2.f32 %v620_v34  ;;  %v1323_v34 = vld [vmem:[%s1578_s10 + $0x8] sm:$0xff]  }
 0x2d2   : > { %v731_v35 = vpop.xlane.xlu0 %730 }
 0x2d3   : > { %v732_v36 = vsub.f32 %v724_v27, %v731_v35  ;;  %v1198_v27 = vld [vmem:[%s1574_s6] ss:$0 sm:$0xff]  ;;  %v1324_v35 = vld [vmem:[%s1578_s10 + $0x10] sm:$0xff]  }
 0x2d5   : > { %v733_v37 = vmul.f32 1.442695, %v732_v36  ;;  %v1325_v36 = vld [vmem:[%s1578_s10 + $0x18] sm:$0xff]  }
 0x2d7   : > { %1328 = vpow2.f32 %v733_v37  ;;  %v1200_v37 = vld [vmem:[%s1577_s9] ss:$0 sm:$0xff] }
 0x2d9   : > { %v1327_v38 = vpop.eup %1326 }
 0x2da   : > { %v622_v39 = vsel %vm615_vm3, %v1327_v38, 0.0 }
 0x2db   : > { %623 = vadd.xlane.f32.xlu0 %v622_v39 }
 0x2e1   : > { %v1329_v40 = vpop.eup %1328 }
 0x2e2   : > { %v735_v41 = vsel %vm615_vm3, %v1329_v40, 0.0 }
 0x2e3   : > { %736 = vadd.xlane.f32.xlu1 %v735_v41 }
 0x2f1   : > { %628 = vrot.lane.b32.xlu0 %v558_v10, %s1353_s17 }
 0x2f4   : > { %741 = vrot.lane.b32.xlu1 %v558_v10, %s1354_s18 }
 0x368   : > { %v624_v42 = vpop.xlane.xlu0 %623 }
 0x369   : > { %1330 = vrcp.f32 %v624_v42 }
 0x36c   : > { %v629_v43 = vpop.permute.xlu0 %628 }
 0x36d   : > { %v635_v44 = vsel %vm633_vm4, %v629_v43, 0 }
 0x36e   : > { %1252 = vmatpush3.bf16.msra.mxu0 %v635_v44 }
 0x36f   : > { %1263 = vmatprep.subr.bf16.mxu0 %v1348_v1 }
 0x370   : > { %v737_v45 = vpop.xlane.xlu1 %736 }
 0x371   : > { %1332 = vrcp.f32 %v737_v45 }
 0x373   : > { %v1331_v46 = vpop.eup %1330 }
 0x374   : > { %v626_v47 = vmul.f32 %v1331_v46, %v1327_v38  ;;  %v742_v48 = vpop.permute.xlu1 %741 }
 0x375   : > { %v747_v50 = vsel %vm633_vm4, %v742_v48, 0 }
 0x376   : > { %v627_v49 = vpack.c.bf16 %v626_v47, %v626_v47 }
 0x378   : > { %1254 = vmatmul.mubr.msk.bf16.vlgmr.msra.gmra.mrb[0].mxu0 %vm615_vm3, %v627_v49 }
 0x379   : > { %1264 = vmatpush3.bf16.msra.mxu0 %v747_v50  ;;  %1265 = vmatprep.mubr.msk.bf16.mxu0 %vm1349_vm0, %v1348_v1 }
 0x37a   : > { %1275 = vmatprep.subr.bf16.mxu0 %v1348_v1 }
 0x37b   : > { %v1333_v51 = vpop.eup %1332 }
 0x37c   : > { %v739_v52 = vmul.f32 %v1333_v51, %v1329_v40 }
 0x37e   : > { %v740_v53 = vpack.c.bf16 %v739_v52, %v739_v52 }
 0x380   : > { %1266 = vmatmul.mubr.msk.bf16.vlgmr.msra.gmra.mrb[4].mxu0 %vm615_vm3, %v740_v53  ;;  %v1209_v53 = vld [vmem:[%s1579_s11] ss:$0 sm:$0xff] }
 0x381   : > { %1277 = vmatprep.mubr.msk.bf16.mxu0 %vm1349_vm0, %v1348_v1  ;;  %1276 = vmatpush3.bf16.msra.mxu0 %v1318_v54 }
 0x382   : > { %1289 = vmatprep.subr.bf16.mxu0 %v1348_v1 }
 0x44b   : > { %v671_v56 = vpop.f32.mrb[0].mxu0 }
 0x44c   : > { %v677_v57 = vpack.c.bf16 %v671_v56, %v671_v56  ;;  %v1255_v58 = vpop.f32.mrb[1].mxu0 }
 0x44d   : > { %v674_v59 = vpop.f32.mrb[2].mxu0 }
 0x44e   : > { %v1256_v60 = vpop.f32.mrb[3].mxu0  ;;  %1278 = vmatmul.mubr.msk.bf16.vlgmr.msra.gmra.mrb[8].mxu0 %vm568_vm2, %v677_v57 }
 0x44f   : > { %1297 = vmatprep.mubr.msk.bf16.mxu0 %vm1349_vm0, %v1348_v1  ;;  %1290 = vmatpush3.bf16.msra.mxu0 %v1322_v33 }
 0x450   : > { %1291 = vmatprep.subr.bf16.mxu0 %v1348_v1 }
 0x453   : > { %v783_v61 = vpop.f32.mrb[4].mxu0  ;;  %1292 = vmatpush3.bf16.msra.mxu0 %v1323_v34 }
 0x454   : > { %v789_v62 = vpack.c.bf16 %v783_v61, %v783_v61  ;;  %v1267_v63 = vpop.f32.mrb[5].mxu0  ;;  %1293 = vmatprep.subr.bf16.mxu0 %v1348_v1 }
 0x455   : > { %v786_v0 = vpop.f32.mrb[6].mxu0 }
 0x456   : > { %v1268_v2 = vpop.f32.mrb[7].mxu0  ;;  %1272 = vmatmul.mubr.msk.bf16.vlgmr.msra.gmra.mrb[12].mxu1 %vm568_vm2, %v789_v62 }
 0x457   : > { %1285 = vmatprep.mubr.msk.bf16.mxu1 %vm1349_vm0, %v1348_v1  ;;  %1282 = vmatpush3.bf16.msra.mxu1 %v1320_v22 }
 0x458   : > { %1283 = vmatprep.subr.bf16.mxu1 %v1348_v1  ;;  %1294 = vmatpush3.bf16.msra.mxu0 %v1324_v35 }
 0x459   : > { %1295 = vmatprep.subr.bf16.mxu0 %v1348_v1 }
 0x45c   : > { %1296 = vmatpush3.bf16.msra.mxu0 %v1325_v36 }
 0x521   : > { %v882_v4 = vpop.f32.mrb[8].mxu0 }
 0x522   : > { %v1279_v5 = vpop.f32.mrb[9].mxu0 }
 0x523   : > { %v885_v6 = vpop.f32.mrb[10].mxu0 }
 0x524   : > { %v1280_v7 = vpop.f32.mrb[11].mxu0 }
 0x525   : > { %v1210_v7 = vld [vmem:[%s1580_s12] ss:$0 sm:$0xff] }
 0x529   : > { %v833_v8 = vpop.f32.mrb[12].mxu1 }
 0x52a   : > { %v883_v9 = vadd.f32 %v882_v4, %v833_v8  ;;  %v1273_v10 = vpop.f32.mrb[13].mxu1 }
 0x52b   : > { %v836_v11 = vpop.f32.mrb[14].mxu1 }
 0x52c   : > { %v888_v13 = vadd.f32 %v883_v9, %v1460_v3  ;;  %v1274_v14 = vpop.f32.mrb[15].mxu1  ;;  %v1321_v3 = vld [vmem:[%s1576_s8 + $0x8] sm:$0xff]   ;;  %v1211_v9 = vld [vmem:[%s1581_s13] ss:$0 sm:$0xff] }
 0x52d   : > { %1284 = vmatpush3.bf16.msra.mxu1 %v1321_v3 }
 0x52e   : > { %v896_v15 = vadd.f32 %v1197_v12, %v888_v13 }
 0x530   : > { %v897_v16 = vsel %vm507_vm1, %v896_v15, 0.0 }
 0x531   : > { %898 = vadd.xlane.f32.xlu1 %v897_v16 }
 0x5be   : > { %v899_v17 = vpop.xlane.xlu1 %898 }
 0x5bf   : > { %v901_v18 = vmul.f32 0.03125, %v899_v17 }
 0x5c1   : > { %v902_v19 = vsub.f32 %v896_v15, %v901_v18 }
 0x5c3   : > { %v903_v20 = vmul.f32 %v902_v19, %v902_v19 }
 0x5c5   : > { %v904_v21 = vsel %vm507_vm1, %v903_v20, 0.0 }
 0x5c6   : > { %905 = vadd.xlane.f32.xlu0 %v904_v21 }
 0x653   : > { %v906_v23 = vpop.xlane.xlu0 %905 }
 0x654   : > { %v907_v24 = vmul.f32 0.03125, %v906_v23 }
 0x656   : > { %v908_v25 = vadd.f32 1e-12, %v907_v24 }
 0x658   : > { %1334 = vrsqrt.f32 %v908_v25 }
 0x662   : > { %v1335_v26 = vpop.eup %1334 }
 0x663   : > { %v910_v28 = vmul.f32 %v1335_v26, %v902_v19 }
 0x665   : > { %v917_v30 = vmul.f32 %v1198_v27, %v910_v28 }
 0x667   : > { %v924_v31 = vadd.f32 %v1199_v29, %v917_v30 }
 0x669   : > { %v925_v32 = vpack.c.bf16 %v924_v31, %v924_v31 }
 0x66b   : > { %1286 = vmatmul.mubr.msk.bf16.vlgmr.msra.gmra.mrb[16].mxu1 %vm507_vm1, %v925_v32 }
 0x73e   : > { %v986_v38 = vpop.f32.mrb[16].mxu1 }
 0x73f   : > { %v987_v39 = vadd.f32 %v1200_v37, %v986_v38  ;;  %v1287_v40 = vpop.f32.mrb[17].mxu1 }
 0x740   : > { %v989_v41 = vpop.f32.mrb[18].mxu1 }
 0x741   : > { %v993_v42 = vmul.f32 0.044715, %v987_v39  ;;  %v1288_v43 = vpop.f32.mrb[19].mxu1  ;;  %v992_v49 = vmul.f32 0.5, %v987_v39 }
 0x743   : > { %v994_v44 = vmul.f32 %v993_v42, %v987_v39 }
 0x745   : > { %v995_v45 = vmul.f32 %v994_v44, %v987_v39 }
 0x747   : > { %v996_v46 = vadd.f32 %v995_v45, %v987_v39 }
 0x749   : > { %v997_v47 = vmul.f32 0.7978846, %v996_v46 }
 0x74b   : > { %1336 = vtanh.f32 %v997_v47 }
 0x755   : > { %v1337_v48 = vpop.eup %1336 }
 0x756   : > { %v999_v50 = vadd.f32 1.0, %v1337_v48 }
 0x758   : > { %v1000_v1 = vmul.f32 %v999_v50, %v992_v49 }
 0x75a   : > { %v1001_v51 = vpack.c.bf16 %v1000_v1, %v1000_v1 }
 0x75c   : > { %1298 = vmatmul.mubr.msk.bf16.vlgmr.msra.gmra.mrb[12].mxu0 %vm1034_vm5, %v1001_v51 }
 0x82f   : > { %v1072_v52 = vpop.f32.mrb[12].mxu0 }
 0x830   : > { %v1078_v54 = vadd.f32 %v1072_v52, %v924_v31  ;;  %v1299_v55 = vpop.f32.mrb[13].mxu0 }
 0x831   : > { %v1075_v56 = vpop.f32.mrb[14].mxu0 }
 0x832   : > { %v1300_v57 = vpop.f32.mrb[15].mxu0  ;;  %v1086_v58 = vadd.f32 %v1209_v53, %v1078_v54 }
 0x834   : > { %v1087_v59 = vsel %vm507_vm1, %v1086_v58, 0.0 }
 0x835   : > { %1088 = vadd.xlane.f32.xlu0 %v1087_v59 }
 0x8c2   : > { %v1089_v60 = vpop.xlane.xlu0 %1088 }
 0x8c3   : > { %v1090_v61 = vmul.f32 0.03125, %v1089_v60 }
 0x8c5   : > { %v1091_v62 = vsub.f32 %v1086_v58, %v1090_v61 }
 0x8c7   : > { %v1092_v63 = vmul.f32 %v1091_v62, %v1091_v62 }
 0x8c9   : > { %v1093_v0 = vsel %vm507_vm1, %v1092_v63, 0.0 }
 0x8ca   : > { %1094 = vadd.xlane.f32.xlu1 %v1093_v0 }
 0x957   : > { %v1095_v2 = vpop.xlane.xlu1 %1094 }
 0x958   : > { %v1096_v4 = vmul.f32 0.03125, %v1095_v2 }
 0x95a   : > { %v1097_v5 = vadd.f32 1e-12, %v1096_v4 }
 0x95c   : > { %1338 = vrsqrt.f32 %v1097_v5 }
 0x966   : > { %v1339_v6 = vpop.eup %1338 }
 0x967   : > { %v1099_v8 = vmul.f32 %v1339_v6, %v1091_v62 }
 0x969   : > { %v1106_v10 = vmul.f32 %v1210_v7, %v1099_v8 }
 0x96b   : > { %v1113_v11 = vadd.f32 %v1211_v9, %v1106_v10 }
 0x96d   : > { %1114 = vst.msk [vmem:[%s476_s26] sm:$0xff] %vm507_vm1, %v1113_v11 }
 0x96e PF: > { %s24_s29 = sadd.s32 1, %s1346_s29  }
 0x96f   : > { %p21_p4 = scmp.ge.s32.totalorder %s24_s29, 4  }
 0x971   :  { %23 = sbr.rel (!%p21_p4) target bundleno = 1 (0x1), region = 109 }

// kernel: fwd.9
= control target key start
LH: loop header
LB: loop body
LE: loop exit
PB: predicated region body
PF: predicated region fallthrough
CT: control target
= control target key end

     0   :  { %vm19_vm0 = vcmask 523264   ;;  %v213_v0 = vmov 0   ;;  %v214_v2 = vmov 0.0   ;;  %s287_s1 = inlined_call_operand.vmem [shape: bf16[192,64], index: 1, kind: input, shape index: {}]   ;;  %s288_s0 = inlined_call_operand.vmem [shape: f32[8,192], index: 0, kind: input, shape index: {}]   ;;  %s289_s2 = inlined_call_operand.vmem [shape: f32[1,64], index: 2, kind: input, shape index: {}]   ;;  %s290_s3 = inlined_call_operand.vmem [shape: f32[8,64], index: 3, kind: output, shape index: {}]  }
   0x1   :  { %126 = vmatprep.subr.bf16.mxu0 %v213_v0  ;;  %v201_v1 = vld [vmem:[%s287_s1] sm:$0xff]   ;;  %20 = vst.msk [vmem:[#allocation2] sm:$0xff] %vm19_vm0, %v214_v2  ;;  %v202_v3 = vld [vmem:[%s287_s1 + $0x8] sm:$0xff]   ;;  %v203_v4 = vld [vmem:[%s287_s1 + $0x10] sm:$0xff]  }
   0x2   :  { %127 = vmatpush1.bf16.msra.mxu0 %v201_v1  ;;  %v204_v5 = vld [vmem:[%s287_s1 + $0x18] sm:$0xff]   ;;  %v23_v6 = vld [vmem:[%s288_s0 + $0x8] sm:$0xff]  ;;  %v205_v8 = vld [vmem:[%s287_s1 + $0x20] sm:$0xff]  }
   0x3   :  { %128 = vmatprep.subr.bf16.mxu0 %v213_v0  ;;  %v25_v7 = vpack.c.bf16 %v23_v6, %v23_v6  ;;  %v206_v9 = vld [vmem:[%s287_s1 + $0x28] sm:$0xff]   ;;  %v207_v10 = vld [vmem:[%s287_s1 + $0x30] sm:$0xff]   ;;  %v208_v11 = vld [vmem:[%s287_s1 + $0x38] sm:$0xff]  }
   0x4   :  { %v209_v12 = vld [vmem:[%s287_s1 + $0x40] sm:$0xff]   ;;  %v210_v13 = vld [vmem:[%s287_s1 + $0x48] sm:$0xff]   ;;  %v211_v14 = vld [vmem:[%s287_s1 + $0x50] sm:$0xff]  }
   0x5   :  { %197 = vmatprep.mubr.msk.bf16.mxu0 %vm19_vm0, %v25_v7  ;;  %v212_v15 = vld [vmem:[%s287_s1 + $0x58] sm:$0xff]   ;;  %v22_v16 = vld [vmem:[%s288_s0] sm:$0xff] }
   0x6   :  { %129 = vmatpush1.bf16.msra.mxu0 %v202_v3  ;;  %v24_v17 = vpack.c.bf16 %v22_v16, %v22_v16  ;;  %v198_v24 = vld [vmem:[%s289_s2] ss:$0 sm:$0xff] }
   0x7   :  { %130 = vmatprep.subr.bf16.mxu0 %v213_v0 }
   0x8   :  { %v21_v18 = vld [vmem:[#allocation2] sm:$0xff] }
   0xa   :  { %131 = vmatpush1.bf16.msra.mxu0 %v203_v4 }
   0xb   :  { %132 = vmatprep.subr.bf16.mxu0 %v213_v0 }
   0xe   :  { %133 = vmatpush1.bf16.msra.mxu0 %v204_v5 }
   0xf   :  { %134 = vmatprep.subr.bf16.mxu0 %v213_v0 }
  0x12   :  { %135 = vmatpush1.bf16.msra.mxu0 %v205_v8 }
  0x13   :  { %136 = vmatprep.subr.bf16.mxu0 %v213_v0 }
  0x16   :  { %137 = vmatpush1.bf16.msra.mxu0 %v206_v9 }
  0x17   :  { %138 = vmatprep.subr.bf16.mxu0 %v213_v0 }
  0x1a   :  { %139 = vmatpush1.bf16.msra.mxu0 %v207_v10 }
  0x1b   :  { %140 = vmatprep.subr.bf16.mxu0 %v213_v0 }
  0x1e   :  { %141 = vmatpush1.bf16.msra.mxu0 %v208_v11 }
  0x1f   :  { %142 = vmatprep.subr.bf16.mxu0 %v213_v0 }
  0x22   :  { %143 = vmatpush1.bf16.msra.mxu0 %v209_v12 }
  0x23   :  { %144 = vmatprep.subr.bf16.mxu0 %v213_v0 }
  0x26   :  { %145 = vmatpush1.bf16.msra.mxu0 %v210_v13 }
  0x27   :  { %146 = vmatprep.subr.bf16.mxu0 %v213_v0 }
  0x2a   :  { %147 = vmatpush1.bf16.msra.mxu0 %v211_v14 }
  0x2b   :  { %148 = vmatprep.subr.bf16.mxu0 %v213_v0 }
  0x2e   :  { %149 = vmatpush1.bf16.msra.mxu0 %v212_v15 }
  0x31   :  { %159 = vmatmul.mubr.bf16.vlgmr.msra.gmra.mrb[0].mxu0 %v24_v17 }
 0x104   :  { %v160_v19 = vpop.f32.mrb[0].mxu0 }
 0x105   :  { %v166_v20 = vadd.f32 %v160_v19, %v21_v18  ;;  %v162_v21 = vpop.f32.mrb[1].mxu0 }
 0x106   :  { %v163_v22 = vpop.f32.mrb[2].mxu0 }
 0x107   :  { %167 = vst.msk [vmem:[#allocation2] sm:$0xff] %vm19_vm0, %v166_v20  ;;  %v164_v23 = vpop.f32.mrb[3].mxu0 }
 0x10e   :  { %v171_v25 = vld [vmem:[#allocation2] sm:$0xff] }
 0x10f   :  { %v179_v26 = vadd.f32 %v198_v24, %v171_v25 }
 0x111   :  { %180 = vst.msk [vmem:[%s290_s3] sm:$0xff] %vm19_vm0, %v179_v26 }

// kernel: fwd.17
= control target key start
LH: loop header
LB: loop body
LE: loop exit
PB: predicated region body
PF: predicated region fallthrough
CT: control target
= control target key end

     0   :  { %v20_v1 = vlaneseq  ;;  %v333_v3 = vmov 1983009808   ;;  %s377_s0 = inlined_call_operand.vmem [shape: f32[2,512], index: 0, kind: input, shape index: {}]   ;;  %s378_s1 = inlined_call_operand.vmem [shape: f32[2,512], index: 1, kind: input, shape index: {}]   ;;  %s379_s2 = inlined_call_operand.hbm [shape: f32[2,2], index: 2, kind: output, shape index: {}]  }
   0x1   :  { %v13_v0 = vld [vmem:[%s378_s1] sm:$0xff]  ;;  %v18_v4 = vunpack.c.l.s4 %v333_v3 }
   0x2   :  { %v12_v2 = vld [vmem:[%s377_s0] sm:$0xff]  ;;  %v58_v5 = vmul.f32 %v13_v0, %v13_v0 }
   0x3   :  { %v14_v6 = vmul.f32 %v12_v2, %v12_v2 }
   0x4   :  { %7 = vsyncpa [#allocation3], 0  ;;  %v21_v7 = vshrl.u32 %v20_v1, 7  ;;  %v19_v8 = vunpack.c.0.s8 %v18_v4  ;;  %v60_v9 = vcombine.high %v58_v5, %v58_v5  ;;  %vm37_vm0 = vcmask 1041408   ;;  %s335_s0 = smov [#allocation2]  }
   0x5   :  { %v16_v10 = vcombine.high %v14_v6, %v14_v6  ;;  %v334_v35 = vmov 269488144   ;;  %s293_s1 = sshll.u32 %s335_s0, 4  ;;  %vm285_vm1 = vcmask 9216   ;;  %s294_s1 = int_to_ptr.vmem [resolvable:$true] %s293_s1 }
   0x6   :  { %v22_v11 = vsub.s32 %v19_v8, %v21_v7  ;;  %v50_v36 = vunpack.c.l.s4 %v334_v35  ;;  %s309_s13 = scalar_lea.vmem %s294_s1, 32  ;;  %p314_p1 = scmp.lt.s32.totalorder %s294_s1, %s294_s1 }
   0x7   :  { %p310_p0 = scmp.ne.s32.totalorder %s294_s1, %s309_s13  ;;  %p315_p2 = scmp.lt.s32.totalorder %s309_s13, %s309_s13 }
   0x8   :  { %v67_v12 = vrot.slane %v58_v5, %v22_v11  ;;  %v74_v13 = vrot.slane %v60_v9, %v22_v11  ;;  %v23_v14 = vrot.slane %v14_v6, %v22_v11  ;;  %v30_v15 = vrot.slane %v16_v10, %v22_v11 }
   0x9   :  { %v51_v38 = vunpack.c.0.s8 %v50_v36  ;;  %p316_p3 = por %p315_p2, %p314_p1 }
   0xa   :  { %v75_v16 = vcombine.high %v67_v12, %v67_v12  ;;  %v76_v17 = vcombine.high %v74_v13, %v74_v13  ;;  %v81_v18 = vsel %vm37_vm0, %v67_v12, 0.0  ;;  %v31_v19 = vcombine.high %v23_v14, %v23_v14 }
   0xb   :  { %v38_v20 = vsel %vm37_vm0, %v23_v14, 0.0  ;;  %v84_v22 = vsel %vm37_vm0, %v74_v13, 0.0  ;;  %v32_v23 = vcombine.high %v30_v15, %v30_v15  ;;  %v41_v26 = vsel %vm37_vm0, %v30_v15, 0.0  ;;  %p317_p4 = pnand %p316_p3, %p310_p0 }
   0xc   :  { %v82_v21 = vsel %vm37_vm0, %v75_v16, 0.0  ;;  %v39_v25 = vsel %vm37_vm0, %v31_v19, 0.0  ;;  %v86_v27 = vsel %vm37_vm0, %v76_v17, 0.0  ;;  %v54_v39 = vsub.s32 %v51_v38, %v21_v7 }
   0xd   :  { %v83_v24 = vadd.f32 %v82_v21, %v81_v18  ;;  %v40_v28 = vadd.f32 %v39_v25, %v38_v20  ;;  %v43_v31 = vsel %vm37_vm0, %v32_v23, 0.0 }
   0xf   :  { %v85_v29 = vadd.f32 %v84_v22, %v83_v24  ;;  %v42_v30 = vadd.f32 %v41_v26, %v40_v28 }
  0x11   :  { %v87_v32 = vadd.f32 %v86_v27, %v85_v29  ;;  %v44_v33 = vadd.f32 %v43_v31, %v42_v30 }
  0x13   :  { %88 = vadd.xlane.f32.xlu0 %v87_v32 }
  0x17   :  { %45 = vadd.xlane.f32.xlu0 %v44_v33 }
  0xa0   :  { %v89_v34 = vpop.xlane.xlu0 %88 }
  0xa1   :  { %305 = vrsqrt.f32 %v89_v34 }
  0xa4   :  { %v46_v37 = vpop.xlane.xlu0 %45 }
  0xa5   :  { %307 = vrsqrt.f32 %v46_v37 }
  0xab   :  { %v306_v40 = vpop.eup %305 }
  0xac   :  { %v98_v41 = vrot.slane %v306_v40, %v54_v39 }
  0xae   :  { %v100_v42 = vmul.f32 %v98_v41, %v13_v0 }
  0xaf   :  { %v308_v43 = vpop.eup %307 }
  0xb0   :  { %v131_v44 = vrot.slane %v100_v42, %v22_v11  ;;  %v124_v45 = vcombine.high %v100_v42, %v100_v42  ;;  %v55_v46 = vrot.slane %v308_v43, %v54_v39 }
  0xb2   :  { %v139_v47 = vcombine.high %v131_v44, %v131_v44  ;;  %v138_v48 = vrot.slane %v124_v45, %v22_v11  ;;  %v57_v49 = vmul.f32 %v55_v46, %v12_v2 }
  0xb4   :  { %145 = vmatprep.subr.mxu1 %v139_v47  ;;  %v140_v50 = vcombine.high %v138_v48, %v138_v48  ;;  %v109_v51 = vrot.slane %v57_v49, %v22_v11  ;;  %v102_v52 = vcombine.high %v57_v49, %v57_v49 }
  0xb5   :  { %146 = vmatpush1.xpose.msra.mxu1 %v131_v44 }
  0xb6   :  { %215 = vmatprep.subr.mxu0 %v140_v50  ;;  %v117_v53 = vcombine.high %v109_v51, %v109_v51  ;;  %v116_v54 = vrot.slane %v102_v52, %v22_v11 }
  0xb7   :  { %216 = vmatpush1.xpose.msra.mxu0 %v138_v48 }
  0xb8   :  { %209 = vmatprep.mubr.f32.mxu1 %v117_v53  ;;  %v118_v55 = vcombine.high %v116_v54, %v116_v54 }
  0xb9   :  { %210 = vmatmul.mubr.f32.vlgmr.msra.gmra.mrb[0].mxu1 %v109_v51 }
  0xba   :  { %279 = vmatprep.mubr.f32.mxu0 %v118_v55 }
  0xbb   :  { %280 = vmatmul.mubr.f32.vlgmr.msra.gmra.mrb[0].mxu0 %v116_v54 }
 0x18c   :  { %v211_v56 = vpop.f32.mrb[0].mxu1 }
 0x18d   :  { %v213_v57 = vpop.f32.mrb[1].mxu1 }
 0x18e   :  { %v281_v58 = vpop.f32.mrb[0].mxu0 }
 0x18f   :  { %v282_v59 = vadd.f32 %v281_v58, %v211_v56  ;;  %v283_v60 = vpop.f32.mrb[1].mxu0 }
 0x191   :  { %286 = vst.msk [vmem:[#allocation2] sm:$0x3] %vm285_vm1, %v282_v59 }
 0x192   :  { %320 = shalt.err (!%p317_p4)
}
 0x193   :  { %s321_s16 = scalar_lea.hbm %s379_s2, 32 }
 0x194   :  { %p322_p5 = scmp.ne.s32.totalorder %s379_s2, %s321_s16  ;;  %p325_p6 = scmp.lt.u32.totalorder %s321_s16, %s379_s2 }
 0x196   :  { %p327_p7 = pnand %p325_p6, %p322_p5 }
 0x198   :  { %330 = shalt.err (!%p327_p7)
}
 0x199   :  { %296 = dma.vmem_to_hbm [thread:$0]  %s294_s1, 32, %s379_s2, [#allocation3]  }
 0x19a   :  { %331 = dma.done.wait [#allocation3], 32  }
 0x19b   :  { %332 = vsyncadd [#allocation3], 4294967264 }
 0x19c   :  { %300 = vsyncpa [#allocation3], 1 }

// kernel: fwd.12
= control target key start
LH: loop header
LB: loop body
LE: loop exit
PB: predicated region body
PF: predicated region fallthrough
CT: control target
= control target key end

     0   :  { %s813_s24 = smov 0   ;;  %s937_s0 = inlined_call_operand.vmem [shape: f32[2,5,64], index: 0, kind: input, shape index: {}]   ;;  %s938_s1 = inlined_call_operand.vmem [shape: f32[1,64], index: 1, kind: input, shape index: {}]   ;;  %s939_s2 = inlined_call_operand.vmem [shape: f32[1,64], index: 2, kind: input, shape index: {}]   ;;  %s940_s3 = inlined_call_operand.vmem [shape: bf16[64,512], index: 3, kind: input, shape index: {}]   ;;  %s941_s4 = inlined_call_operand.vmem [shape: f32[1,512], index: 4, kind: input, shape index: {}]   ;;  %s942_s5 = inlined_call_operand.vmem [shape: f32[1,512], index: 5, kind: input, shape index: {}]   ;;  %s943_s6 = inlined_call_operand.vmem [shape: f32[1,512], index: 6, kind: input, shape index: {}]   ;;  %s944_s7 = inlined_call_operand.vmem [shape: f32[2,1,512], index: 7, kind: output, shape index: {}]  }
   0x1 LB: > { %s696_s25 = sadd.s32 4294967295, %s769_s24   ;;  %p700_p0 = scmp.ge.s32.totalorder %s769_s24, 1  ;;  %s769_s24 = sphi %s813_s24, %s17_s24  }
   0x2   : > { %p236_p1 = scmp.lt.s32.totalorder %s769_s24, 3 }
   0x4   : > { %p237_p2 = pnand %p700_p0, %p236_p1 }
   0x5   : > { %p266_p3 = scmp.lt.s32.totalorder (!%p237_p2), %s696_s25, 1  ;;  %vm278_vm0 = vcmask (!%p237_p2), 520192   ;;  %v735_v7 = vld [vmem:[%s940_s3 + $0x4] ss:$16 sps:$4 sm:$0xff] (!%p237_p2)   ;;  %v737_v8 = vld [vmem:[%s940_s3 + $0xc] ss:$16 sps:$4 sm:$0xff] (!%p237_p2)   ;;  %v415_v42 = vlaneseq (!%p237_p2) }
   0x6   : > { %240 = sbr.rel (%p237_p2) target bundleno = 896 (0x380), region = 48  ;;  %v739_v9 = vld [vmem:[%s940_s3] ss:$16 sps:$4 sm:$0xff] (!%p237_p2)   ;;  %v740_v10 = vld [vmem:[%s940_s3 + $0x8] ss:$16 sps:$4 sm:$0xff] (!%p237_p2)   ;;  %439 = vmatprep.subr.bf16.mxu0 (!%p237_p2), %v735_v7  ;;  %480 = vmatprep.subr.bf16.mxu1 (!%p237_p2), %v737_v8  ;;  %v771_v17 = vmov (!%p237_p2), 0  }
   0x7   : > { %v741_v11 = vld [vmem:[%s940_s3 + $0x24] ss:$16 sps:$4 sm:$0xff] (!%p237_p2)   ;;  %v743_v12 = vld [vmem:[%s940_s3 + $0x2c] ss:$16 sps:$4 sm:$0xff] (!%p237_p2)   ;;  %440 = vmatpush1.bf16.msra.mxu0 (!%p237_p2), %v739_v9  ;;  %481 = vmatpush1.bf16.msra.mxu1 (!%p237_p2), %v740_v10  ;;  %v745_v13 = vld [vmem:[%s940_s3 + $0x20] ss:$16 sps:$4 sm:$0xff] (!%p237_p2)  }
   0x8   : > { %v746_v14 = vld [vmem:[%s940_s3 + $0x28] ss:$16 sps:$4 sm:$0xff] (!%p237_p2)   ;;  %441 = vmatprep.subr.bf16.mxu0 (!%p237_p2), %v741_v11  ;;  %482 = vmatprep.subr.bf16.mxu1 (!%p237_p2), %v743_v12  ;;  %v747_v15 = vld [vmem:[%s940_s3 + $0x44] ss:$16 sps:$4 sm:$0xff] (!%p237_p2)   ;;  %v749_v16 = vld [vmem:[%s940_s3 + $0x4c] ss:$16 sps:$4 sm:$0xff] (!%p237_p2)  }
   0x9   : > { %471 = vmatprep.mubr.bf16.mxu0 (!%p237_p2), %v771_v17  ;;  %512 = vmatprep.mubr.bf16.mxu1 (!%p237_p2), %v771_v17  ;;  %v751_v18 = vld [vmem:[%s940_s3 + $0x40] ss:$16 sps:$4 sm:$0xff] (!%p237_p2)   ;;  %v752_v19 = vld [vmem:[%s940_s3 + $0x48] ss:$16 sps:$4 sm:$0xff] (!%p237_p2)   ;;  %v753_v20 = vld [vmem:[%s940_s3 + $0x64] ss:$16 sps:$4 sm:$0xff] (!%p237_p2)  }
   0xa   : > { %v755_v21 = vld [vmem:[%s940_s3 + $0x6c] ss:$16 sps:$4 sm:$0xff] (!%p237_p2)   ;;  %v757_v22 = vld [vmem:[%s940_s3 + $0x60] ss:$16 sps:$4 sm:$0xff] (!%p237_p2)   ;;  %v758_v23 = vld [vmem:[%s940_s3 + $0x68] ss:$16 sps:$4 sm:$0xff] (!%p237_p2)  }
   0xb   : > { %442 = vmatpush1.bf16.msra.mxu0 (!%p237_p2), %v745_v13  ;;  %483 = vmatpush1.bf16.msra.mxu1 (!%p237_p2), %v746_v14  ;;  %v703_v28 = vld [vmem:[%s938_s1] ss:$0 sm:$0xff] (!%p237_p2)  ;;  %vm435_vm1 = vcmask (!%p237_p2), 523264   ;;  %v885_v43 = vshrl.u32 (!%p237_p2), %v415_v42, 7  ;;  %vm523_vm2 = vcmask (!%p237_p2), 1040384   ;;  %vm640_vm3 = vcmp.lt.s32.totalorder (!%p237_p2), %v415_v42, 512 }
   0xc   : > { %443 = vmatprep.subr.bf16.mxu0 (!%p237_p2), %v747_v15  ;;  %484 = vmatprep.subr.bf16.mxu1 (!%p237_p2), %v749_v16  ;;  %v704_v30 = vld [vmem:[%s939_s2] ss:$0 sm:$0xff] (!%p237_p2) }
   0xd   : > { %s946_s25 = smov (!%p266_p3, %s696_s25), 1  ;;  %v888_v44 = vsub.s32 0, %v885_v43  ;;  %v333_v45 = vld [vmem:[%s941_s4] sm:$0xf]  ;;  %v894_v46 = vsub.s32 2, %v885_v43  ;;  %v897_v47 = vsub.s32 1, %v885_v43 }
   0xe   : > { %s701_s26 = sshll.u32 %s946_s25, 3  ;;  %v900_v48 = vsub.s32 3, %v885_v43  ;;  %s702_s30 = sshll.u32 %s946_s25, 2 }
   0xf   : > { %s269_s29 = scalar_lea.vmem %s937_s0, %s701_s26  ;;  %444 = vmatpush1.bf16.msra.mxu0 %v751_v18  ;;  %485 = vmatpush1.bf16.msra.mxu1 %v752_v19  ;;  %v418_v49 = vrot.slane %v333_v45, %v888_v44  ;;  %v426_v50 = vrot.slane %v333_v45, %v894_v46  ;;  %v422_v51 = vrot.slane %v333_v45, %v897_v47  ;;  %s273_s10 = scalar_lea.vmem %s944_s7, %s702_s30 }
  0x10   : > { %v275_v0 = vld [vmem:[%s269_s29] sm:$0x1f]  ;;  %445 = vmatprep.subr.bf16.mxu0 %v753_v20  ;;  %486 = vmatprep.subr.bf16.mxu1 %v755_v21  ;;  %v430_v54 = vrot.slane %v333_v45, %v900_v48 }
  0x11   : > { %v279_v1 = vsel %vm278_vm0, %v275_v0, 0.0 }
  0x12   : > { %280 = vadd.xlane.f32.xlu0 %v279_v1 }
  0x13   : > { %446 = vmatpush1.bf16.msra.mxu0 %v757_v22  ;;  %487 = vmatpush1.bf16.msra.mxu1 %v758_v23 }
  0x9f   : > { %v281_v2 = vpop.xlane.xlu0 %280 }
  0xa0   : > { %v283_v3 = vmul.f32 0.015625, %v281_v2 }
  0xa2   : > { %v284_v4 = vsub.f32 %v275_v0, %v283_v3 }
  0xa4   : > { %v285_v5 = vmul.f32 %v284_v4, %v284_v4 }
  0xa6   : > { %v286_v6 = vsel %vm278_vm0, %v285_v5, 0.0 }
  0xa7   : > { %287 = vadd.xlane.f32.xlu0 %v286_v6 }
 0x134   : > { %v288_v24 = vpop.xlane.xlu0 %287 }
 0x135   : > { %v289_v25 = vmul.f32 0.015625, %v288_v24 }
 0x137   : > { %v290_v26 = vadd.f32 1e-12, %v289_v25 }
 0x139   : > { %759 = vrsqrt.f32 %v290_v26 }
 0x143   : > { %v760_v27 = vpop.eup %759 }
 0x144   : > { %v292_v29 = vmul.f32 %v760_v27, %v284_v4 }
 0x146   : > { %v299_v31 = vmul.f32 %v703_v28, %v292_v29  ;;  %v521_v28 = vld [vmem:[%s942_s5] sm:$0xf] }
 0x147   : > { %v522_v29 = vld [vmem:[%s943_s6] sm:$0xf] }
 0x148   : > { %v306_v32 = vadd.f32 %v704_v30, %v299_v31  ;;  %v772_v30 = vmov 1966171168  }
 0x149   : > { %v616_v31 = vunpack.c.l.s4 %v772_v30 }
 0x14a   : > { %v307_v33 = vsel %vm278_vm0, %v306_v32, 0.0  ;;  %v563_v32 = vrot.slane %v521_v28, %v888_v44 }
 0x14b   : > { %v308_v34 = vrot.slane %v307_v33, 4 }
 0x14d   : > { %v309_v35 = vadd.f32 %v308_v34, %v307_v33  ;;  %v588_v33 = vrot.slane %v522_v29, %v888_v44  ;;  %v571_v34 = vrot.slane %v521_v28, %v894_v46 }
 0x14f   : > { %v310_v36 = vrot.slane %v309_v35, 2 }
 0x151   : > { %v311_v37 = vadd.f32 %v310_v36, %v309_v35  ;;  %v567_v35 = vrot.slane %v521_v28, %v897_v47  ;;  %v575_v36 = vrot.slane %v521_v28, %v900_v48 }
 0x153   : > { %v312_v38 = vrot.slane %v311_v37, 1 }
 0x155   : > { %v313_v39 = vadd.f32 %v312_v38, %v311_v37  ;;  %v617_v38 = vunpack.c.0.s8 %v616_v31 }
 0x157   : > { %v315_v40 = vmul.f32 0.2, %v313_v39  ;;  %v596_v39 = vrot.slane %v522_v29, %v894_v46 }
 0x159   : > { %v316_v41 = vpack.c.bf16 %v315_v40, %v315_v40  ;;  %v592_v40 = vrot.slane %v522_v29, %v897_v47 }
 0x15b   : > { %721 = vmatmul.mubr.msk.bf16.vlgmr.msra.gmra.mrb[0].mxu0 %vm435_vm1, %v316_v41  ;;  %722 = vmatmul.mubr.msk.bf16.vlgmr.msra.gmra.mrb[0].mxu1 %vm435_vm1, %v316_v41  ;;  %v600_v41 = vrot.slane %v522_v29, %v900_v48 }
 0x22e   : > { %v473_v52 = vpop.f32.mrb[0].mxu0  ;;  %v514_v53 = vpop.f32.mrb[0].mxu1 }
 0x22f   : > { %v474_v55 = vadd.f32 %v473_v52, %v418_v49  ;;  %v475_v56 = vpop.f32.mrb[1].mxu0  ;;  %v516_v57 = vpop.f32.mrb[1].mxu1  ;;  %v515_v58 = vadd.f32 %v514_v53, %v426_v50 }
 0x230   : > { %v476_v59 = vadd.f32 %v475_v56, %v422_v51  ;;  %v477_v60 = vpop.f32.mrb[2].mxu0  ;;  %v518_v61 = vpop.f32.mrb[2].mxu1  ;;  %v517_v2 = vadd.f32 %v516_v57, %v430_v54 }
 0x231   : > { %v524_v62 = vsel %vm523_vm2, %v474_v55, 0.0  ;;  %v478_v63 = vpop.f32.mrb[3].mxu0  ;;  %v519_v0 = vpop.f32.mrb[3].mxu1  ;;  %v527_v4 = vsel %vm523_vm2, %v515_v58, 0.0 }
 0x232   : > { %v525_v1 = vsel %vm523_vm2, %v476_v59, 0.0  ;;  %v529_v6 = vsel %vm523_vm2, %v517_v2, 0.0 }
 0x233   : > { %v526_v3 = vadd.f32 %v525_v1, %v524_v62 }
 0x235   : > { %v528_v5 = vadd.f32 %v527_v4, %v526_v3 }
 0x237   : > { %v530_v7 = vadd.f32 %v529_v6, %v528_v5 }
 0x239   : > { %531 = vadd.xlane.f32.xlu1 %v530_v7 }
 0x2c6   : > { %v532_v8 = vpop.xlane.xlu1 %531 }
 0x2c7   : > { %v534_v9 = vmul.f32 0.001953125, %v532_v8 }
 0x2c9   : > { %v535_v10 = vsub.f32 %v474_v55, %v534_v9  ;;  %v536_v11 = vsub.f32 %v476_v59, %v534_v9  ;;  %v537_v12 = vsub.f32 %v515_v58, %v534_v9  ;;  %v538_v13 = vsub.f32 %v517_v2, %v534_v9 }
 0x2ca   : > { %v620_v55 = vsub.s32 %v617_v38, %v885_v43 }
 0x2cb   : > { %v539_v14 = vmul.f32 %v535_v10, %v535_v10  ;;  %v540_v15 = vmul.f32 %v536_v11, %v536_v11  ;;  %v541_v16 = vmul.f32 %v537_v12, %v537_v12  ;;  %v542_v17 = vmul.f32 %v538_v13, %v538_v13 }
 0x2cd   : > { %v543_v18 = vsel %vm523_vm2, %v539_v14, 0.0  ;;  %v544_v19 = vsel %vm523_vm2, %v540_v15, 0.0  ;;  %v546_v21 = vsel %vm523_vm2, %v541_v16, 0.0  ;;  %v548_v23 = vsel %vm523_vm2, %v542_v17, 0.0 }
 0x2ce   : > { %v545_v20 = vadd.f32 %v544_v19, %v543_v18 }
 0x2d0   : > { %v547_v22 = vadd.f32 %v546_v21, %v545_v20 }
 0x2d2   : > { %v549_v24 = vadd.f32 %v548_v23, %v547_v22 }
 0x2d4   : > { %550 = vadd.xlane.f32.xlu1 %v549_v24 }
 0x361   : > { %v551_v25 = vpop.xlane.xlu1 %550 }
 0x362   : > { %v552_v26 = vmul.f32 0.001953125, %v551_v25 }
 0x364   : > { %v553_v27 = vadd.f32 1e-05, %v552_v26 }
 0x366   : > { %761 = vrsqrt.f32 %v553_v27 }
 0x370   : > { %v762_v37 = vpop.eup %761 }
 0x371   : > { %v555_v45 = vmul.f32 %v762_v37, %v535_v10  ;;  %v556_v49 = vmul.f32 %v762_v37, %v536_v11  ;;  %v557_v50 = vmul.f32 %v762_v37, %v537_v12  ;;  %v558_v51 = vmul.f32 %v762_v37, %v538_v13 }
 0x373   : > { %v580_v44 = vmul.f32 %v563_v32, %v555_v45  ;;  %v581_v52 = vmul.f32 %v567_v35, %v556_v49  ;;  %v582_v53 = vmul.f32 %v571_v34, %v557_v50  ;;  %v583_v54 = vmul.f32 %v575_v36, %v558_v51 }
 0x375   : > { %v605_v56 = vadd.f32 %v588_v33, %v580_v44  ;;  %v606_v57 = vadd.f32 %v592_v40, %v581_v52  ;;  %v607_v58 = vadd.f32 %v596_v39, %v582_v53  ;;  %v608_v59 = vadd.f32 %v600_v41, %v583_v54 }
 0x377   : > { %v613_v46 = vcombine.low %v605_v56, %v606_v57  ;;  %v614_v60 = vcombine.low %v607_v58, %v608_v59 }
 0x379   : > { %v621_v47 = vrot.slane %v613_v46, %v620_v55  ;;  %v628_v48 = vrot.slane %v614_v60, %v620_v55 }
 0x37b   : > { %v629_v61 = vcombine.low %v621_v47, %v628_v48 }
 0x37d   : > { %v636_v62 = vrot.slane %v629_v61, %v620_v55 }
 0x37f   : > { %642 = vst.msk [vmem:[%s273_s10] sm:$0xf] %vm640_vm3, %v636_v62 }
 0x380 PF: > { %s17_s24 = sadd.s32 1, %s769_s24  }
 0x381   : > { %p14_p4 = scmp.ge.s32.totalorder %s17_s24, 4  }
 0x383   :  { %16 = sbr.rel (!%p14_p4) target bundleno = 1 (0x1), region = 78 }

// kernel: fwd.10
= control target key start
LH: loop header
LB: loop body
LE: loop exit
PB: predicated region body
PF: predicated region fallthrough
CT: control target
= control target key end

     0   :  { %s1513_s25 = smov 0   ;;  %s1702_s0 = inlined_call_operand.vmem [shape: f32[2,5,64], index: 0, kind: input, shape index: {}]   ;;  %s1703_s1 = inlined_call_operand.vmem [shape: bf16[64,192], index: 1, kind: input, shape index: {}]   ;;  %s1704_s2 = inlined_call_operand.vmem [shape: f32[1,192], index: 2, kind: input, shape index: {}]   ;;  %s1705_s3 = inlined_call_operand.vmem [shape: bf16[64,64], index: 3, kind: input, shape index: {}]   ;;  %s1706_s4 = inlined_call_operand.vmem [shape: f32[1,64], index: 4, kind: input, shape index: {}]   ;;  %s1707_s5 = inlined_call_operand.vmem [shape: f32[1,64], index: 5, kind: input, shape index: {}]   ;;  %s1708_s6 = inlined_call_operand.vmem [shape: f32[1,64], index: 6, kind: input, shape index: {}]   ;;  %s1709_s7 = inlined_call_operand.vmem [shape: bf16[64,128], index: 7, kind: input, shape index: {}]   ;;  %s1710_s8 = inlined_call_operand.vmem [shape: f32[1,128], index: 8, kind: input, shape index: {}]   ;;  %s1711_s9 = inlined_call_operand.vmem [shape: bf16[128,64], index: 9, kind: input, shape index: {}]   ;;  %s1712_s10 = inlined_call_operand.vmem [shape: f32[1,64], index: 10, kind: input, shape index: {}]   ;;  %s1713_s11 = inlined_call_operand.vmem [shape: f32[1,64], index: 11, kind: input, shape index: {}]   ;;  %s1714_s12 = inlined_call_operand.vmem [shape: f32[1,64], index: 12, kind: input, shape index: {}]   ;;  %s1715_s13 = inlined_call_operand.vmem [shape: f32[2,5,64], index: 13, kind: output, shape index: {}]  }
   0x1 LB: > { %s1223_s26 = sadd.s32 4294967295, %s1434_s25   ;;  %p1227_p0 = scmp.ge.s32.totalorder %s1434_s25, 1  ;;  %s1434_s25 = sphi %s1513_s25, %s23_s25  }
   0x2   : > { %p386_p1 = scmp.lt.s32.totalorder %s1434_s25, 3 }
   0x4   : > { %p387_p2 = pnand %p1227_p0, %p386_p1 }
   0x5   : > { %p428_p3 = scmp.lt.s32.totalorder (!%p387_p2), %s1223_s26, 1  ;;  %vm442_vm0 = vcmask (!%p387_p2), 520192   ;;  %v1386_v7 = vld [vmem:[%s1703_s1 + $0x4] ss:$8 sps:$4 sm:$0xff] (!%p387_p2)   ;;  %v1388_v8 = vld [vmem:[%s1703_s1] ss:$8 sps:$4 sm:$0xff] (!%p387_p2)   ;;  %v482_v27 = vlaneseq (!%p387_p2) }
   0x6   : > { %390 = sbr.rel (%p387_p2) target bundleno = 2412 (0x96c), region = 72  ;;  %v1389_v9 = vld [vmem:[%s1703_s1 + $0x14] ss:$8 sps:$4 sm:$0xff] (!%p387_p2)   ;;  %536 = vmatprep.subr.bf16.mxu0 (!%p387_p2), %v1386_v7  ;;  %v1391_v10 = vld [vmem:[%s1703_s1 + $0x10] ss:$8 sps:$4 sm:$0xff] (!%p387_p2)   ;;  %v1436_v11 = vmov (!%p387_p2), 0  }
   0x7   : > { %537 = vmatpush1.bf16.msra.mxu0 (!%p387_p2), %v1388_v8  ;;  %568 = vmatprep.mubr.bf16.mxu0 (!%p387_p2), %v1436_v11  ;;  %v1392_v12 = vld [vmem:[%s1703_s1 + $0x24] ss:$8 sps:$4 sm:$0xff] (!%p387_p2)   ;;  %v1394_v13 = vld [vmem:[%s1703_s1 + $0x20] ss:$8 sps:$4 sm:$0xff] (!%p387_p2)   ;;  %v1395_v14 = vld [vmem:[%s1703_s1 + $0x34] ss:$8 sps:$4 sm:$0xff] (!%p387_p2)  }
   0x8   : > { %538 = vmatprep.subr.bf16.mxu0 (!%p387_p2), %v1389_v9  ;;  %v1397_v15 = vld [vmem:[%s1703_s1 + $0x30] ss:$8 sps:$4 sm:$0xff] (!%p387_p2)   ;;  %v1230_v20 = vld [vmem:[%s1707_s5] ss:$0 sm:$0xff] (!%p387_p2)  ;;  %vm532_vm1 = vcmask (!%p387_p2), 523264   ;;  %v1437_v26 = vmov (!%p387_p2), 0.0  }
   0x9   : > { %v1231_v22 = vld [vmem:[%s1708_s6] ss:$0 sm:$0xff] (!%p387_p2)  ;;  %1305 = vmatprep.subr.bf16.mxu1 (!%p387_p2), %v1437_v26  ;;  %v483_v28 = vshrl.u32 (!%p387_p2), %v482_v27, 7  ;;  %vm656_vm2 = vcmask (!%p387_p2), 1041408   ;;  %vm1438_vm3 = vmmov (!%p387_p2), 0   ;;  %vm657_vm4 = vcmask (!%p387_p2), 1042432  }
   0xa   : > { %v480_v30 = vld [vmem:[%s1704_s2] sm:$0x3] (!%p387_p2)  ;;  %1307 = vmatprep.mubr.msk.bf16.mxu1 (!%p387_p2), %vm1438_vm3, %v1437_v26  ;;  %v1439_v35 = vmov (!%p387_p2), 65535   ;;  %s1440_s22 = smov (!%p387_p2), 64   ;;  %s1441_s23 = smov (!%p387_p2), 96   ;;  %vm592_vm5 = vcmask (!%p387_p2), 261120  }
   0xb   : > { %539 = vmatpush1.bf16.msra.mxu0 (!%p387_p2), %v1391_v10  ;;  %v484_v29 = vsub.s32 (!%p387_p2), 0, %v483_v28  ;;  %v488_v31 = vsub.s32 (!%p387_p2), 1, %v483_v28  ;;  %v658_v36 = vsel (!%p387_p2), %vm656_vm2, 4294967295, %v1439_v35  ;;  %s1442_s24 = smov (!%p387_p2), 32   ;;  %vm639_vm6 = vcmask (!%p387_p2), 36864  }
   0xc   : > { %540 = vmatprep.subr.bf16.mxu0 (!%p387_p2), %v1392_v12  ;;  %v1575_v44 = vsel (!%p387_p2), %vm657_vm4, %v658_v36, 0  ;;  %vm652_vm7 = vcmask (!%p387_p2), 39936  }
   0xd   : > { %s1717_s26 = smov (!%p428_p3, %s1223_s26), 1  ;;  %v485_v32 = vrot.slane %v480_v30, %v484_v29  ;;  %v489_v33 = vrot.slane %v480_v30, %v488_v31 }
   0xe   : > { %s1228_s27 = sshll.u32 %s1717_s26, 3 }
   0xf   : > { %s431_s30 = scalar_lea.vmem %s1702_s0, %s1228_s27  ;;  %541 = vmatpush1.bf16.msra.mxu0 %v1394_v13 }
  0x10   : > { %v1529_v0 = vld [vmem:[%s431_s30] sm:$0x1f]  ;;  %542 = vmatprep.subr.bf16.mxu0 %v1395_v14  ;;  %s435_s30 = scalar_lea.vmem %s1715_s13, %s1228_s27 }
  0x11   : > { %v443_v1 = vsel %vm442_vm0, %v1529_v0, 0.0 }
  0x12   : > { %444 = vadd.xlane.f32.xlu0 %v443_v1 }
  0x13   : > { %543 = vmatpush1.bf16.msra.mxu0 %v1397_v15 }
  0x14   : > { %1299 = vmatprep.subr.bf16.mxu0 %v1437_v26 }
  0x9f   : > { %v445_v2 = vpop.xlane.xlu0 %444 }
  0xa0   : > { %v447_v3 = vmul.f32 0.015625, %v445_v2 }
  0xa2   : > { %v448_v4 = vsub.f32 %v1529_v0, %v447_v3 }
  0xa4   : > { %v449_v5 = vmul.f32 %v448_v4, %v448_v4 }
  0xa6   : > { %v450_v6 = vsel %vm442_vm0, %v449_v5, 0.0 }
  0xa7   : > { %451 = vadd.xlane.f32.xlu0 %v450_v6 }
 0x134   : > { %v452_v16 = vpop.xlane.xlu0 %451 }
 0x135   : > { %v453_v17 = vmul.f32 0.015625, %v452_v16 }
 0x137   : > { %v454_v18 = vadd.f32 1e-12, %v453_v17 }
 0x139   : > { %1414 = vrsqrt.f32 %v454_v18 }
 0x143   : > { %v1415_v19 = vpop.eup %1414 }
 0x144   : > { %v456_v21 = vmul.f32 %v1415_v19, %v448_v4  ;;  %v1398_v19 = vld [vmem:[%s1705_s3] sm:$0xff]  }
 0x146   : > { %v463_v23 = vmul.f32 %v1230_v20, %v456_v21  ;;  %v1399_v21 = vld [vmem:[%s1705_s3 + $0x8] sm:$0xff]  }
 0x148   : > { %v470_v24 = vadd.f32 %v1231_v22, %v463_v23  ;;  %v1400_v22 = vld [vmem:[%s1705_s3 + $0x10] sm:$0xff]   ;;  %v1401_v23 = vld [vmem:[%s1705_s3 + $0x18] sm:$0xff]  }
 0x14a   : > { %v471_v25 = vpack.c.bf16 %v470_v24, %v470_v24 }
 0x14c   : > { %1240 = vmatmul.mubr.msk.bf16.vlgmr.msra.gmra.mrb[0].mxu0 %vm532_vm1, %v471_v25 }
 0x14d   : > { %1301 = vmatprep.mubr.msk.bf16.mxu0 %vm1438_vm3, %v1437_v26 }
 0x21f   : > { %v570_v34 = vpop.f32.mrb[0].mxu0 }
 0x220   : > { %v571_v37 = vadd.f32 %v570_v34, %v485_v32  ;;  %v572_v38 = vpop.f32.mrb[1].mxu0 }
 0x221   : > { %v573_v39 = vadd.f32 %v572_v38, %v489_v33  ;;  %v574_v40 = vpop.f32.mrb[2].mxu0 }
 0x222   : > { %v585_v41 = vmul.f32 0.17677669, %v571_v37  ;;  %v575_v42 = vpop.f32.mrb[3].mxu0  ;;  %v587_v43 = vpack.c.bf16 %v571_v37, %v571_v37 }
 0x223   : > { %v588_v45 = vpack.c.bf16 %v573_v39, %v573_v39  ;;  %v1251_v42 = vld [vmem:[%s1706_s4] ss:$0 sm:$0xff] }
 0x224   : > { %v586_v46 = vpack.c.bf16 %v585_v41, %v585_v41  ;;  %590 = vrot.lane.b32.xlu1 %v587_v43, %s1440_s22 }
 0x225   : > { %v661_v47 = vand.u32 %v1575_v44, %v588_v45 }
 0x226   : > { %705 = vrot.lane.b32.xlu0 %v586_v46, %s1441_s23 }
 0x227   : > { %1306 = vmatpush3.bf16.msra.mxu1 %v661_v47 }
 0x228   : > { %707 = vrot.lane.b32.xlu1 %v587_v43, %s1442_s24  ;;  %1317 = vmatprep.subr.bf16.mxu1 %v1437_v26 }
 0x296   : > { %v591_v48 = vpop.permute.xlu1 %590 }
 0x297   : > { %v597_v49 = vsel %vm592_vm5, %v591_v48, 0 }
 0x298   : > { %1300 = vmatpush3.bf16.xpose.msra.mxu0 %v597_v49  ;;  %v706_v52 = vpop.permute.xlu0 %705 }
 0x299   : > { %1311 = vmatprep.subr.bf16.mxu0 %v1437_v26 }
 0x29a   : > { %v708_v50 = vpop.permute.xlu1 %707 }
 0x29b   : > { %v713_v51 = vsel %vm592_vm5, %v708_v50, 0 }
 0x29f   : > { %1302 = vmatmul.mubr.msk.bf16.vlgmr.msra.gmra.mrb[4].mxu0 %vm592_vm5, %v586_v46 }
 0x2a0   : > { %1312 = vmatpush3.bf16.xpose.msra.mxu0 %v713_v51  ;;  %1313 = vmatprep.mubr.msk.bf16.mxu0 %vm1438_vm3, %v1437_v26 }
 0x2a1   : > { %1323 = vmatprep.subr.bf16.mxu0 %v1437_v26 }
 0x2a7   : > { %1314 = vmatmul.mubr.msk.bf16.vlgmr.msra.gmra.mrb[8].mxu0 %vm592_vm5, %v706_v52 }
 0x2a8   : > { %1327 = vmatprep.mubr.msk.bf16.mxu0 %vm1438_vm3, %v1437_v26  ;;  %1324 = vmatpush3.bf16.msra.mxu0 %v1400_v22 }
 0x2a9   : > { %1325 = vmatprep.subr.bf16.mxu0 %v1437_v26 }
 0x2ac   : > { %1326 = vmatpush3.bf16.msra.mxu0 %v1401_v23 }
 0x2ad   : > { %1339 = vmatprep.subr.bf16.mxu0 %v1437_v26 }
 0x372   : > { %v633_v53 = vpop.f32.mrb[4].mxu0 }
 0x373   : > { %v1303_v54 = vpop.f32.mrb[5].mxu0  ;;  %v640_v55 = vsel %vm639_vm6, %v633_v53, -inf }
 0x374   : > { %641 = vmax.xlane.f32.xlu1 %v640_v55  ;;  %v636_v56 = vpop.f32.mrb[6].mxu0  ;;  %v1404_v54 = vld [vmem:[%s1709_s7 + $0x10] sm:$0xff]   ;;  %v1405_v55 = vld [vmem:[%s1709_s7 + $0x18] sm:$0xff]  }
 0x375   : > { %v1304_v57 = vpop.f32.mrb[7].mxu0  ;;  %v1406_v56 = vld [vmem:[%s1711_s9] sm:$0xff]  }
 0x37a   : > { %v749_v58 = vpop.f32.mrb[8].mxu0 }
 0x37b   : > { %v1315_v59 = vpop.f32.mrb[9].mxu0  ;;  %v755_v60 = vsel %vm639_vm6, %v749_v58, -inf }
 0x37c   : > { %756 = vmax.xlane.f32.xlu0 %v755_v60  ;;  %v752_v61 = vpop.f32.mrb[10].mxu0 }
 0x37d   : > { %v1316_v62 = vpop.f32.mrb[11].mxu0  ;;  %v1252_v61 = vld [vmem:[%s1713_s11] ss:$0 sm:$0xff] }
 0x401   : > { %v642_v63 = vpop.xlane.xlu1 %641 }
 0x402   : > { %v643_v1 = vsub.f32 %v633_v53, %v642_v63  ;;  %v1402_v53 = vld [vmem:[%s1709_s7] sm:$0xff]  }
 0x403   : > { %v1253_v63 = vld [vmem:[%s1714_s12] ss:$0 sm:$0xff] }
 0x404   : > { %v644_v2 = vmul.f32 1.442695, %v643_v1 }
 0x406   : > { %1416 = vpow2.f32 %v644_v2 }
 0x409   : > { %v757_v3 = vpop.xlane.xlu0 %756 }
 0x40a   : > { %v758_v4 = vsub.f32 %v749_v58, %v757_v3 }
 0x40c   : > { %v759_v5 = vmul.f32 1.442695, %v758_v4  ;;  %v1407_v4 = vld [vmem:[%s1711_s9 + $0x8] sm:$0xff]  }
 0x40e   : > { %1418 = vpow2.f32 %v759_v5  ;;  %v1408_v5 = vld [vmem:[%s1711_s9 + $0x10] sm:$0xff]  }
 0x410   : > { %v1417_v6 = vpop.eup %1416 }
 0x411   : > { %v646_v7 = vsel %vm639_vm6, %v1417_v6, 0.0 }
 0x412   : > { %647 = vadd.xlane.f32.xlu1 %v646_v7  ;;  %v1410_v7 = vld [vmem:[%s1711_s9 + $0x20] sm:$0xff]  }
 0x418   : > { %v1419_v8 = vpop.eup %1418 }
 0x419   : > { %v761_v9 = vsel %vm639_vm6, %v1419_v8, 0.0 }
 0x41a   : > { %762 = vadd.xlane.f32.xlu1 %v761_v9  ;;  %v1412_v9 = vld [vmem:[%s1711_s9 + $0x30] sm:$0xff]  }
 0x42b   : > { %768 = vrot.lane.b32.xlu1 %v588_v45, %s1441_s23 }
 0x49f   : > { %v648_v10 = vpop.xlane.xlu1 %647 }
 0x4a0   : > { %1420 = vrcp.f32 %v648_v10  ;;  %v1413_v10 = vld [vmem:[%s1711_s9 + $0x38] sm:$0xff]  }
 0x4a7   : > { %v763_v11 = vpop.xlane.xlu1 %762 }
 0x4a8   : > { %1422 = vrcp.f32 %v763_v11  ;;  %v1254_v11 = vld [vmem:[%s1710_s8] ss:$0 sm:$0xff] }
 0x4aa   : > { %v1421_v12 = vpop.eup %1420 }
 0x4ab   : > { %v769_v13 = vpop.permute.xlu1 %768  ;;  %v650_v14 = vmul.f32 %v1421_v12, %v1417_v6  ;;  %v1409_v6 = vld [vmem:[%s1711_s9 + $0x18] sm:$0xff]  }
 0x4ac   : > { %v774_v15 = vand.u32 %v769_v13, %v1575_v44 }
 0x4ad   : > { %v651_v16 = vpack.c.bf16 %v650_v14, %v650_v14 }
 0x4af   : > { %1308 = vmatmul.mubr.msk.bf16.vlgmr.msra.gmra.mrb[0].mxu1 %vm652_vm7, %v651_v16 }
 0x4b0   : > { %1318 = vmatpush3.bf16.msra.mxu1 %v774_v15  ;;  %1319 = vmatprep.mubr.msk.bf16.mxu1 %vm1438_vm3, %v1437_v26 }
 0x4b1   : > { %1331 = vmatprep.subr.bf16.mxu1 %v1437_v26 }
 0x4b2   : > { %v1423_v17 = vpop.eup %1422 }
 0x4b3   : > { %v765_v18 = vmul.f32 %v1423_v17, %v1419_v8  ;;  %v1411_v8 = vld [vmem:[%s1711_s9 + $0x28] sm:$0xff]  }
 0x4b5   : > { %v766_v20 = vpack.c.bf16 %v765_v18, %v765_v18 }
 0x4b7   : > { %1320 = vmatmul.mubr.msk.bf16.vlgmr.msra.gmra.mrb[4].mxu1 %vm652_vm7, %v766_v20 }
 0x4b8   : > { %1332 = vmatpush3.bf16.msra.mxu1 %v1398_v19  ;;  %1335 = vmatprep.mubr.msk.bf16.mxu1 %vm1438_vm3, %v1437_v26 }
 0x4b9   : > { %1333 = vmatprep.subr.bf16.mxu1 %v1437_v26 }
 0x4bc   : > { %1334 = vmatpush3.bf16.msra.mxu1 %v1399_v21 }
 0x4bd   : > { %1351 = vmatprep.subr.bf16.mxu1 %v1437_v26 }
 0x582   : > { %v697_v24 = vpop.f32.mrb[0].mxu1 }
 0x583   : > { %v703_v25 = vpack.c.bf16 %v697_v24, %v697_v24  ;;  %v1309_v27 = vpop.f32.mrb[1].mxu1 }
 0x584   : > { %v700_v28 = vpop.f32.mrb[2].mxu1 }
 0x585   : > { %v1310_v29 = vpop.f32.mrb[3].mxu1  ;;  %1336 = vmatmul.mubr.msk.bf16.vlgmr.msra.gmra.mrb[8].mxu1 %vm592_vm5, %v703_v25  ;;  %v1268_v28 = vld [vmem:[%s1712_s10] ss:$0 sm:$0xff] }
 0x586   : > { %1367 = vmatprep.mubr.msk.bf16.mxu1 %vm1438_vm3, %v1437_v26  ;;  %1352 = vmatpush3.bf16.msra.mxu1 %v1406_v56 }
 0x587   : > { %1353 = vmatprep.subr.bf16.mxu1 %v1437_v26 }
 0x58a   : > { %v810_v30 = vpop.f32.mrb[4].mxu1  ;;  %1354 = vmatpush3.bf16.msra.mxu1 %v1407_v4 }
 0x58b   : > { %v816_v31 = vpack.c.bf16 %v810_v30, %v810_v30  ;;  %v1321_v32 = vpop.f32.mrb[5].mxu1  ;;  %1355 = vmatprep.subr.bf16.mxu1 %v1437_v26 }
 0x58c   : > { %v813_v33 = vpop.f32.mrb[6].mxu1 }
 0x58d   : > { %v1322_v34 = vpop.f32.mrb[7].mxu1  ;;  %1328 = vmatmul.mubr.msk.bf16.vlgmr.msra.gmra.mrb[12].mxu0 %vm592_vm5, %v816_v31 }
 0x58e   : > { %1347 = vmatprep.mubr.msk.bf16.mxu0 %vm1438_vm3, %v1437_v26  ;;  %1340 = vmatpush3.bf16.msra.mxu0 %v1402_v53 }
 0x58f   : > { %1341 = vmatprep.subr.bf16.mxu0 %v1437_v26  ;;  %1356 = vmatpush3.bf16.msra.mxu1 %v1408_v5 }
 0x590   : > { %1357 = vmatprep.subr.bf16.mxu1 %v1437_v26 }
 0x593   : > { %1358 = vmatpush3.bf16.msra.mxu1 %v1409_v6 }
 0x594   : > { %1359 = vmatprep.subr.bf16.mxu1 %v1437_v26 }
 0x597   : > { %1360 = vmatpush3.bf16.msra.mxu1 %v1410_v7 }
 0x598   : > { %1361 = vmatprep.subr.bf16.mxu1 %v1437_v26 }
 0x59b   : > { %1362 = vmatpush3.bf16.msra.mxu1 %v1411_v8 }
 0x59c   : > { %1363 = vmatprep.subr.bf16.mxu1 %v1437_v26 }
 0x59f   : > { %1364 = vmatpush3.bf16.msra.mxu1 %v1412_v9 }
 0x5a0   : > { %1365 = vmatprep.subr.bf16.mxu1 %v1437_v26 }
 0x5a3   : > { %1366 = vmatpush3.bf16.msra.mxu1 %v1413_v10 }
 0x658   : > { %v921_v35 = vpop.f32.mrb[8].mxu1 }
 0x659   : > { %v1337_v36 = vpop.f32.mrb[9].mxu1 }
 0x65a   : > { %v924_v37 = vpop.f32.mrb[10].mxu1 }
 0x65b   : > { %v1338_v38 = vpop.f32.mrb[11].mxu1 }
 0x660   : > { %v866_v39 = vpop.f32.mrb[12].mxu0 }
 0x661   : > { %v922_v40 = vadd.f32 %v921_v35, %v866_v39  ;;  %v1329_v41 = vpop.f32.mrb[13].mxu0 }
 0x662   : > { %v869_v43 = vpop.f32.mrb[14].mxu0 }
 0x663   : > { %v927_v44 = vadd.f32 %v922_v40, %v1529_v0  ;;  %v1330_v45 = vpop.f32.mrb[15].mxu0  ;;  %v1403_v0 = vld [vmem:[%s1709_s7 + $0x8] sm:$0xff]  }
 0x664   : > { %1342 = vmatpush3.bf16.msra.mxu0 %v1403_v0 }
 0x665   : > { %v1627_v46 = vadd.f32 %v1251_v42, %v927_v44  ;;  %1343 = vmatprep.subr.bf16.mxu0 %v1437_v26 }
 0x667   : > { %v936_v47 = vsel %vm442_vm0, %v1627_v46, 0.0 }
 0x668   : > { %937 = vadd.xlane.f32.xlu0 %v936_v47  ;;  %1344 = vmatpush3.bf16.msra.mxu0 %v1404_v54 }
 0x669   : > { %1345 = vmatprep.subr.bf16.mxu0 %v1437_v26 }
 0x66c   : > { %1346 = vmatpush3.bf16.msra.mxu0 %v1405_v55 }
 0x6f5   : > { %v938_v48 = vpop.xlane.xlu0 %937 }
 0x6f6   : > { %v939_v49 = vmul.f32 0.015625, %v938_v48 }
 0x6f8   : > { %v940_v50 = vsub.f32 %v1627_v46, %v939_v49 }
 0x6fa   : > { %v941_v51 = vmul.f32 %v940_v50, %v940_v50 }
 0x6fc   : > { %v942_v52 = vsel %vm442_vm0, %v941_v51, 0.0 }
 0x6fd   : > { %943 = vadd.xlane.f32.xlu0 %v942_v52 }
 0x78a   : > { %v944_v57 = vpop.xlane.xlu0 %943 }
 0x78b   : > { %v945_v58 = vmul.f32 0.015625, %v944_v57 }
 0x78d   : > { %v946_v59 = vadd.f32 1e-12, %v945_v58 }
 0x78f   : > { %1424 = vrsqrt.f32 %v946_v59 }
 0x799   : > { %v1425_v60 = vpop.eup %1424 }
 0x79a   : > { %v948_v62 = vmul.f32 %v1425_v60, %v940_v50 }
 0x79c   : > { %v955_v1 = vmul.f32 %v1252_v61, %v948_v62 }
 0x79e   : > { %v962_v2 = vadd.f32 %v1253_v63, %v955_v1 }
 0x7a0   : > { %v963_v3 = vpack.c.bf16 %v962_v2, %v962_v2 }
 0x7a2   : > { %1348 = vmatmul.mubr.msk.bf16.vlgmr.msra.gmra.mrb[16].mxu0 %vm532_vm1, %v963_v3 }
 0x875   : > { %v1040_v12 = vpop.f32.mrb[16].mxu0 }
 0x876   : > { %v1041_v13 = vadd.f32 %v1254_v11, %v1040_v12  ;;  %v1349_v14 = vpop.f32.mrb[17].mxu0 }
 0x877   : > { %v1043_v15 = vpop.f32.mrb[18].mxu0 }
 0x878   : > { %v1047_v16 = vmul.f32 0.044715, %v1041_v13  ;;  %v1350_v17 = vpop.f32.mrb[19].mxu0  ;;  %v1046_v23 = vmul.f32 0.5, %v1041_v13 }
 0x87a   : > { %v1048_v18 = vmul.f32 %v1047_v16, %v1041_v13 }
 0x87c   : > { %v1049_v19 = vmul.f32 %v1048_v18, %v1041_v13 }
 0x87e   : > { %v1050_v20 = vadd.f32 %v1049_v19, %v1041_v13 }
 0x880   : > { %v1051_v21 = vmul.f32 0.7978846, %v1050_v20 }
 0x882   : > { %1426 = vtanh.f32 %v1051_v21 }
 0x88c   : > { %v1427_v22 = vpop.eup %1426 }
 0x88d   : > { %v1053_v26 = vadd.f32 1.0, %v1427_v22 }
 0x88f   : > { %v1054_v24 = vmul.f32 %v1053_v26, %v1046_v23 }
 0x891   : > { %v1055_v25 = vpack.c.bf16 %v1054_v24, %v1054_v24 }
 0x893   : > { %1368 = vmatmul.mubr.bf16.vlgmr.msra.gmra.mrb[12].mxu1 %v1055_v25 }
 0x966   : > { %v1154_v27 = vpop.f32.mrb[12].mxu1 }
 0x967   : > { %v1160_v29 = vadd.f32 %v1154_v27, %v1627_v46  ;;  %v1369_v30 = vpop.f32.mrb[13].mxu1 }
 0x968   : > { %v1157_v31 = vpop.f32.mrb[14].mxu1 }
 0x969   : > { %v1168_v32 = vadd.f32 %v1268_v28, %v1160_v29  ;;  %v1370_v33 = vpop.f32.mrb[15].mxu1 }
 0x96b   : > { %1169 = vst.msk [vmem:[%s435_s30] sm:$0x1f] %vm442_vm0, %v1168_v32 }
 0x96c PF: > { %s23_s25 = sadd.s32 1, %s1434_s25  }
 0x96d   : > { %p20_p4 = scmp.ge.s32.totalorder %s23_s25, 4  }
 0x96f   :  { %22 = sbr.rel (!%p20_p4) target bundleno = 1 (0x1), region = 102 }

</bundles_post_ra>
